<compile_context>
chip_gen: v7x
topology: tpu7x:2x2x1
jax: 0.10.0
libtpu: 0.0.40
codegen_flags: <defaults>
</compile_context>

<pallas_src>
import functools

import jax
import jax.numpy as jnp
import numpy as np
from jax.experimental import pallas as pl
from jax.experimental.pallas import tpu as pltpu

_LANES = 128


def basic_conv_kernel(x_ref, w_ref, b_ref, o_ref, *,
                      tile_h, W, KH, KW, stride, cin, use_vpu):
    """One (batch image, output-row tile) grid step.

    x_ref: (Hp, Wp, Cin)       bf16 padded NHWC image (batch dim squeezed)
    w_ref: (KH*KW*Cin, Cpad)   bf16 BN-scale-folded weights, Cout padded to 128*k
    b_ref: (1, Cpad)           f32  folded BN bias
    o_ref: (tile_h, W, Cpad)   f32  lane-dense output tile
    """
    cpad = o_ref.shape[-1]
    rows = (tile_h - 1) * stride + KH                          # halo'd input rows
    h_start = pl.multiple_of(pl.program_id(1) * (tile_h * stride),
                             tile_h * stride)
    x_rows = x_ref[pl.ds(h_start, rows), :, :]                 # (rows, Wp, Cin)

    def tap(kh, kw):
        # (tile_h, W, Cin) shifted window of the padded input for tap (kh, kw).
        return jax.lax.slice(
            x_rows,
            (kh, kw, 0),
            (kh + (tile_h - 1) * stride + 1,
             kw + (W - 1) * stride + 1,
             cin),
            (stride, stride, 1))

    if use_vpu:
        # Tiny channel count: contract channels on the VPU (broadcast-FMA);
        # the MXU would use only Cin of its contraction rows.  The accumulator
        # is already lane-dense (tile_h, W, Cpad), so no reshape before store.
        wmat = w_ref[...].astype(jnp.float32)                  # (K, Cpad)
        acc = jnp.zeros((tile_h, W, cpad), jnp.float32)
        for kh in range(KH):
            for kw in range(KW):
                sl = tap(kh, kw).astype(jnp.float32)           # (tile_h, W, Cin)
                for c in range(cin):
                    k = (kh * KW + kw) * cin + c
                    acc = acc + sl[:, :, c:c + 1] * wmat[k:k + 1, :]
        y = jnp.maximum(acc + b_ref[...], 0.0)
        o_ref[...] = y.astype(o_ref.dtype)
    else:
        # Larger Cin: flat 2-D MXU matmuls with the full channel contraction.
        m = tile_h * W
        acc = jnp.zeros((m, cpad), jnp.float32)
        for kh in range(KH):
            for kw in range(KW):
                lhs = tap(kh, kw).reshape(m, cin)              # (M, Cin) bf16
                k0 = (kh * KW + kw) * cin
                acc = acc + jnp.dot(lhs, w_ref[k0:k0 + cin, :],
                                    preferred_element_type=jnp.float32)
        y = jnp.maximum(acc + b_ref[...], 0.0)                 # (M, Cpad)
        o_ref[...] = y.reshape(tile_h, W, cpad).astype(o_ref.dtype)


def _pick_tile_h(H, W):
    """Largest divisor of H with tile_h*W ~ 128 flattened output rows, so the
    f32 accumulator stays comfortably in vregs at Cpad=128."""
    target = max(1, 128 // max(1, W))
    best = 1
    for d in range(1, H + 1):
        if H % d == 0 and d <= target:
            best = d
    return best


@functools.partial(jax.jit, static_argnames=("stride", "padding", "eps"))
def basic_conv(x_nchw, w_oihw, gamma, beta, running_mean, running_var, *,
               stride=1, padding=1, eps=1e-5):
    """JAX wrapper reproducing BasicConv.forward (bn=True, relu=True, bias=False)."""
    N, Cin, Hin, Win = x_nchw.shape
    Cout, _, KH, KW = w_oihw.shape
    H = (Hin + 2 * padding - KH) // stride + 1
    W = (Win + 2 * padding - KW) // stride + 1
    Hp, Wp = Hin + 2 * padding, Win + 2 * padding
    K = KH * KW * Cin
    Cpad = ((Cout + _LANES - 1) // _LANES) * _LANES

    # --- glue: BN folding, layout conversion, padding (plain JAX) -----------
    scale = gamma / jnp.sqrt(running_var + eps)                      # (Cout,)
    bias = (beta - running_mean * scale).astype(jnp.float32)         # (Cout,)

    x = jnp.transpose(x_nchw, (0, 2, 3, 1)).astype(jnp.float32)      # NHWC
    x = jnp.pad(x, ((0, 0), (padding, padding), (padding, padding), (0, 0)))
    x = x.astype(jnp.bfloat16)

    # OIHW -> HWIO, fold BN scale into weights, flatten taps, pad Cout -> Cpad.
    w = jnp.transpose(w_oihw, (2, 3, 1, 0)).astype(jnp.float32)
    w = w * scale[None, None, None, :]
    w = w.reshape(K, Cout)
    w = jnp.pad(w, ((0, 0), (0, Cpad - Cout))).astype(jnp.bfloat16)  # (K, Cpad)
    b = jnp.pad(bias, (0, Cpad - Cout)).reshape(1, Cpad)             # (1, Cpad)

    tile_h = _pick_tile_h(H, W)
    grid = (N, H // tile_h)
    use_vpu = Cin <= 16   # reviewer guidance: tiny Cin -> VPU, else MXU

    kernel = functools.partial(
        basic_conv_kernel, tile_h=tile_h, W=W, KH=KH, KW=KW,
        stride=stride, cin=Cin, use_vpu=use_vpu)

    # VMEM budget hint (double-buffered blocks + slack), capped for v7x (64 MiB).
    blk_bytes = (Hp * Wp * Cin * 2 + K * Cpad * 2 + Cpad * 4
                 + tile_h * W * Cpad * 4)
    vmem_limit = int(min(64 * 2**20, max(32 * 2**20, 4 * blk_bytes)))

    out = pl.pallas_call(
        kernel,
        out_shape=jax.ShapeDtypeStruct((N, H, W, Cpad), jnp.float32),
        grid=grid,
        in_specs=[
            # Whole padded image of one batch element; block index constant
            # along the row-tile axis -> fetched once per image, reused.
            pl.BlockSpec((None, Hp, Wp, Cin), lambda n, h: (n, 0, 0, 0)),
            pl.BlockSpec((K, Cpad), lambda n, h: (0, 0)),
            pl.BlockSpec((1, Cpad), lambda n, h: (0, 0)),
        ],
        out_specs=pl.BlockSpec((None, tile_h, W, Cpad),
                               lambda n, h: (n, h, 0, 0)),
        compiler_params=pltpu.CompilerParams(
            dimension_semantics=("parallel", "parallel"),
            vmem_limit_bytes=vmem_limit),
    )(x, w, b)

    out = out[:, :, :, :Cout]                                        # drop lane pad
    return jnp.transpose(out, (0, 3, 1, 2)).astype(jnp.float32)      # NCHW


def _reference(x_nchw, w_oihw, gamma, beta, running_mean, running_var, *,
               stride, padding, eps=1e-5, match_bf16=False):
    """Pure-JAX reference (conv + folded BN + ReLU).  match_bf16=True mirrors
    the kernel's bf16-input / f32-accumulate precision for a tight check."""
    scale = gamma / jnp.sqrt(running_var + eps)
    bias = beta - running_mean * scale
    w = w_oihw.astype(jnp.float32) * scale[:, None, None, None]
    x = x_nchw.astype(jnp.float32)
    if match_bf16:
        w = w.astype(jnp.bfloat16).astype(jnp.float32)
        x = x.astype(jnp.bfloat16).astype(jnp.float32)
    y = jax.lax.conv_general_dilated(
        x, w, (stride, stride),
        ((padding, padding), (padding, padding)),
        dimension_numbers=("NCHW", "OIHW", "NCHW"),
        precision=jax.lax.Precision.HIGHEST)
    y = y + bias[None, :, None, None]
    return jnp.maximum(y, 0.0)


if __name__ == "__main__":
    # BasicConv(in_planes=4, out_planes=8, kernel_size=3, stride=1, padding=1,
    #           relu=True, bn=True, bias=False)
    N, Cin, Hin, Win = 2, 4, 16, 16
    Cout, KH, KW = 8, 3, 3
    stride, padding = 1, 1

    key = jax.random.PRNGKey(0)
    k_x, k_w, k_g, k_b, k_m, k_v = jax.random.split(key, 6)
    x = jax.random.normal(k_x, (N, Cin, Hin, Win), dtype=jnp.float32)
    w = jax.random.normal(k_w, (Cout, Cin, KH, KW), dtype=jnp.float32) * 0.1
    gamma = 1.0 + 0.1 * jax.random.normal(k_g, (Cout,), dtype=jnp.float32)
    beta = 0.1 * jax.random.normal(k_b, (Cout,), dtype=jnp.float32)
    running_mean = 0.1 * jax.random.normal(k_m, (Cout,), dtype=jnp.float32)
    running_var = jnp.abs(1.0 + 0.1 * jax.random.normal(k_v, (Cout,), dtype=jnp.float32))

    out = basic_conv(x, w, gamma, beta, running_mean, running_var,
                     stride=stride, padding=padding)
    out = jax.block_until_ready(out)

    # Tight check against a reference matching the kernel's precision choices.
    ref_bf16 = _reference(x, w, gamma, beta, running_mean, running_var,
                          stride=stride, padding=padding, match_bf16=True)
    np.testing.assert_allclose(np.asarray(out), np.asarray(ref_bf16),
                               rtol=1e-3, atol=1e-3)
    # Semantics check against the exact-f32 module math; tolerance covers the
    # deliberate bf16 rounding of x / folded weights.
    ref_f32 = _reference(x, w, gamma, beta, running_mean, running_var,
                         stride=stride, padding=padding, match_bf16=False)
    np.testing.assert_allclose(np.asarray(out), np.asarray(ref_f32),
                               rtol=3e-2, atol=3e-2)

    print("KERNEL_OK")
</pallas_src>

<mosaic_0001>
module attributes {stable_mosaic.version = 11 : i64} {
  func.func @basic_conv_kernel(%arg0: i32, %arg1: i32, %arg2: memref<1x18x18x4xbf16, #tpu.memory_space<vmem>>, %arg3: memref<36x128xbf16, #tpu.memory_space<vmem>>, %arg4: memref<1x128xf32, #tpu.memory_space<vmem>>, %arg5: memref<1x8x16x128xf32, #tpu.memory_space<vmem>>) attributes {dimension_semantics = [#tpu.dimension_semantics<parallel>, #tpu.dimension_semantics<parallel>], iteration_bounds = array<i64: 2, 2>, scalar_prefetch = 0 : i64, scratch_operands = 0 : i64, tpu.core_type = #tpu.core_type<tc>, window_params = [{transform_indices = @transform_0, window_bounds = array<i64: 1, 18, 18, 4>}, {pipeline_mode = #tpu.pipeline_mode<synchronous>, transform_indices = @transform_1, window_bounds = array<i64: 36, 128>}, {pipeline_mode = #tpu.pipeline_mode<synchronous>, transform_indices = @transform_2, window_bounds = array<i64: 1, 128>}, {transform_indices = @transform_3, window_bounds = array<i64: 1, 8, 16, 128>}]} {
    %c8_i32 = arith.constant 8 : i32
    %0 = arith.muli %arg1, %c8_i32 : i32
    %1 = tpu.assume_multiple %0, 8 : i32
    %c0 = arith.constant 0 : index
    %2 = arith.index_cast %1 : i32 to index
    %c0_0 = arith.constant 0 : index
    %c0_1 = arith.constant 0 : index
    %3 = vector.load %arg2[%c0, %2, %c0_0, %c0_1] : memref<1x18x18x4xbf16, #tpu.memory_space<vmem>>, vector<1x10x18x4xbf16>
    %4 = vector.shape_cast %3 : vector<1x10x18x4xbf16> to vector<10x18x4xbf16>
    %c0_2 = arith.constant 0 : index
    %c0_3 = arith.constant 0 : index
    %5 = vector.load %arg3[%c0_2, %c0_3] : memref<36x128xbf16, #tpu.memory_space<vmem>>, vector<36x128xbf16>
    %6 = arith.extf %5 : vector<36x128xbf16> to vector<36x128xf32>
    %cst = arith.constant 0.000000e+00 : f32
    %7 = vector.broadcast %cst : f32 to vector<8x16x128xf32>
    %8 = vector.extract_strided_slice %4 {offsets = [0, 0, 0], sizes = [8, 16, 4], strides = [1, 1, 1]} : vector<10x18x4xbf16> to vector<8x16x4xbf16>
    %9 = arith.extf %8 : vector<8x16x4xbf16> to vector<8x16x4xf32>
    %10 = vector.extract_strided_slice %9 {offsets = [0, 0, 0], sizes = [8, 16, 1], strides = [1, 1, 1]} : vector<8x16x4xf32> to vector<8x16x1xf32>
    %11 = vector.extract_strided_slice %6 {offsets = [0, 0], sizes = [1, 128], strides = [1, 1]} : vector<36x128xf32> to vector<1x128xf32>
    %12 = vector.shape_cast %11 : vector<1x128xf32> to vector<1x1x128xf32>
    %13 = vector.broadcast %10 : vector<8x16x1xf32> to vector<8x16x128xf32>
    %14 = vector.broadcast %12 : vector<1x1x128xf32> to vector<8x16x128xf32>
    %15 = arith.mulf %13, %14 : vector<8x16x128xf32>
    %16 = arith.addf %7, %15 : vector<8x16x128xf32>
    %17 = vector.extract_strided_slice %9 {offsets = [0, 0, 1], sizes = [8, 16, 1], strides = [1, 1, 1]} : vector<8x16x4xf32> to vector<8x16x1xf32>
    %18 = vector.extract_strided_slice %6 {offsets = [1, 0], sizes = [1, 128], strides = [1, 1]} : vector<36x128xf32> to vector<1x128xf32>
    %19 = vector.shape_cast %18 : vector<1x128xf32> to vector<1x1x128xf32>
    %20 = vector.broadcast %17 : vector<8x16x1xf32> to vector<8x16x128xf32>
    %21 = vector.broadcast %19 : vector<1x1x128xf32> to vector<8x16x128xf32>
    %22 = arith.mulf %20, %21 : vector<8x16x128xf32>
    %23 = arith.addf %16, %22 : vector<8x16x128xf32>
    %24 = vector.extract_strided_slice %9 {offsets = [0, 0, 2], sizes = [8, 16, 1], strides = [1, 1, 1]} : vector<8x16x4xf32> to vector<8x16x1xf32>
    %25 = vector.extract_strided_slice %6 {offsets = [2, 0], sizes = [1, 128], strides = [1, 1]} : vector<36x128xf32> to vector<1x128xf32>
    %26 = vector.shape_cast %25 : vector<1x128xf32> to vector<1x1x128xf32>
    %27 = vector.broadcast %24 : vector<8x16x1xf32> to vector<8x16x128xf32>
    %28 = vector.broadcast %26 : vector<1x1x128xf32> to vector<8x16x128xf32>
    %29 = arith.mulf %27, %28 : vector<8x16x128xf32>
    %30 = arith.addf %23, %29 : vector<8x16x128xf32>
    %31 = vector.extract_strided_slice %9 {offsets = [0, 0, 3], sizes = [8, 16, 1], strides = [1, 1, 1]} : vector<8x16x4xf32> to vector<8x16x1xf32>
    %32 = vector.extract_strided_slice %6 {offsets = [3, 0], sizes = [1, 128], strides = [1, 1]} : vector<36x128xf32> to vector<1x128xf32>
    %33 = vector.shape_cast %32 : vector<1x128xf32> to vector<1x1x128xf32>
    %34 = vector.broadcast %31 : vector<8x16x1xf32> to vector<8x16x128xf32>
    %35 = vector.broadcast %33 : vector<1x1x128xf32> to vector<8x16x128xf32>
    %36 = arith.mulf %34, %35 : vector<8x16x128xf32>
    %37 = arith.addf %30, %36 : vector<8x16x128xf32>
    %38 = vector.extract_strided_slice %4 {offsets = [0, 1, 0], sizes = [8, 16, 4], strides = [1, 1, 1]} : vector<10x18x4xbf16> to vector<8x16x4xbf16>
    %39 = arith.extf %38 : vector<8x16x4xbf16> to vector<8x16x4xf32>
    %40 = vector.extract_strided_slice %39 {offsets = [0, 0, 0], sizes = [8, 16, 1], strides = [1, 1, 1]} : vector<8x16x4xf32> to vector<8x16x1xf32>
    %41 = vector.extract_strided_slice %6 {offsets = [4, 0], sizes = [1, 128], strides = [1, 1]} : vector<36x128xf32> to vector<1x128xf32>
    %42 = vector.shape_cast %41 : vector<1x128xf32> to vector<1x1x128xf32>
    %43 = vector.broadcast %40 : vector<8x16x1xf32> to vector<8x16x128xf32>
    %44 = vector.broadcast %42 : vector<1x1x128xf32> to vector<8x16x128xf32>
    %45 = arith.mulf %43, %44 : vector<8x16x128xf32>
    %46 = arith.addf %37, %45 : vector<8x16x128xf32>
    %47 = vector.extract_strided_slice %39 {offsets = [0, 0, 1], sizes = [8, 16, 1], strides = [1, 1, 1]} : vector<8x16x4xf32> to vector<8x16x1xf32>
    %48 = vector.extract_strided_slice %6 {offsets = [5, 0], sizes = [1, 128], strides = [1, 1]} : vector<36x128xf32> to vector<1x128xf32>
    %49 = vector.shape_cast %48 : vector<1x128xf32> to vector<1x1x128xf32>
    %50 = vector.broadcast %47 : vector<8x16x1xf32> to vector<8x16x128xf32>
    %51 = vector.broadcast %49 : vector<1x1x128xf32> to vector<8x16x128xf32>
    %52 = arith.mulf %50, %51 : vector<8x16x128xf32>
    %53 = arith.addf %46, %52 : vector<8x16x128xf32>
    %54 = vector.extract_strided_slice %39 {offsets = [0, 0, 2], sizes = [8, 16, 1], strides = [1, 1, 1]} : vector<8x16x4xf32> to vector<8x16x1xf32>
    %55 = vector.extract_strided_slice %6 {offsets = [6, 0], sizes = [1, 128], strides = [1, 1]} : vector<36x128xf32> to vector<1x128xf32>
    %56 = vector.shape_cast %55 : vector<1x128xf32> to vector<1x1x128xf32>
    %57 = vector.broadcast %54 : vector<8x16x1xf32> to vector<8x16x128xf32>
    %58 = vector.broadcast %56 : vector<1x1x128xf32> to vector<8x16x128xf32>
    %59 = arith.mulf %57, %58 : vector<8x16x128xf32>
    %60 = arith.addf %53, %59 : vector<8x16x128xf32>
    %61 = vector.extract_strided_slice %39 {offsets = [0, 0, 3], sizes = [8, 16, 1], strides = [1, 1, 1]} : vector<8x16x4xf32> to vector<8x16x1xf32>
    %62 = vector.extract_strided_slice %6 {offsets = [7, 0], sizes = [1, 128], strides = [1, 1]} : vector<36x128xf32> to vector<1x128xf32>
    %63 = vector.shape_cast %62 : vector<1x128xf32> to vector<1x1x128xf32>
    %64 = vector.broadcast %61 : vector<8x16x1xf32> to vector<8x16x128xf32>
    %65 = vector.broadcast %63 : vector<1x1x128xf32> to vector<8x16x128xf32>
    %66 = arith.mulf %64, %65 : vector<8x16x128xf32>
    %67 = arith.addf %60, %66 : vector<8x16x128xf32>
    %68 = vector.extract_strided_slice %4 {offsets = [0, 2, 0], sizes = [8, 16, 4], strides = [1, 1, 1]} : vector<10x18x4xbf16> to vector<8x16x4xbf16>
    %69 = arith.extf %68 : vector<8x16x4xbf16> to vector<8x16x4xf32>
    %70 = vector.extract_strided_slice %69 {offsets = [0, 0, 0], sizes = [8, 16, 1], strides = [1, 1, 1]} : vector<8x16x4xf32> to vector<8x16x1xf32>
    %71 = vector.extract_strided_slice %6 {offsets = [8, 0], sizes = [1, 128], strides = [1, 1]} : vector<36x128xf32> to vector<1x128xf32>
    %72 = vector.shape_cast %71 : vector<1x128xf32> to vector<1x1x128xf32>
    %73 = vector.broadcast %70 : vector<8x16x1xf32> to vector<8x16x128xf32>
    %74 = vector.broadcast %72 : vector<1x1x128xf32> to vector<8x16x128xf32>
    %75 = arith.mulf %73, %74 : vector<8x16x128xf32>
    %76 = arith.addf %67, %75 : vector<8x16x128xf32>
    %77 = vector.extract_strided_slice %69 {offsets = [0, 0, 1], sizes = [8, 16, 1], strides = [1, 1, 1]} : vector<8x16x4xf32> to vector<8x16x1xf32>
    %78 = vector.extract_strided_slice %6 {offsets = [9, 0], sizes = [1, 128], strides = [1, 1]} : vector<36x128xf32> to vector<1x128xf32>
    %79 = vector.shape_cast %78 : vector<1x128xf32> to vector<1x1x128xf32>
    %80 = vector.broadcast %77 : vector<8x16x1xf32> to vector<8x16x128xf32>
    %81 = vector.broadcast %79 : vector<1x1x128xf32> to vector<8x16x128xf32>
    %82 = arith.mulf %80, %81 : vector<8x16x128xf32>
    %83 = arith.addf %76, %82 : vector<8x16x128xf32>
    %84 = vector.extract_strided_slice %69 {offsets = [0, 0, 2], sizes = [8, 16, 1], strides = [1, 1, 1]} : vector<8x16x4xf32> to vector<8x16x1xf32>
    %85 = vector.extract_strided_slice %6 {offsets = [10, 0], sizes = [1, 128], strides = [1, 1]} : vector<36x128xf32> to vector<1x128xf32>
    %86 = vector.shape_cast %85 : vector<1x128xf32> to vector<1x1x128xf32>
    %87 = vector.broadcast %84 : vector<8x16x1xf32> to vector<8x16x128xf32>
    %88 = vector.broadcast %86 : vector<1x1x128xf32> to vector<8x16x128xf32>
    %89 = arith.mulf %87, %88 : vector<8x16x128xf32>
    %90 = arith.addf %83, %89 : vector<8x16x128xf32>
    %91 = vector.extract_strided_slice %69 {offsets = [0, 0, 3], sizes = [8, 16, 1], strides = [1, 1, 1]} : vector<8x16x4xf32> to vector<8x16x1xf32>
    %92 = vector.extract_strided_slice %6 {offsets = [11, 0], sizes = [1, 128], strides = [1, 1]} : vector<36x128xf32> to vector<1x128xf32>
    %93 = vector.shape_cast %92 : vector<1x128xf32> to vector<1x1x128xf32>
    %94 = vector.broadcast %91 : vector<8x16x1xf32> to vector<8x16x128xf32>
    %95 = vector.broadcast %93 : vector<1x1x128xf32> to vector<8x16x128xf32>
    %96 = arith.mulf %94, %95 : vector<8x16x128xf32>
    %97 = arith.addf %90, %96 : vector<8x16x128xf32>
    %98 = vector.extract_strided_slice %4 {offsets = [1, 0, 0], sizes = [8, 16, 4], strides = [1, 1, 1]} : vector<10x18x4xbf16> to vector<8x16x4xbf16>
    %99 = arith.extf %98 : vector<8x16x4xbf16> to vector<8x16x4xf32>
    %100 = vector.extract_strided_slice %99 {offsets = [0, 0, 0], sizes = [8, 16, 1], strides = [1, 1, 1]} : vector<8x16x4xf32> to vector<8x16x1xf32>
    %101 = vector.extract_strided_slice %6 {offsets = [12, 0], sizes = [1, 128], strides = [1, 1]} : vector<36x128xf32> to vector<1x128xf32>
    %102 = vector.shape_cast %101 : vector<1x128xf32> to vector<1x1x128xf32>
    %103 = vector.broadcast %100 : vector<8x16x1xf32> to vector<8x16x128xf32>
    %104 = vector.broadcast %102 : vector<1x1x128xf32> to vector<8x16x128xf32>
    %105 = arith.mulf %103, %104 : vector<8x16x128xf32>
    %106 = arith.addf %97, %105 : vector<8x16x128xf32>
    %107 = vector.extract_strided_slice %99 {offsets = [0, 0, 1], sizes = [8, 16, 1], strides = [1, 1, 1]} : vector<8x16x4xf32> to vector<8x16x1xf32>
    %108 = vector.extract_strided_slice %6 {offsets = [13, 0], sizes = [1, 128], strides = [1, 1]} : vector<36x128xf32> to vector<1x128xf32>
    %109 = vector.shape_cast %108 : vector<1x128xf32> to vector<1x1x128xf32>
    %110 = vector.broadcast %107 : vector<8x16x1xf32> to vector<8x16x128xf32>
    %111 = vector.broadcast %109 : vector<1x1x128xf32> to vector<8x16x128xf32>
    %112 = arith.mulf %110, %111 : vector<8x16x128xf32>
    %113 = arith.addf %106, %112 : vector<8x16x128xf32>
    %114 = vector.extract_strided_slice %99 {offsets = [0, 0, 2], sizes = [8, 16, 1], strides = [1, 1, 1]} : vector<8x16x4xf32> to vector<8x16x1xf32>
    %115 = vector.extract_strided_slice %6 {offsets = [14, 0], sizes = [1, 128], strides = [1, 1]} : vector<36x128xf32> to vector<1x128xf32>
    %116 = vector.shape_cast %115 : vector<1x128xf32> to vector<1x1x128xf32>
    %117 = vector.broadcast %114 : vector<8x16x1xf32> to vector<8x16x128xf32>
    %118 = vector.broadcast %116 : vector<1x1x128xf32> to vector<8x16x128xf32>
    %119 = arith.mulf %117, %118 : vector<8x16x128xf32>
    %120 = arith.addf %113, %119 : vector<8x16x128xf32>
    %121 = vector.extract_strided_slice %99 {offsets = [0, 0, 3], sizes = [8, 16, 1], strides = [1, 1, 1]} : vector<8x16x4xf32> to vector<8x16x1xf32>
    %122 = vector.extract_strided_slice %6 {offsets = [15, 0], sizes = [1, 128], strides = [1, 1]} : vector<36x128xf32> to vector<1x128xf32>
    %123 = vector.shape_cast %122 : vector<1x128xf32> to vector<1x1x128xf32>
    %124 = vector.broadcast %121 : vector<8x16x1xf32> to vector<8x16x128xf32>
    %125 = vector.broadcast %123 : vector<1x1x128xf32> to vector<8x16x128xf32>
    %126 = arith.mulf %124, %125 : vector<8x16x128xf32>
    %127 = arith.addf %120, %126 : vector<8x16x128xf32>
    %128 = vector.extract_strided_slice %4 {offsets = [1, 1, 0], sizes = [8, 16, 4], strides = [1, 1, 1]} : vector<10x18x4xbf16> to vector<8x16x4xbf16>
    %129 = arith.extf %128 : vector<8x16x4xbf16> to vector<8x16x4xf32>
    %130 = vector.extract_strided_slice %129 {offsets = [0, 0, 0], sizes = [8, 16, 1], strides = [1, 1, 1]} : vector<8x16x4xf32> to vector<8x16x1xf32>
    %131 = vector.extract_strided_slice %6 {offsets = [16, 0], sizes = [1, 128], strides = [1, 1]} : vector<36x128xf32> to vector<1x128xf32>
    %132 = vector.shape_cast %131 : vector<1x128xf32> to vector<1x1x128xf32>
    %133 = vector.broadcast %130 : vector<8x16x1xf32> to vector<8x16x128xf32>
    %134 = vector.broadcast %132 : vector<1x1x128xf32> to vector<8x16x128xf32>
    %135 = arith.mulf %133, %134 : vector<8x16x128xf32>
    %136 = arith.addf %127, %135 : vector<8x16x128xf32>
    %137 = vector.extract_strided_slice %129 {offsets = [0, 0, 1], sizes = [8, 16, 1], strides = [1, 1, 1]} : vector<8x16x4xf32> to vector<8x16x1xf32>
    %138 = vector.extract_strided_slice %6 {offsets = [17, 0], sizes = [1, 128], strides = [1, 1]} : vector<36x128xf32> to vector<1x128xf32>
    %139 = vector.shape_cast %138 : vector<1x128xf32> to vector<1x1x128xf32>
    %140 = vector.broadcast %137 : vector<8x16x1xf32> to vector<8x16x128xf32>
    %141 = vector.broadcast %139 : vector<1x1x128xf32> to vector<8x16x128xf32>
    %142 = arith.mulf %140, %141 : vector<8x16x128xf32>
    %143 = arith.addf %136, %142 : vector<8x16x128xf32>
    %144 = vector.extract_strided_slice %129 {offsets = [0, 0, 2], sizes = [8, 16, 1], strides = [1, 1, 1]} : vector<8x16x4xf32> to vector<8x16x1xf32>
    %145 = vector.extract_strided_slice %6 {offsets = [18, 0], sizes = [1, 128], strides = [1, 1]} : vector<36x128xf32> to vector<1x128xf32>
    %146 = vector.shape_cast %145 : vector<1x128xf32> to vector<1x1x128xf32>
    %147 = vector.broadcast %144 : vector<8x16x1xf32> to vector<8x16x128xf32>
    %148 = vector.broadcast %146 : vector<1x1x128xf32> to vector<8x16x128xf32>
    %149 = arith.mulf %147, %148 : vector<8x16x128xf32>
    %150 = arith.addf %143, %149 : vector<8x16x128xf32>
    %151 = vector.extract_strided_slice %129 {offsets = [0, 0, 3], sizes = [8, 16, 1], strides = [1, 1, 1]} : vector<8x16x4xf32> to vector<8x16x1xf32>
    %152 = vector.extract_strided_slice %6 {offsets = [19, 0], sizes = [1, 128], strides = [1, 1]} : vector<36x128xf32> to vector<1x128xf32>
    %153 = vector.shape_cast %152 : vector<1x128xf32> to vector<1x1x128xf32>
    %154 = vector.broadcast %151 : vector<8x16x1xf32> to vector<8x16x128xf32>
    %155 = vector.broadcast %153 : vector<1x1x128xf32> to vector<8x16x128xf32>
    %156 = arith.mulf %154, %155 : vector<8x16x128xf32>
    %157 = arith.addf %150, %156 : vector<8x16x128xf32>
    %158 = vector.extract_strided_slice %4 {offsets = [1, 2, 0], sizes = [8, 16, 4], strides = [1, 1, 1]} : vector<10x18x4xbf16> to vector<8x16x4xbf16>
    %159 = arith.extf %158 : vector<8x16x4xbf16> to vector<8x16x4xf32>
    %160 = vector.extract_strided_slice %159 {offsets = [0, 0, 0], sizes = [8, 16, 1], strides = [1, 1, 1]} : vector<8x16x4xf32> to vector<8x16x1xf32>
    %161 = vector.extract_strided_slice %6 {offsets = [20, 0], sizes = [1, 128], strides = [1, 1]} : vector<36x128xf32> to vector<1x128xf32>
    %162 = vector.shape_cast %161 : vector<1x128xf32> to vector<1x1x128xf32>
    %163 = vector.broadcast %160 : vector<8x16x1xf32> to vector<8x16x128xf32>
    %164 = vector.broadcast %162 : vector<1x1x128xf32> to vector<8x16x128xf32>
    %165 = arith.mulf %163, %164 : vector<8x16x128xf32>
    %166 = arith.addf %157, %165 : vector<8x16x128xf32>
    %167 = vector.extract_strided_slice %159 {offsets = [0, 0, 1], sizes = [8, 16, 1], strides = [1, 1, 1]} : vector<8x16x4xf32> to vector<8x16x1xf32>
    %168 = vector.extract_strided_slice %6 {offsets = [21, 0], sizes = [1, 128], strides = [1, 1]} : vector<36x128xf32> to vector<1x128xf32>
    %169 = vector.shape_cast %168 : vector<1x128xf32> to vector<1x1x128xf32>
    %170 = vector.broadcast %167 : vector<8x16x1xf32> to vector<8x16x128xf32>
    %171 = vector.broadcast %169 : vector<1x1x128xf32> to vector<8x16x128xf32>
    %172 = arith.mulf %170, %171 : vector<8x16x128xf32>
    %173 = arith.addf %166, %172 : vector<8x16x128xf32>
    %174 = vector.extract_strided_slice %159 {offsets = [0, 0, 2], sizes = [8, 16, 1], strides = [1, 1, 1]} : vector<8x16x4xf32> to vector<8x16x1xf32>
    %175 = vector.extract_strided_slice %6 {offsets = [22, 0], sizes = [1, 128], strides = [1, 1]} : vector<36x128xf32> to vector<1x128xf32>
    %176 = vector.shape_cast %175 : vector<1x128xf32> to vector<1x1x128xf32>
    %177 = vector.broadcast %174 : vector<8x16x1xf32> to vector<8x16x128xf32>
    %178 = vector.broadcast %176 : vector<1x1x128xf32> to vector<8x16x128xf32>
    %179 = arith.mulf %177, %178 : vector<8x16x128xf32>
    %180 = arith.addf %173, %179 : vector<8x16x128xf32>
    %181 = vector.extract_strided_slice %159 {offsets = [0, 0, 3], sizes = [8, 16, 1], strides = [1, 1, 1]} : vector<8x16x4xf32> to vector<8x16x1xf32>
    %182 = vector.extract_strided_slice %6 {offsets = [23, 0], sizes = [1, 128], strides = [1, 1]} : vector<36x128xf32> to vector<1x128xf32>
    %183 = vector.shape_cast %182 : vector<1x128xf32> to vector<1x1x128xf32>
    %184 = vector.broadcast %181 : vector<8x16x1xf32> to vector<8x16x128xf32>
    %185 = vector.broadcast %183 : vector<1x1x128xf32> to vector<8x16x128xf32>
    %186 = arith.mulf %184, %185 : vector<8x16x128xf32>
    %187 = arith.addf %180, %186 : vector<8x16x128xf32>
    %188 = vector.extract_strided_slice %4 {offsets = [2, 0, 0], sizes = [8, 16, 4], strides = [1, 1, 1]} : vector<10x18x4xbf16> to vector<8x16x4xbf16>
    %189 = arith.extf %188 : vector<8x16x4xbf16> to vector<8x16x4xf32>
    %190 = vector.extract_strided_slice %189 {offsets = [0, 0, 0], sizes = [8, 16, 1], strides = [1, 1, 1]} : vector<8x16x4xf32> to vector<8x16x1xf32>
    %191 = vector.extract_strided_slice %6 {offsets = [24, 0], sizes = [1, 128], strides = [1, 1]} : vector<36x128xf32> to vector<1x128xf32>
    %192 = vector.shape_cast %191 : vector<1x128xf32> to vector<1x1x128xf32>
    %193 = vector.broadcast %190 : vector<8x16x1xf32> to vector<8x16x128xf32>
    %194 = vector.broadcast %192 : vector<1x1x128xf32> to vector<8x16x128xf32>
    %195 = arith.mulf %193, %194 : vector<8x16x128xf32>
    %196 = arith.addf %187, %195 : vector<8x16x128xf32>
    %197 = vector.extract_strided_slice %189 {offsets = [0, 0, 1], sizes = [8, 16, 1], strides = [1, 1, 1]} : vector<8x16x4xf32> to vector<8x16x1xf32>
    %198 = vector.extract_strided_slice %6 {offsets = [25, 0], sizes = [1, 128], strides = [1, 1]} : vector<36x128xf32> to vector<1x128xf32>
    %199 = vector.shape_cast %198 : vector<1x128xf32> to vector<1x1x128xf32>
    %200 = vector.broadcast %197 : vector<8x16x1xf32> to vector<8x16x128xf32>
    %201 = vector.broadcast %199 : vector<1x1x128xf32> to vector<8x16x128xf32>
    %202 = arith.mulf %200, %201 : vector<8x16x128xf32>
    %203 = arith.addf %196, %202 : vector<8x16x128xf32>
    %204 = vector.extract_strided_slice %189 {offsets = [0, 0, 2], sizes = [8, 16, 1], strides = [1, 1, 1]} : vector<8x16x4xf32> to vector<8x16x1xf32>
    %205 = vector.extract_strided_slice %6 {offsets = [26, 0], sizes = [1, 128], strides = [1, 1]} : vector<36x128xf32> to vector<1x128xf32>
    %206 = vector.shape_cast %205 : vector<1x128xf32> to vector<1x1x128xf32>
    %207 = vector.broadcast %204 : vector<8x16x1xf32> to vector<8x16x128xf32>
    %208 = vector.broadcast %206 : vector<1x1x128xf32> to vector<8x16x128xf32>
    %209 = arith.mulf %207, %208 : vector<8x16x128xf32>
    %210 = arith.addf %203, %209 : vector<8x16x128xf32>
    %211 = vector.extract_strided_slice %189 {offsets = [0, 0, 3], sizes = [8, 16, 1], strides = [1, 1, 1]} : vector<8x16x4xf32> to vector<8x16x1xf32>
    %212 = vector.extract_strided_slice %6 {offsets = [27, 0], sizes = [1, 128], strides = [1, 1]} : vector<36x128xf32> to vector<1x128xf32>
    %213 = vector.shape_cast %212 : vector<1x128xf32> to vector<1x1x128xf32>
    %214 = vector.broadcast %211 : vector<8x16x1xf32> to vector<8x16x128xf32>
    %215 = vector.broadcast %213 : vector<1x1x128xf32> to vector<8x16x128xf32>
    %216 = arith.mulf %214, %215 : vector<8x16x128xf32>
    %217 = arith.addf %210, %216 : vector<8x16x128xf32>
    %218 = vector.extract_strided_slice %4 {offsets = [2, 1, 0], sizes = [8, 16, 4], strides = [1, 1, 1]} : vector<10x18x4xbf16> to vector<8x16x4xbf16>
    %219 = arith.extf %218 : vector<8x16x4xbf16> to vector<8x16x4xf32>
    %220 = vector.extract_strided_slice %219 {offsets = [0, 0, 0], sizes = [8, 16, 1], strides = [1, 1, 1]} : vector<8x16x4xf32> to vector<8x16x1xf32>
    %221 = vector.extract_strided_slice %6 {offsets = [28, 0], sizes = [1, 128], strides = [1, 1]} : vector<36x128xf32> to vector<1x128xf32>
    %222 = vector.shape_cast %221 : vector<1x128xf32> to vector<1x1x128xf32>
    %223 = vector.broadcast %220 : vector<8x16x1xf32> to vector<8x16x128xf32>
    %224 = vector.broadcast %222 : vector<1x1x128xf32> to vector<8x16x128xf32>
    %225 = arith.mulf %223, %224 : vector<8x16x128xf32>
    %226 = arith.addf %217, %225 : vector<8x16x128xf32>
    %227 = vector.extract_strided_slice %219 {offsets = [0, 0, 1], sizes = [8, 16, 1], strides = [1, 1, 1]} : vector<8x16x4xf32> to vector<8x16x1xf32>
    %228 = vector.extract_strided_slice %6 {offsets = [29, 0], sizes = [1, 128], strides = [1, 1]} : vector<36x128xf32> to vector<1x128xf32>
    %229 = vector.shape_cast %228 : vector<1x128xf32> to vector<1x1x128xf32>
    %230 = vector.broadcast %227 : vector<8x16x1xf32> to vector<8x16x128xf32>
    %231 = vector.broadcast %229 : vector<1x1x128xf32> to vector<8x16x128xf32>
    %232 = arith.mulf %230, %231 : vector<8x16x128xf32>
    %233 = arith.addf %226, %232 : vector<8x16x128xf32>
    %234 = vector.extract_strided_slice %219 {offsets = [0, 0, 2], sizes = [8, 16, 1], strides = [1, 1, 1]} : vector<8x16x4xf32> to vector<8x16x1xf32>
    %235 = vector.extract_strided_slice %6 {offsets = [30, 0], sizes = [1, 128], strides = [1, 1]} : vector<36x128xf32> to vector<1x128xf32>
    %236 = vector.shape_cast %235 : vector<1x128xf32> to vector<1x1x128xf32>
    %237 = vector.broadcast %234 : vector<8x16x1xf32> to vector<8x16x128xf32>
    %238 = vector.broadcast %236 : vector<1x1x128xf32> to vector<8x16x128xf32>
    %239 = arith.mulf %237, %238 : vector<8x16x128xf32>
    %240 = arith.addf %233, %239 : vector<8x16x128xf32>
    %241 = vector.extract_strided_slice %219 {offsets = [0, 0, 3], sizes = [8, 16, 1], strides = [1, 1, 1]} : vector<8x16x4xf32> to vector<8x16x1xf32>
    %242 = vector.extract_strided_slice %6 {offsets = [31, 0], sizes = [1, 128], strides = [1, 1]} : vector<36x128xf32> to vector<1x128xf32>
    %243 = vector.shape_cast %242 : vector<1x128xf32> to vector<1x1x128xf32>
    %244 = vector.broadcast %241 : vector<8x16x1xf32> to vector<8x16x128xf32>
    %245 = vector.broadcast %243 : vector<1x1x128xf32> to vector<8x16x128xf32>
    %246 = arith.mulf %244, %245 : vector<8x16x128xf32>
    %247 = arith.addf %240, %246 : vector<8x16x128xf32>
    %248 = vector.extract_strided_slice %4 {offsets = [2, 2, 0], sizes = [8, 16, 4], strides = [1, 1, 1]} : vector<10x18x4xbf16> to vector<8x16x4xbf16>
    %249 = arith.extf %248 : vector<8x16x4xbf16> to vector<8x16x4xf32>
    %250 = vector.extract_strided_slice %249 {offsets = [0, 0, 0], sizes = [8, 16, 1], strides = [1, 1, 1]} : vector<8x16x4xf32> to vector<8x16x1xf32>
    %251 = vector.extract_strided_slice %6 {offsets = [32, 0], sizes = [1, 128], strides = [1, 1]} : vector<36x128xf32> to vector<1x128xf32>
    %252 = vector.shape_cast %251 : vector<1x128xf32> to vector<1x1x128xf32>
    %253 = vector.broadcast %250 : vector<8x16x1xf32> to vector<8x16x128xf32>
    %254 = vector.broadcast %252 : vector<1x1x128xf32> to vector<8x16x128xf32>
    %255 = arith.mulf %253, %254 : vector<8x16x128xf32>
    %256 = arith.addf %247, %255 : vector<8x16x128xf32>
    %257 = vector.extract_strided_slice %249 {offsets = [0, 0, 1], sizes = [8, 16, 1], strides = [1, 1, 1]} : vector<8x16x4xf32> to vector<8x16x1xf32>
    %258 = vector.extract_strided_slice %6 {offsets = [33, 0], sizes = [1, 128], strides = [1, 1]} : vector<36x128xf32> to vector<1x128xf32>
    %259 = vector.shape_cast %258 : vector<1x128xf32> to vector<1x1x128xf32>
    %260 = vector.broadcast %257 : vector<8x16x1xf32> to vector<8x16x128xf32>
    %261 = vector.broadcast %259 : vector<1x1x128xf32> to vector<8x16x128xf32>
    %262 = arith.mulf %260, %261 : vector<8x16x128xf32>
    %263 = arith.addf %256, %262 : vector<8x16x128xf32>
    %264 = vector.extract_strided_slice %249 {offsets = [0, 0, 2], sizes = [8, 16, 1], strides = [1, 1, 1]} : vector<8x16x4xf32> to vector<8x16x1xf32>
    %265 = vector.extract_strided_slice %6 {offsets = [34, 0], sizes = [1, 128], strides = [1, 1]} : vector<36x128xf32> to vector<1x128xf32>
    %266 = vector.shape_cast %265 : vector<1x128xf32> to vector<1x1x128xf32>
    %267 = vector.broadcast %264 : vector<8x16x1xf32> to vector<8x16x128xf32>
    %268 = vector.broadcast %266 : vector<1x1x128xf32> to vector<8x16x128xf32>
    %269 = arith.mulf %267, %268 : vector<8x16x128xf32>
    %270 = arith.addf %263, %269 : vector<8x16x128xf32>
    %271 = vector.extract_strided_slice %249 {offsets = [0, 0, 3], sizes = [8, 16, 1], strides = [1, 1, 1]} : vector<8x16x4xf32> to vector<8x16x1xf32>
    %272 = vector.extract_strided_slice %6 {offsets = [35, 0], sizes = [1, 128], strides = [1, 1]} : vector<36x128xf32> to vector<1x128xf32>
    %273 = vector.shape_cast %272 : vector<1x128xf32> to vector<1x1x128xf32>
    %274 = vector.broadcast %271 : vector<8x16x1xf32> to vector<8x16x128xf32>
    %275 = vector.broadcast %273 : vector<1x1x128xf32> to vector<8x16x128xf32>
    %276 = arith.mulf %274, %275 : vector<8x16x128xf32>
    %277 = arith.addf %270, %276 : vector<8x16x128xf32>
    %c0_4 = arith.constant 0 : index
    %c0_5 = arith.constant 0 : index
    %278 = vector.load %arg4[%c0_4, %c0_5] : memref<1x128xf32, #tpu.memory_space<vmem>>, vector<1x128xf32>
    %279 = vector.shape_cast %278 : vector<1x128xf32> to vector<1x1x128xf32>
    %280 = vector.broadcast %279 : vector<1x1x128xf32> to vector<8x16x128xf32>
    %281 = arith.addf %277, %280 : vector<8x16x128xf32>
    %cst_6 = arith.constant 0.000000e+00 : f32
    %282 = vector.broadcast %cst_6 : f32 to vector<8x16x128xf32>
    %283 = arith.maximumf %281, %282 : vector<8x16x128xf32>
    %c0_7 = arith.constant 0 : index
    %c0_8 = arith.constant 0 : index
    %c0_9 = arith.constant 0 : index
    %c0_10 = arith.constant 0 : index
    %284 = vector.load %arg5[%c0_7, %c0_8, %c0_9, %c0_10] : memref<1x8x16x128xf32, #tpu.memory_space<vmem>>, vector<1x8x16x128xf32>
    %285 = vector.shape_cast %284 : vector<1x8x16x128xf32> to vector<8x16x128xf32>
    %286 = vector.shape_cast %283 : vector<8x16x128xf32> to vector<1x8x16x128xf32>
    tpu.vector_store %arg5[%c0_7, %c0_8, %c0_9, %c0_10], %286 {strides = array<i32>} : memref<1x8x16x128xf32, #tpu.memory_space<vmem>>, vector<1x8x16x128xf32>,
    return
  }
  func.func @transform_0(%arg0: i32, %arg1: i32) -> (i32, i32, i32, i32) {
    %c0_i32 = arith.constant 0 : i32
    %c0_i32_0 = arith.constant 0 : i32
    %c0_i32_1 = arith.constant 0 : i32
    %c0_i32_2 = arith.constant 0 : i32
    return %arg0, %c0_i32, %c0_i32_0, %c0_i32_1 : i32, i32, i32, i32
  }
  func.func @transform_1(%arg0: i32, %arg1: i32) -> (i32, i32) {
    %c0_i32 = arith.constant 0 : i32
    %c0_i32_0 = arith.constant 0 : i32
    %c0_i32_1 = arith.constant 0 : i32
    return %c0_i32, %c0_i32_0 : i32, i32
  }
  func.func @transform_2(%arg0: i32, %arg1: i32) -> (i32, i32) {
    %c0_i32 = arith.constant 0 : i32
    %c0_i32_0 = arith.constant 0 : i32
    %c0_i32_1 = arith.constant 0 : i32
    return %c0_i32, %c0_i32_0 : i32, i32
  }
  func.func @transform_3(%arg0: i32, %arg1: i32) -> (i32, i32, i32, i32) {
    %c0_i32 = arith.constant 0 : i32
    %c0_i32_0 = arith.constant 0 : i32
    %c0_i32_1 = arith.constant 0 : i32
    return %arg0, %arg1, %c0_i32, %c0_i32_0 : i32, i32, i32, i32
  }
}

</mosaic_0001>

<bundles_post_ra>
// kernel: basic_conv.1
= control target key start
LH: loop header
LB: loop body
LE: loop exit
PB: predicated region body
PF: predicated region fallthrough
CT: control target
= control target key end

     0   :  { %s4816_s12 = smov 0   ;;  %s4818_s13 = smov 0   ;;  %s8922_s0 = inlined_call_operand.vmem [shape: bf16[2,18,18,4], index: 0, kind: input, shape index: {}]   ;;  %s8923_s1 = inlined_call_operand.vmem [shape: bf16[36,128], index: 1, kind: input, shape index: {}]   ;;  %s8924_s2 = inlined_call_operand.vmem [shape: f32[1,128], index: 2, kind: input, shape index: {}]   ;;  %s8925_s3 = inlined_call_operand.vmem [shape: f32[2,16,16,128], index: 3, kind: output, shape index: {}]  }
   0x1   :  { %s4820_s14 = smov 0   ;;  %s4822_s15 = smov 0  }
   0x2   :  { %s4824_s16 = smov 0  }
   0x3 LB: > { %s22_s17 = sadd.s32 1, %s4782_s14  ;;  %s25_s18 = sadd.s32 1, %s4786_s15  ;;  %s4790_s16 = sphi %s4824_s16, %s13_s16   ;;  %s4786_s15 = sphi %s4822_s15, %s10243_s15   ;;  %s4782_s14 = sphi %s4820_s14, %s10242_s14   ;;  %s4778_s13 = sphi %s4818_s13, %s10241_s13   ;;  %s4774_s12 = sphi %s4816_s12, %s10240_s12  }
   0x4   : > { %p23_p0 = scmp.ge.s32.totalorder %s22_s17, 2  ;;  %p4341_p1 = scmp.ge.s32.totalorder %s4790_s16, 1 }
   0x5   : > { %p151_p2 = scmp.lt.s32.totalorder %s4790_s16, 5 }
   0x6   : > { %s10245_s17 = smov (%p23_p0, %s22_s17), 0  ;;  %s10247_s18 = smov (!%p23_p0, %s25_s18), %s4786_s15 }
   0x7   : > { %p152_p3 = pnand %p4341_p1, %p151_p2  ;;  %p27_p4 = scmp.ge.s32.totalorder %s10247_s18, 2 }
   0x9   : > { %s10249_s18 = smov (%p27_p4, %s10247_s18), 0  ;;  %155 = sbr.rel (%p152_p3) target bundleno = 799 (0x31f), region = 32 }
  0x10   : > { %p180_p5 = scmp.lt.s32.totalorder %s4778_s13, 1  ;;  %v4792_v0 = vmov 0   ;;  %s4353_s19 = smul.u32 96, %s4774_s12  ;;  %v4793_v38 = vmov 1   ;;  %v8927_v45 = vmov 2   ;;  %v8926_v50 = vmov 3  }
  0x11   : > { %4443 = vset.pattern.permute.xlu1 %v4792_v0  ;;  %4432 = vset.pattern.permute.xlu0 %v4792_v0  ;;  %vm1365_vm0 = vcmask 1045504   ;;  %vm772_vm1 = vcmask 1046528   ;;  %s4343_s4 = sshll.u32 %s4774_s12, 3 }
  0x12   : > { %s10251_s13 = smov (!%p180_p5, %s4778_s13), 1  ;;  %p8012_p6 = scmp.lt.s32.totalorder %s4343_s4, 15 }
  0x13   : > { %s4387_s20 = smul.u32 216, %s10251_s13  ;;  %s4345_s7 = sshll.u32 %s10251_s13, 5 }
  0x14   : > { %s10253_s4 = smov (!%p8012_p6, %s4343_s4), 15 }
  0x15   : > { %s184_s23 = scalar_lea.vmem %s8922_s0, %s4387_s20  ;;  %s4344_s6 = sshll.u32 %s10253_s4, 1 }
  0x16   : > { %s4857_s24 = scalar_lea.vmem %s184_s23, %s4353_s19  ;;  %s8066_s8 = sadd.s32 %s4345_s7, %s4344_s6 }
  0x17   : > { %v4382_v1 = vld [vmem:[%s4857_s24 + $0x18] sm:$0xff]   ;;  %v4355_v2 = vld [vmem:[%s4857_s24] sm:$0xff]   ;;  %v203_v8 = vld [vmem:[%s4857_s24 + $0xc] sm:$0xff]   ;;  %s4346_s11 = sshll.u32 %s8066_s8, 3 }
  0x18   : > { %v209_v3 = vld [vmem:[%s4857_s24 + $0x24] sm:$0xff]   ;;  %v4360_v4 = vunpack.c.l.bf16 %v4382_v1  ;;  %v4361_v5 = vunpack.c.h.bf16 %v4382_v1  ;;  %v4356_v6 = vunpack.c.l.bf16 %v4355_v2  ;;  %v4357_v7 = vunpack.c.h.bf16 %v4355_v2  ;;  %v215_v9 = vld [vmem:[%s4857_s24 + $0x3c] sm:$0xff]   ;;  %v4383_v14 = vld [vmem:[%s4857_s24 + $0x30] sm:$0xff]   ;;  %s8118_s19 = scalar_lea.vmem %s8925_s3, %s4346_s11 }
  0x19   : > { %v246_v10 = vunpack.c.l.bf16 %v209_v3  ;;  %v247_v11 = vunpack.c.h.bf16 %v209_v3  ;;  %v242_v12 = vunpack.c.l.bf16 %v203_v8  ;;  %v243_v13 = vunpack.c.h.bf16 %v203_v8  ;;  %v221_v23 = vld [vmem:[%s4857_s24 + $0x54] sm:$0xff]   ;;  %v4384_v24 = vld [vmem:[%s4857_s24 + $0x48] sm:$0xff]   ;;  %v208_v31 = vld [vmem:[%s4857_s24 + $0x20] sm:$0x1] }
  0x1a   : > { %v4865_v15 = vpack.i.bf16 %v4361_v5, %v4360_v4  ;;  %v4867_v16 = vpack.i.bf16 %v4357_v7, %v4356_v6  ;;  %v250_v17 = vunpack.c.l.bf16 %v215_v9  ;;  %v251_v18 = vunpack.c.h.bf16 %v215_v9  ;;  %v211_v32 = vld [vmem:[%s4857_s24 + $0x2c] sm:$0x1]  ;;  %v202_v39 = vld [vmem:[%s4857_s24 + $0x8] sm:$0x1]  ;;  %v205_v40 = vld [vmem:[%s4857_s24 + $0x14] sm:$0x1] }
  0x1b   : > { %v4871_v19 = vpack.i.bf16 %v247_v11, %v246_v10  ;;  %v4438_v20 = vpack.i.bf16 %v243_v13, %v242_v12  ;;  %v4364_v21 = vunpack.c.l.bf16 %v4383_v14  ;;  %v4365_v22 = vunpack.c.h.bf16 %v4383_v14  ;;  %v220_v43 = vld [vmem:[%s4857_s24 + $0x50] sm:$0x1]  ;;  %v223_v44 = vld [vmem:[%s4857_s24 + $0x5c] sm:$0x1]  ;;  %v214_v51 = vld [vmem:[%s4857_s24 + $0x38] sm:$0x1] }
  0x1c   : > { %4445 = vperm.xlu1 %4443, %v4865_v15   ;;  %4434 = vperm.xlu0 %4432, %v4867_v16   ;;  %v4875_v25 = vpack.i.bf16 %v251_v18, %v250_v17  ;;  %v254_v26 = vunpack.c.l.bf16 %v221_v23  ;;  %v255_v28 = vunpack.c.h.bf16 %v221_v23  ;;  %v4368_v29 = vunpack.c.l.bf16 %v4384_v24  ;;  %v217_v52 = vld [vmem:[%s4857_s24 + $0x44] sm:$0x1]  ;;  %v229_v60 = vld [vmem:[%s4857_s24 + $0x74] sm:$0x1]  ;;  %v226_v61 = vld [vmem:[%s4857_s24 + $0x68] sm:$0x1] }
  0x1d   : > { %v4454_v27 = vpack.i.bf16 %v4365_v22, %v4364_v21  ;;  %v4369_v30 = vunpack.c.h.bf16 %v4384_v24  ;;  %v674_v35 = vunpack.c.l.bf16 %v208_v31  ;;  %v675_v36 = vunpack.c.l.bf16 %v211_v32  ;;  %v4385_v56 = vld [vmem:[%s4857_s24 + $0x60] sm:$0xff]   ;;  %v227_v62 = vld [vmem:[%s4857_s24 + $0x6c] sm:$0xff]  }
  0x1e   : > { %v4469_v33 = vpack.i.bf16 %v255_v28, %v254_v26  ;;  %v672_v41 = vunpack.c.l.bf16 %v202_v39  ;;  %v673_v42 = vunpack.c.l.bf16 %v205_v40  ;;  %v678_v47 = vunpack.c.l.bf16 %v220_v43  ;;  %v4375_v6 = vld [vmem:[%s8923_s1] sm:$0xff]   ;;  %v4386_v7 = vld [vmem:[%s8923_s1 + $0x8] sm:$0xff]   ;;  %v234_v9 = vld [vmem:[%s8923_s1 + $0x10] sm:$0x3] }
  0x1f   : > { %v4464_v34 = vpack.i.bf16 %v4369_v30, %v4368_v29  ;;  %v4881_v37 = vpack.i.bf16 %v675_v36, %v674_v35  ;;  %v679_v48 = vunpack.c.l.bf16 %v223_v44  ;;  %v676_v53 = vunpack.c.l.bf16 %v214_v51 }
  0x20   : > { %4450 = vperm.xlu1 %4443, %v4871_v19   ;;  %4439 = vperm.xlu0 %4432, %v4438_v20   ;;  %v4584_v46 = vpack.i.bf16 %v673_v42, %v672_v41  ;;  %v677_v54 = vunpack.c.l.bf16 %v217_v52  ;;  %v4372_v57 = vunpack.c.l.bf16 %v4385_v56  ;;  %v4373_v58 = vunpack.c.h.bf16 %v4385_v56 }
  0x21   : > { %v4600_v49 = vpack.i.bf16 %v679_v48, %v678_v47  ;;  %v3001_v63 = vunpack.c.h.bf16 %v227_v62  ;;  %v3180_v1 = vunpack.c.l.bf16 %v229_v60  ;;  %v1990_v2 = vunpack.c.l.bf16 %v226_v61 }
  0x22   : > { %v4574_v55 = vpack.i.bf16 %v677_v54, %v676_v53  ;;  %v4691_v59 = vpack.i.bf16 %v4373_v58, %v4372_v57  ;;  %v336_v4 = vlaneseq  ;;  %v3000_v8 = vunpack.c.l.bf16 %v227_v62 }
  0x23   : > { %v4919_v3 = vpack.i.bf16 %v3180_v1, %v3001_v63  ;;  %v4376_v10 = vunpack.c.l.bf16 %v4375_v6  ;;  %v4377_v13 = vunpack.c.h.bf16 %v4375_v6  ;;  %v4380_v14 = vunpack.c.l.bf16 %v4386_v7 }
  0x24   : > { %4460 = vperm.xlu1 %4443, %v4875_v25   ;;  %4455 = vperm.xlu0 %4432, %v4454_v27   ;;  %v337_v5 = vshrl.u32 %v336_v4, 7  ;;  %v239_v17 = vunpack.c.l.bf16 %v234_v9  ;;  %v4703_v18 = vpack.i.bf16 %v3000_v8, %v1990_v2  ;;  %v4977_v44 = vpack.i.bf16 %v3001_v63, %v3000_v8 }
  0x26   : > { %v338_v11 = vsub.s32 0, %v337_v5  ;;  %v722_v12 = vsub.s32 4, %v337_v5  ;;  %v438_v22 = vsub.s32 1, %v337_v5  ;;  %v538_v29 = vsub.s32 2, %v337_v5 }
  0x27   : > { %v638_v41 = vsub.s32 3, %v337_v5  ;;  %v1191_v42 = vsub.s32 7, %v337_v5 }
  0x28   : > { %4470 = vperm.xlu1 %4443, %v4469_v33   ;;  %4465 = vperm.xlu0 %4432, %v4464_v34   ;;  %v4943_v21 = vrot.slane %v4376_v10, %v722_v12  ;;  %v4952_v26 = vrot.slane %v4380_v14, %v338_v11  ;;  %v4957_v28 = vrot.slane %v4380_v14, %v722_v12 }
  0x29   : > { %v4967_v35 = vrot.slane %v4377_v13, %v438_v22  ;;  %v4969_v36 = vrot.slane %v4380_v14, %v438_v22  ;;  %v4973_v39 = vrot.slane %v239_v17, %v438_v22  ;;  %v4982_v47 = vrot.slane %v4376_v10, %v538_v29 }
  0x2a   : > { %9194 = vst [vmem:[#allocation3_spill] sm:$0xff] %v4943_v21  ;;  %9198 = vst [vmem:[#allocation7_spill] sm:$0xff] %v4952_v26  ;;  %v4987_v51 = vrot.slane %v4380_v14, %v538_v29  ;;  %v4989_v52 = vrot.slane %v239_v17, %v538_v29  ;;  %v5000_v58 = vrot.slane %v4377_v13, %v722_v12 }
  0x2b   : > { %9200 = vst [vmem:[#allocation9_spill] sm:$0xff] %v4957_v28  ;;  %9204 = vst [vmem:[#allocation13_spill] sm:$0xff] %v4967_v35  ;;  %v5007_v60 = vrot.slane %v4376_v10, %v638_v41  ;;  %v5009_v61 = vrot.slane %v4376_v10, %v1191_v42  ;;  %v5014_v63 = vrot.slane %v4377_v13, %v638_v41 }
  0x2c   : > { %4474 = vset.pattern.permute.xlu1 %v4793_v38  ;;  %4549 = vperm.xlu0 %4432, %v4881_v37   ;;  %9205 = vst [vmem:[#allocation14_spill] sm:$0xff] %v4969_v36  ;;  %9207 = vst [vmem:[#allocation16_spill] sm:$0xff] %v4973_v39  ;;  %v5024_v6 = vrot.slane %v4380_v14, %v1191_v42 }
  0x2d   : > { %4476 = vperm.xlu1 %4474, %v4438_v20   ;;  %9210 = vst [vmem:[#allocation19_spill] sm:$0xff] %v4982_v47  ;;  %9212 = vst [vmem:[#allocation21_spill] sm:$0xff] %v4987_v51 }
  0x2e   : > { %9213 = vst [vmem:[#allocation22_spill] sm:$0xff] %v4989_v52  ;;  %9217 = vst [vmem:[#allocation26_spill] sm:$0xff] %v5000_v58 }
  0x2f   : > { %9220 = vst [vmem:[#allocation29_spill] sm:$0xff] %v5007_v60  ;;  %9221 = vst [vmem:[#allocation30_spill] sm:$0xff] %v5009_v61 }
  0x30   : > { %4553 = vset.pattern.permute.xlu0 %v4793_v38  ;;  %9223 = vst [vmem:[#allocation32_spill] sm:$0xff] %v5014_v63  ;;  %9227 = vst [vmem:[#allocation36_spill] sm:$0xff] %v5024_v6 }
  0x31   : > { %4481 = vperm.xlu1 %4474, %v4865_v15   ;;  %4555 = vperm.xlu0 %4553, %v4867_v16  }
  0x35   : > { %4486 = vperm.xlu1 %4474, %v4454_v27   ;;  %4560 = vperm.xlu0 %4553, %v4871_v19  }
  0x39   : > { %4491 = vperm.xlu1 %4474, %v4464_v34   ;;  %4565 = vperm.xlu0 %4553, %v4875_v25  }
  0x3d   : > { %4495 = vset.pattern.permute.xlu1 %v8927_v45  ;;  %4570 = vperm.xlu0 %4553, %v4469_v33  }
  0x3e   : > { %4497 = vperm.xlu1 %4495, %v4867_v16  }
  0x41   : > { %4585 = vperm.xlu0 %4553, %v4584_v46  }
  0x42   : > { %4502 = vperm.xlu1 %4495, %v4865_v15  }
  0x45   : > { %4601 = vperm.xlu0 %4553, %v4600_v49  }
  0x46   : > { %4507 = vperm.xlu1 %4495, %v4871_v19  }
  0x49   : > { %4605 = vset.pattern.permute.xlu0 %v8927_v45 }
  0x4a   : > { %4512 = vperm.xlu1 %4495, %v4875_v25   ;;  %4607 = vperm.xlu0 %4605, %v4438_v20  }
  0x4e   : > { %4517 = vperm.xlu1 %4495, %v4469_v33   ;;  %4612 = vperm.xlu0 %4605, %v4454_v27  }
  0x52   : > { %4521 = vset.pattern.permute.xlu1 %v8926_v50  ;;  %4617 = vperm.xlu0 %4605, %v4464_v34  }
  0x53   : > { %4523 = vperm.xlu1 %4521, %v4438_v20   ;;  %v4941_v20 = vrot.slane %v4376_v10, %v338_v11 }
  0x55   : > { %9193 = vst [vmem:[#allocation2_spill] sm:$0xff] %v4941_v20 }
  0x56   : > { %4628 = vperm.xlu0 %4605, %v4881_v37  }
  0x57   : > { %4528 = vperm.xlu1 %4521, %v4865_v15   ;;  %v879_v15 = vsub.s32 5, %v337_v5 }
  0x59   : > { %v4945_v23 = vrot.slane %v4376_v10, %v879_v15  ;;  %v4975_v40 = vrot.slane %v4377_v13, %v879_v15 }
  0x5a   : > { %4632 = vset.pattern.permute.xlu0 %v8926_v50 }
  0x5b   : > { %4533 = vperm.xlu1 %4521, %v4454_v27   ;;  %4634 = vperm.xlu0 %4632, %v4867_v16   ;;  %v4937_v16 = vsub.s32 6, %v337_v5  ;;  %9195 = vst [vmem:[#allocation4_spill] sm:$0xff] %v4945_v23  ;;  %v4955_v27 = vrot.slane %v239_v17, %v338_v11  ;;  %9208 = vst [vmem:[#allocation17_spill] sm:$0xff] %v4975_v40 }
  0x5d   : > { %v4948_v24 = vrot.slane %v4376_v10, %v4937_v16  ;;  %9199 = vst [vmem:[#allocation8_spill] sm:$0xff] %v4955_v27  ;;  %v4995_v56 = vrot.slane %v4377_v13, %v4937_v16 }
  0x5f   : > { %4538 = vperm.xlu1 %4521, %v4464_v34   ;;  %4639 = vperm.xlu0 %4632, %v4871_v19   ;;  %v4939_v19 = vunpack.c.h.bf16 %v4386_v7  ;;  %9196 = vst [vmem:[#allocation5_spill] sm:$0xff] %v4948_v24  ;;  %v4965_v34 = vrot.slane %v4376_v10, %v438_v22  ;;  %9215 = vst [vmem:[#allocation24_spill] sm:$0xff] %v4995_v56 }
  0x61   : > { %v4960_v30 = vrot.slane %v4939_v19, %v338_v11  ;;  %v4963_v31 = vrot.slane %v4939_v19, %v722_v12  ;;  %9203 = vst [vmem:[#allocation12_spill] sm:$0xff] %v4965_v34  ;;  %v4998_v57 = vrot.slane %v4939_v19, %v538_v29  ;;  %v5027_v7 = vrot.slane %v4939_v19, %v1191_v42 }
  0x63   : > { %4542 = vset.pattern.permute.xlu1 %v4792_v0  ;;  %4644 = vperm.xlu0 %4632, %v4875_v25   ;;  %v4950_v25 = vrot.slane %v4377_v13, %v338_v11  ;;  %9201 = vst [vmem:[#allocation10_spill] sm:$0xff] %v4960_v30  ;;  %9202 = vst [vmem:[#allocation11_spill] sm:$0xff] %v4963_v31  ;;  %v5037_v11 = vrot.slane %v239_v17, %v638_v41 }
  0x64   : > { %4544 = vperm.xlu1 %4542, %v4584_v46   ;;  %9216 = vst [vmem:[#allocation25_spill] sm:$0xff] %v4998_v57  ;;  %9228 = vst [vmem:[#allocation37_spill] sm:$0xff] %v5027_v7 }
  0x65   : > { %9197 = vst [vmem:[#allocation6_spill] sm:$0xff] %v4950_v25  ;;  %9232 = vst [vmem:[#allocation41_spill] sm:$0xff] %v5037_v11 }
  0x67   : > { %4649 = vperm.xlu0 %4632, %v4469_v33  }
  0x68   : > { %4575 = vperm.xlu1 %4542, %v4574_v55  }
  0x6b   : > { %4664 = vperm.xlu0 %4632, %v4584_v46  }
  0x6c   : > { %4580 = vperm.xlu1 %4542, %v4600_v49  }
  0x6f   : > { %4680 = vperm.xlu0 %4632, %v4600_v49  }
  0x70   : > { %4589 = vset.pattern.permute.xlu1 %v4793_v38 }
  0x71   : > { %4591 = vperm.xlu1 %4589, %v4881_v37  }
  0x73   : > { %4690 = vset.pattern.permute.xlu0 %v4793_v38 }
  0x74   : > { %4692 = vperm.xlu0 %4690, %v4691_v59  }
  0x75   : > { %4596 = vperm.xlu1 %4589, %v4574_v55  }
  0x78   : > { %4708 = vset.pattern.permute.xlu0 %v8926_v50 }
  0x79   : > { %4621 = vset.pattern.permute.xlu1 %v8927_v45  ;;  %4710 = vperm.xlu0 %4708, %v4691_v59  }
  0x7a   : > { %4623 = vperm.xlu1 %4621, %v4584_v46   ;;  %v4980_v46 = vrot.slane %v4939_v19, %v438_v22 }
  0x7c   : > { %9209 = vst [vmem:[#allocation18_spill] sm:$0xff] %v4980_v46 }
  0x7d   : > { %2377 = vperm.xlu0 %4708, %v1990_v2   ;;  %v5018_v2 = vrot.slane %v4380_v14, %v638_v41 }
  0x7e   : > { %4654 = vperm.xlu1 %4621, %v4574_v55  }
  0x7f   : > { %9225 = vst [vmem:[#allocation34_spill] sm:$0xff] %v5018_v2 }
  0x81   : > { %4732 = vset.pattern.permute.xlu0 %v4793_v38 }
  0x82   : > { %4659 = vperm.xlu1 %4621, %v4600_v49   ;;  %4734 = vperm.xlu0 %4732, %v4919_v3   ;;  %v4985_v49 = vrot.slane %v4377_v13, %v538_v29 }
  0x84   : > { %9211 = vst [vmem:[#allocation20_spill] sm:$0xff] %v4985_v49 }
  0x86   : > { %4668 = vset.pattern.permute.xlu1 %v8926_v50  ;;  %4750 = vset.pattern.permute.xlu0 %v8926_v50 }
  0x87   : > { %4670 = vperm.xlu1 %4668, %v4881_v37   ;;  %3567 = vperm.xlu0 %4750, %v3180_v1   ;;  %v4971_v37 = vrot.slane %v4380_v14, %v879_v15  ;;  %v5016_v1 = vrot.slane %v4377_v13, %v1191_v42 }
  0x89   : > { %9206 = vst [vmem:[#allocation15_spill] sm:$0xff] %v4971_v37  ;;  %9224 = vst [vmem:[#allocation33_spill] sm:$0xff] %v5016_v1 }
  0x8b   : > { %4675 = vperm.xlu1 %4668, %v4574_v55   ;;  %v4992_v55 = vrot.slane %v4939_v19, %v879_v15  ;;  %v5051_v15 = vrot.slane %v4939_v19, %v638_v41 }
  0x8d   : > { %9214 = vst [vmem:[#allocation23_spill] sm:$0xff] %v4992_v55  ;;  %9235 = vst [vmem:[#allocation44_spill] sm:$0xff] %v5051_v15 }
  0x8f   : > { %4684 = vset.pattern.permute.xlu1 %v4792_v0 }
  0x90   : > { %4686 = vperm.xlu1 %4684, %v4691_v59  }
  0x94   : > { %4696 = vset.pattern.permute.xlu1 %v8927_v45 }
  0x95   : > { %4698 = vperm.xlu1 %4696, %v4691_v59   ;;  %v5005_v59 = vrot.slane %v4380_v14, %v4937_v16  ;;  %v5048_v14 = vrot.slane %v4939_v19, %v4937_v16 }
  0x97   : > { %9219 = vst [vmem:[#allocation28_spill] sm:$0xff] %v5005_v59  ;;  %9234 = vst [vmem:[#allocation43_spill] sm:$0xff] %v5048_v14 }
  0x99   : > { %4702 = vset.pattern.permute.xlu1 %v4792_v0 }
  0x9a   : > { %4704 = vperm.xlu1 %4702, %v4703_v18  }
  0x9b   : > { %v4446_v32 = vpop.permute.xlu1 %4445  ;;  %v4435_v33 = vpop.permute.xlu0 %4434 }
  0x9c   : > { %v4437_v43 = vunpack.i.h.bf16 %v4435_v33  ;;  %v4436_v48 = vunpack.i.l.bf16 %v4435_v33  ;;  %v5029_v8 = vunpack.i.h.bf16 %v4446_v32 }
  0x9e   : > { %4714 = vset.pattern.permute.xlu1 %v4793_v38  ;;  %v5002_v38 = vunpack.i.l.bf16 %v4446_v32  ;;  %v5012_v62 = vmul.f32 %v4437_v43, %v4943_v21  ;;  %v5021_v4 = vmul.f32 %v4437_v43, %v4950_v25  ;;  %v1317_v5 = vmul.f32 %v4436_v48, %v4950_v25  ;;  %9229 = vst [vmem:[#allocation38_spill] sm:$0xff] %v5029_v8 }
  0x9f   : > { %v4451_v53 = vpop.permute.xlu1 %4450  ;;  %4716 = vperm.xlu1 %4714, %v4703_v18   ;;  %v4440_v54 = vpop.permute.xlu0 %4439  ;;  %v5032_v9 = vmul.f32 %v4436_v48, %v4943_v21  ;;  %v5044_v13 = vmul.f32 %v4437_v43, %v4941_v20  ;;  %v5055_v17 = vmul.f32 %v4436_v48, %v4941_v20  ;;  %v5077_v50 = vmul.f32 %v5029_v8, %v4943_v21 }
  0xa0   : > { %9218 = vst [vmem:[#allocation27_spill] sm:$0xff] %v5002_v38  ;;  %9222 = vst [vmem:[#allocation31_spill] sm:$0xff] %v5012_v62  ;;  %v5034_v10 = vunpack.i.l.bf16 %v4451_v53  ;;  %v5041_v12 = vmul.f32 %v5002_v38, %v4941_v20  ;;  %v5057_v29 = vunpack.i.l.bf16 %v4440_v54  ;;  %v730_v42 = vmul.f32 %v5002_v38, %v4943_v21 }
  0xa1   : > { %9226 = vst [vmem:[#allocation35_spill] sm:$0xff] %v5021_v4  ;;  %9230 = vst [vmem:[#allocation39_spill] sm:$0xff] %v5032_v9  ;;  %v1366_v16 = vrot.slane %v1317_v5, 2  ;;  %v5062_v43 = vunpack.i.h.bf16 %v4451_v53  ;;  %v5064_v19 = vunpack.i.h.bf16 %v4440_v54  ;;  %v9246_v11 = vrot.slane %v5021_v4, 2 }
  0xa2   : > { %9231 = vst [vmem:[#allocation40_spill] sm:$0xff] %v5034_v10  ;;  %9233 = vst [vmem:[#allocation42_spill] sm:$0xff] %v5041_v12  ;;  %v5069_v48 = vmul.f32 %v5034_v10, %v4941_v20  ;;  %v5073_v22 = vmul.f32 %v5057_v29, %v4943_v21  ;;  %v5081_v53 = vmul.f32 %v5057_v29, %v4950_v25  ;;  %v9259_v9 = vrot.slane %v5077_v50, 1 }
  0xa3   : > { %4720 = vset.pattern.permute.xlu1 %v8927_v45  ;;  %9236 = vst [vmem:[#allocation45_spill] sm:$0xff] %v5057_v29  ;;  %v4461_v32 = vpop.permute.xlu1 %4460  ;;  %v4456_v33 = vpop.permute.xlu0 %4455  ;;  %9237 = vst [vmem:[#allocation46_spill] sm:$0xff] %v5062_v43  ;;  %v5085_v54 = vmul.f32 %v5057_v29, %v4952_v26  ;;  %v5089_v5 = vmul.f32 %v5057_v29, %v4957_v28  ;;  %v5094_v41 = vmul.f32 %v5034_v10, %v4943_v21 }
  0xa4   : > { %4722 = vperm.xlu1 %4720, %v4703_v18   ;;  %9238 = vst [vmem:[#allocation47_spill] sm:$0xff] %v5064_v19  ;;  %9239 = vst [vmem:[#allocation48_spill] sm:$0xff] %v5069_v48  ;;  %v5096_v45 = vunpack.i.l.bf16 %v4461_v32  ;;  %v5098_v18 = vunpack.i.l.bf16 %v4456_v33  ;;  %v1323_v48 = vmul.f32 %v5002_v38, %v4950_v25  ;;  %v5105_v12 = vmul.f32 %v5029_v8, %v4950_v25 }
  0xa5   : > { %9240 = vst [vmem:[#allocation49_spill] sm:$0xff] %v5073_v22  ;;  %9241 = vst [vmem:[#allocation50_spill] sm:$0xff] %v5081_v53  ;;  %v5114_v7 = vmul.f32 %v5064_v19, %v4941_v20  ;;  %v5118_v58 = vmul.f32 %v5057_v29, %v4941_v20  ;;  %v5122_v15 = vmul.f32 %v5062_v43, %v4943_v21  ;;  %v5125_v62 = vunpack.i.h.bf16 %v4461_v32 }
  0xa6   : > { %9242 = vst [vmem:[#allocation51_spill] sm:$0xff] %v5085_v54  ;;  %9243 = vst [vmem:[#allocation52_spill] sm:$0xff] %v5089_v5  ;;  %v5127_v4 = vunpack.i.h.bf16 %v4456_v33  ;;  %v8944_v29 = vrot.slane %v5105_v12, 2  ;;  %v5136_v32 = vmul.f32 %v5096_v45, %v4941_v20  ;;  %v5140_v33 = vmul.f32 %v5098_v18, %v4941_v20 }
  0xa7   : > { %9244 = vst [vmem:[#allocation53_spill] sm:$0xff] %v5096_v45  ;;  %9245 = vst [vmem:[#allocation54_spill] sm:$0xff] %v5098_v18  ;;  %v5230_v45 = vmul.f32 %v5002_v38, %v4963_v31  ;;  %v5238_v5 = vmul.f32 %v5034_v10, %v4963_v31  ;;  %v5248_v22 = vmul.f32 %v5029_v8, %v4955_v27  ;;  %v9265_v47 = vrot.slane %v5122_v15, 1 }
  0xa8   : > { %4726 = vset.pattern.permute.xlu1 %v4792_v0  ;;  %v5110_v0 = vsel %vm1365_vm0, %v1366_v16, %v9246_v11  ;;  %9248 = vst [vmem:[#allocation56_spill] sm:$0xff] %v5114_v7  ;;  %9249 = vst [vmem:[#allocation57_spill] sm:$0xff] %v5125_v62  ;;  %v4471_v11 = vpop.permute.xlu1 %4470  ;;  %v4466_v16 = vpop.permute.xlu0 %4465  ;;  %v783_v7 = vrot.slane %v730_v42, 1  ;;  %v5244_v62 = vmul.f32 %v5002_v38, %v4955_v27 }
  0xa9   : > { %4728 = vperm.xlu1 %4726, %v4919_v3   ;;  %9247 = vst [vmem:[#allocation55_spill] sm:$0xff] %v5110_v0  ;;  %9250 = vst [vmem:[#allocation58_spill] sm:$0xff] %v5127_v4  ;;  %v1376_v0 = vrot.slane %v1323_v48, 2  ;;  %v9253_v48 = vmov 2   ;;  %v5143_v19 = vunpack.i.h.bf16 %v4471_v11  ;;  %v5145_v42 = vunpack.i.l.bf16 %v4471_v11 }
  0xaa   : > { %9251 = vst [vmem:[#allocation59_spill] sm:$0xff] %v5136_v32  ;;  %9252 = vst [vmem:[#allocation60_spill] sm:$0xff] %v5140_v33  ;;  %v5154_v14 = vunpack.i.h.bf16 %v4466_v16  ;;  %v5156_v52 = vunpack.i.l.bf16 %v4466_v16  ;;  %v2514_v11 = vmul.f32 %v5034_v10, %v4957_v28  ;;  %v5167_v18 = vsel %vm772_vm1, %v783_v7, %v9259_v9 }
  0xab   : > { %9254 = vst [vmem:[#allocation61_spill] sm:$0xff] %v5143_v19  ;;  %9255 = vst [vmem:[#allocation62_spill] sm:$0xff] %v5145_v42  ;;  %v5151_v6 = vsel %vm1365_vm0, %v1376_v0, %v8944_v29  ;;  %v5171_v0 = vmul.f32 %v5062_v43, %v4950_v25  ;;  %v2515_v16 = vmul.f32 %v5062_v43, %v4957_v28  ;;  %v9263_v4 = vmov 3  }
  0xac   : > { %9256 = vst [vmem:[#allocation63_spill] sm:$0xff] %v5151_v6  ;;  %9257 = vst [vmem:[#allocation64_spill] sm:$0xff] %v5154_v14  ;;  %v5182_v6 = vmul.f32 %v5062_v43, %v4952_v26  ;;  %v5186_v7 = vmul.f32 %v5029_v8, %v4957_v28  ;;  %v2566_v9 = vrot.slane %v2514_v11, 2  ;;  %v5190_v14 = vmul.f32 %v5143_v19, %v4960_v30 }
  0xad   : > { %4738 = vset.pattern.permute.xlu1 %v9253_v48  ;;  %9258 = vst [vmem:[#allocation65_spill] sm:$0xff] %v5156_v52  ;;  %v5160_v48 = vmul.f32 %v5034_v10, %v4950_v25  ;;  %9260 = vst [vmem:[#allocation66_spill] sm:$0xff] %v5167_v18  ;;  %v4550_v18 = vpop.permute.xlu0 %4549  ;;  %v5194_v32 = vmul.f32 %v5145_v42, %v4941_v20  ;;  %v2567_v33 = vrot.slane %v2515_v16, 2  ;;  %v5214_v16 = vpop.permute.xlu1 %4476 }
  0xae   : > { %4740 = vperm.xlu1 %4738, %v4919_v3   ;;  %v5175_v3 = vmul.f32 %v5029_v8, %v4952_v26  ;;  %9261 = vst [vmem:[#allocation67_spill] sm:$0xff] %v5190_v14  ;;  %v5198_v29 = vmul.f32 %v5029_v8, %v4963_v31  ;;  %v5204_v11 = vmul.f32 %v5002_v38, %v4952_v26  ;;  %v5261_v8 = vunpack.i.l.bf16 %v5214_v16 }
  0xaf   : > { %9262 = vst [vmem:[#allocation68_spill] sm:$0xff] %v5194_v32  ;;  %v5208_v14 = vmul.f32 %v5034_v10, %v4952_v26  ;;  %v5212_v32 = vmul.f32 %v5062_v43, %v4963_v31  ;;  %v5221_v19 = vmul.f32 %v5002_v38, %v4957_v28  ;;  %v5224_v54 = vsel %vm1365_vm0, %v2566_v9, %v2567_v33 }
  0xb0   : > { %9264 = vst [vmem:[#allocation69_spill] sm:$0xff] %v5224_v54  ;;  %v4552_v9 = vunpack.i.h.bf16 %v4550_v18  ;;  %v4551_v54 = vunpack.i.l.bf16 %v4550_v18 }
  0xb1   : > { %v5251_v2 = vpop.permute.xlu0 %4555 }
  0xb2   : > { %4744 = vset.pattern.permute.xlu1 %v9263_v4  ;;  %v735_v1 = vmul.f32 %v4552_v9, %v4943_v21  ;;  %v1328_v4 = vmul.f32 %v4552_v9, %v4950_v25  ;;  %v2008_v18 = vmul.f32 %v4552_v9, %v4952_v26  ;;  %v2516_v53 = vmul.f32 %v4552_v9, %v4957_v28 }
  0xb3   : > { %4746 = vperm.xlu1 %4744, %v4977_v44   ;;  %v5234_v44 = vmul.f32 %v5062_v43, %v4955_v27  ;;  %v3195_v63 = vmul.f32 %v4552_v9, %v4963_v31  ;;  %v3703_v38 = vmul.f32 %v4552_v9, %v4955_v27  ;;  %v732_v61 = vmul.f32 %v4551_v54, %v4943_v21  ;;  %v5263_v43 = vpop.permute.xlu1 %4481 }
  0xb4   : > { %v791_v60 = vrot.slane %v735_v1, 1  ;;  %v1384_v57 = vrot.slane %v1328_v4, 2  ;;  %v2061_v59 = vrot.slane %v2008_v18, 1  ;;  %v2569_v51 = vrot.slane %v2516_v53, 2 }
  0xb5   : > { %v3246_v56 = vrot.slane %v3195_v63, 1  ;;  %v3754_v39 = vrot.slane %v3703_v38, 2  ;;  %v786_v55 = vrot.slane %v732_v61, 1  ;;  %v1325_v40 = vmul.f32 %v4551_v54, %v4950_v25  ;;  %v5299_v53 = vpop.permute.xlu0 %4560 }
  0xb6   : > { %v5269_v9 = vsel %vm772_vm1, %v9265_v47, %v791_v60  ;;  %v9267_v21 = vrot.slane %v5171_v0, 2  ;;  %v9269_v1 = vrot.slane %v5182_v6, 1  ;;  %v5282_v38 = vsel %vm1365_vm0, %v2567_v33, %v2569_v51 }
  0xb7   : > { %9266 = vst [vmem:[#allocation70_spill] sm:$0xff] %v5269_v9  ;;  %9271 = vst [vmem:[#allocation73_spill] sm:$0xff] %v5282_v38  ;;  %v9272_v61 = vrot.slane %v5212_v32, 1  ;;  %v9274_v47 = vrot.slane %v5234_v44, 2  ;;  %v2005_v51 = vmul.f32 %v4551_v54, %v4952_v26  ;;  %v2513_v33 = vmul.f32 %v4551_v54, %v4957_v28 }
  0xb8   : > { %v5274_v46 = vsel %vm1365_vm0, %v9267_v21, %v1384_v57  ;;  %v5279_v4 = vsel %vm772_vm1, %v9269_v1, %v2061_v59  ;;  %v9276_v21 = vrot.slane %v5077_v50, 1  ;;  %v1379_v59 = vrot.slane %v1325_v40, 2 }
  0xb9   : > { %9268 = vst [vmem:[#allocation71_spill] sm:$0xff] %v5274_v46  ;;  %9270 = vst [vmem:[#allocation72_spill] sm:$0xff] %v5279_v4  ;;  %v5287_v63 = vsel %vm772_vm1, %v9272_v61, %v3246_v56  ;;  %v5292_v60 = vsel %vm1365_vm0, %v9274_v47, %v3754_v39  ;;  %v3192_v56 = vmul.f32 %v4551_v54, %v4963_v31  ;;  %v3747_v1 = vrot.slane %v5248_v22, 2  ;;  %v4487_v61 = vpop.permute.xlu1 %4486 }
  0xba   : > { %9273 = vst [vmem:[#allocation74_spill] sm:$0xff] %v5287_v63  ;;  %9275 = vst [vmem:[#allocation75_spill] sm:$0xff] %v5292_v60  ;;  %v5297_v57 = vsel %vm772_vm1, %v9276_v21, %v786_v55  ;;  %v3700_v18 = vmul.f32 %v4551_v54, %v4955_v27  ;;  %v3701_v39 = vmul.f32 %v5034_v10, %v4955_v27  ;;  %v9278_v50 = vrot.slane %v5105_v12, 2 }
  0xbb   : > { %9277 = vst [vmem:[#allocation76_spill] sm:$0xff] %v5297_v57  ;;  %v442_v40 = vmul.f32 %v5261_v8, %v4965_v34  ;;  %v2056_v47 = vrot.slane %v2005_v51, 1  ;;  %v2564_v21 = vrot.slane %v2513_v33, 2  ;;  %v3241_v60 = vrot.slane %v3192_v56, 1 }
  0xbc   : > { %v5311_v55 = vsel %vm1365_vm0, %v9278_v50, %v1379_v59  ;;  %v3749_v63 = vrot.slane %v3700_v18, 2  ;;  %v2053_v54 = vrot.slane %v5204_v11, 1  ;;  %v2058_v38 = vrot.slane %v5208_v14, 1 }
  0xbd   : > { %9279 = vst [vmem:[#allocation77_spill] sm:$0xff] %v5311_v55  ;;  %v2561_v4 = vrot.slane %v5221_v19, 2  ;;  %v5319_v22 = vadd.f32 %v442_v40, %v5118_v58  ;;  %v9280_v12 = vrot.slane %v5175_v3, 1  ;;  %v9282_v50 = vrot.slane %v5186_v7, 2  ;;  %v4566_v40 = vpop.permute.xlu0 %4565 }
  0xbe   : > { %v9284_v33 = vrot.slane %v5198_v29, 1  ;;  %v5337_v14 = vsel %vm1365_vm0, %v3747_v1, %v3749_v63  ;;  %v5341_v58 = vmul.f32 %v5145_v42, %v4960_v30  ;;  %v3238_v19 = vrot.slane %v5230_v45, 1  ;;  %v9335_v42 = vld [vmem:[#allocation17_spill] sm:$0xff] }
  0xbf   : > { %v5324_v59 = vsel %vm772_vm1, %v9280_v12, %v2056_v47  ;;  %v5329_v51 = vsel %vm1365_vm0, %v9282_v50, %v2564_v21  ;;  %9286 = vst [vmem:[#allocation81_spill] sm:$0xff] %v5337_v14  ;;  %v3243_v56 = vrot.slane %v5238_v5, 1  ;;  %v3746_v18 = vrot.slane %v5244_v62, 2 }
  0xc0   : > { %9281 = vst [vmem:[#allocation78_spill] sm:$0xff] %v5324_v59  ;;  %9283 = vst [vmem:[#allocation79_spill] sm:$0xff] %v5329_v51  ;;  %v5334_v11 = vsel %vm772_vm1, %v9284_v33, %v3241_v60  ;;  %v5348_v47 = vmul.f32 %v5156_v52, %v4941_v20  ;;  %v9289_v60 = vrot.slane %v5122_v15, 1  ;;  %v9290_v63 = vrot.slane %v5094_v41, 1 }
  0xc1   : > { %9285 = vst [vmem:[#allocation80_spill] sm:$0xff] %v5334_v11  ;;  %9287 = vst [vmem:[#allocation82_spill] sm:$0xff] %v5341_v58  ;;  %v9292_v12 = vrot.slane %v5171_v0, 2  ;;  %v9293_v45 = vrot.slane %v5160_v48, 2  ;;  %v3751_v62 = vrot.slane %v3701_v39, 2  ;;  %v9295_v50 = vrot.slane %v5175_v3, 1  ;;  %v4492_v0 = vpop.permute.xlu1 %4491 }
  0xc2   : > { %9288 = vst [vmem:[#allocation83_spill] sm:$0xff] %v5348_v47  ;;  %v5355_v21 = vsel %vm772_vm1, %v9290_v63, %v9289_v60  ;;  %v9297_v15 = vrot.slane %v5182_v6, 1  ;;  %v5375_v60 = vunpack.i.h.bf16 %v5214_v16  ;;  %v5379_v48 = vmul.f32 %v5261_v8, %v4945_v23  ;;  %v9331_v11 = vld [vmem:[#allocation18_spill] sm:$0xff] }
  0xc3   : > { %9291 = vst [vmem:[#allocation84_spill] sm:$0xff] %v5355_v21  ;;  %v5362_v5 = vsel %vm1365_vm0, %v9293_v45, %v9292_v12  ;;  %v5367_v33 = vsel %vm772_vm1, %v2053_v54, %v9295_v50  ;;  %v9300_v39 = vrot.slane %v5186_v7, 2  ;;  %v5388_v54 = vmul.f32 %v5261_v8, %v4967_v35 }
  0xc4   : > { %9294 = vst [vmem:[#allocation85_spill] sm:$0xff] %v5362_v5  ;;  %9296 = vst [vmem:[#allocation86_spill] sm:$0xff] %v5367_v33  ;;  %v5372_v41 = vsel %vm772_vm1, %v2058_v38, %v9297_v15  ;;  %v5392_v6 = vmul.f32 %v5261_v8, %v4969_v36  ;;  %v4558_v16 = vunpack.i.h.bf16 %v5251_v2  ;;  %v9302_v38 = vrot.slane %v5198_v29, 1 }
  0xc5   : > { %9298 = vst [vmem:[#allocation87_spill] sm:$0xff] %v5372_v41  ;;  %9299 = vst [vmem:[#allocation88_spill] sm:$0xff] %v5375_v60  ;;  %v5384_v3 = vsel %vm1365_vm0, %v2561_v4, %v9300_v39  ;;  %v9304_v7 = vrot.slane %v5212_v32, 1  ;;  %v5406_v12 = vsel %vm1365_vm0, %v3746_v18, %v3747_v1  ;;  %v4557_v45 = vunpack.i.l.bf16 %v5251_v2  ;;  %v4571_v18 = vpop.permute.xlu0 %4570  ;;  %v4498_v14 = vpop.permute.xlu1 %4497 }
  0xc6   : > { %9301 = vst [vmem:[#allocation89_spill] sm:$0xff] %v5384_v3  ;;  %v5398_v63 = vsel %vm772_vm1, %v3238_v19, %v9302_v38  ;;  %9306 = vst [vmem:[#allocation92_spill] sm:$0xff] %v5406_v12  ;;  %v9307_v50 = vrot.slane %v5234_v44, 2  ;;  %v5416_v29 = vmul.f32 %v5261_v8, %v4971_v37  ;;  %v5419_v19 = vmul.f32 %v4558_v16, %v4945_v23 }
  0xc7   : > { %9303 = vst [vmem:[#allocation90_spill] sm:$0xff] %v5398_v63  ;;  %v5403_v4 = vsel %vm772_vm1, %v3243_v56, %v9304_v7  ;;  %v5422_v32 = vmul.f32 %v4558_v16, %v4967_v35  ;;  %v5426_v1 = vmul.f32 %v5375_v60, %v4965_v34  ;;  %v881_v44 = vmul.f32 %v4557_v45, %v4945_v23 }
  0xc8   : > { %9305 = vst [vmem:[#allocation91_spill] sm:$0xff] %v5403_v4  ;;  %v5412_v15 = vsel %vm1365_vm0, %v3751_v62, %v9307_v50  ;;  %v1442_v56 = vmul.f32 %v4557_v45, %v4967_v35  ;;  %v5434_v38 = vunpack.i.h.bf16 %v5263_v43  ;;  %v5437_v7 = vunpack.i.l.bf16 %v5263_v43 }
  0xc9   : > { %9308 = vst [vmem:[#allocation93_spill] sm:$0xff] %v5412_v15  ;;  %v441_v50 = vmul.f32 %v4558_v16, %v4965_v34  ;;  %v440_v58 = vmul.f32 %v4557_v45, %v4965_v34  ;;  %v5441_v2 = vunpack.i.l.bf16 %v4487_v61  ;;  %v5444_v15 = vunpack.i.l.bf16 %v5299_v53  ;;  %v4586_v12 = vpop.permute.xlu0 %4585 }
  0xca   : > { %9309 = vst [vmem:[#allocation94_spill] sm:$0xff] %v5434_v38  ;;  %9310 = vst [vmem:[#allocation95_spill] sm:$0xff] %v5437_v7  ;;  %v5449_v4 = vunpack.i.h.bf16 %v4487_v61  ;;  %v929_v43 = vrot.slane %v881_v44, 1  ;;  %v1490_v51 = vrot.slane %v1442_v56, 2  ;;  %v5451_v3 = vunpack.i.l.bf16 %v4492_v0 }
  0xcb   : > { %9311 = vst [vmem:[#allocation96_spill] sm:$0xff] %v5441_v2  ;;  %9312 = vst [vmem:[#allocation97_spill] sm:$0xff] %v5444_v15  ;;  %v5453_v16 = vunpack.i.l.bf16 %v4566_v40  ;;  %v5457_v45 = vmul.f32 %v5437_v7, %v4965_v34  ;;  %v5460_v41 = vunpack.i.h.bf16 %v5299_v53  ;;  %v4500_v62 = vunpack.i.h.bf16 %v4498_v14 }
  0xcc   : > { %9313 = vst [vmem:[#allocation98_spill] sm:$0xff] %v5449_v4  ;;  %9314 = vst [vmem:[#allocation99_spill] sm:$0xff] %v5451_v3  ;;  %v4499_v46 = vunpack.i.l.bf16 %v4498_v14  ;;  %v456_v39 = vadd.f32 %v440_v58, %v5055_v17  ;;  %v457_v61 = vadd.f32 %v441_v50, %v5044_v13  ;;  %v5466_v44 = vmul.f32 %v5441_v2, %v4965_v34  ;;  %v9439_v4 = vld [vmem:[#allocation22_spill] sm:$0xff] }
  0xcd   : > { %9315 = vst [vmem:[#allocation100_spill] sm:$0xff] %v5453_v16  ;;  %9316 = vst [vmem:[#allocation101_spill] sm:$0xff] %v5457_v45  ;;  %v5470_v56 = vmul.f32 %v5444_v15, %v4965_v34  ;;  %v5472_v5 = vunpack.i.h.bf16 %v4492_v0  ;;  %v5474_v55 = vunpack.i.h.bf16 %v4566_v40  ;;  %v5476_v53 = vunpack.i.h.bf16 %v4571_v18 }
  0xce   : > { %9317 = vst [vmem:[#allocation102_spill] sm:$0xff] %v5460_v41  ;;  %9318 = vst [vmem:[#allocation103_spill] sm:$0xff] %v5466_v44  ;;  %v5478_v14 = vunpack.i.l.bf16 %v4571_v18  ;;  %v9324_v17 = vrot.slane %v5419_v19, 1  ;;  %v9325_v58 = vrot.slane %v5422_v32, 2  ;;  %v5492_v0 = vmul.f32 %v5451_v3, %v4965_v34 }
  0xcf   : > { %9319 = vst [vmem:[#allocation104_spill] sm:$0xff] %v5470_v56  ;;  %9320 = vst [vmem:[#allocation105_spill] sm:$0xff] %v5472_v5  ;;  %v5496_v40 = vmul.f32 %v5453_v16, %v4965_v34  ;;  %v5499_v18 = vmul.f32 %v4500_v62, %v4948_v24  ;;  %v5502_v10 = vmul.f32 %v4500_v62, %v4985_v49  ;;  %v4587_v2 = vunpack.i.l.bf16 %v4586_v12 }
  0xd0   : > { %9321 = vst [vmem:[#allocation106_spill] sm:$0xff] %v5474_v55  ;;  %9322 = vst [vmem:[#allocation107_spill] sm:$0xff] %v5476_v53  ;;  %v5483_v13 = vsel %vm772_vm1, %v929_v43, %v9324_v17  ;;  %v5488_v50 = vsel %vm1365_vm0, %v1490_v51, %v9325_v58  ;;  %v1037_v43 = vmul.f32 %v4499_v46, %v4948_v24  ;;  %v4588_v17 = vunpack.i.h.bf16 %v4586_v12 }
  0xd1   : > { %9323 = vst [vmem:[#allocation108_spill] sm:$0xff] %v5478_v14  ;;  %9326 = vst [vmem:[#allocation109_spill] sm:$0xff] %v5488_v50  ;;  %v5507_v51 = vmul.f32 %v5476_v53, %v9331_v11  ;;  %v1566_v58 = vmul.f32 %v4499_v46, %v4985_v49  ;;  %v885_v63 = vmul.f32 %v5375_v60, %v4945_v23 }
  0xd2   : > { %9327 = vst [vmem:[#allocation110_spill] sm:$0xff] %v5492_v0  ;;  %9328 = vst [vmem:[#allocation111_spill] sm:$0xff] %v5496_v40  ;;  %v1446_v59 = vmul.f32 %v5375_v60, %v4967_v35  ;;  %v5516_v33 = vmul.f32 %v5478_v14, %v4965_v34  ;;  %v2129_v30 = vmul.f32 %v5375_v60, %v4969_v36  ;;  %v1085_v45 = vrot.slane %v1037_v43, 1 }
  0xd3   : > { %9329 = vst [vmem:[#allocation112_spill] sm:$0xff] %v5499_v18  ;;  %9330 = vst [vmem:[#allocation113_spill] sm:$0xff] %v5502_v10  ;;  %v2633_v16 = vmul.f32 %v5375_v60, %v4971_v37  ;;  %v886_v57 = vmul.f32 %v4588_v17, %v4945_v23  ;;  %v1447_v21 = vmul.f32 %v4588_v17, %v4967_v35  ;;  %v1614_v38 = vrot.slane %v1566_v58, 2 }
  0xd4   : > { %9332 = vst [vmem:[#allocation114_spill] sm:$0xff] %v5507_v51  ;;  %9333 = vst [vmem:[#allocation115_spill] sm:$0xff] %v5516_v33  ;;  %v9334_v51 = vld [vmem:[#allocation19_spill] sm:$0xff]  ;;  %v2130_v15 = vmul.f32 %v4588_v17, %v4969_v36  ;;  %v935_v52 = vrot.slane %v885_v63, 1  ;;  %v1496_v33 = vrot.slane %v1446_v59, 2  ;;  %v2634_v12 = vmul.f32 %v4588_v17, %v4971_v37 }
  0xd5   : > { %v541_v9 = vmul.f32 %v4500_v62, %v9334_v51  ;;  %v540_v7 = vmul.f32 %v4499_v46, %v9334_v51  ;;  %v2177_v60 = vrot.slane %v2129_v30, 1  ;;  %v2681_v62 = vrot.slane %v2633_v16, 2 }
  0xd6   : > { %v883_v0 = vmul.f32 %v4587_v2, %v4945_v23  ;;  %v1444_v47 = vmul.f32 %v4587_v2, %v4967_v35  ;;  %v5534_v40 = vmul.f32 %v5478_v14, %v9335_v42  ;;  %v937_v56 = vrot.slane %v886_v57, 1  ;;  %v4503_v2 = vpop.permute.xlu1 %4502 }
  0xd7   : > { %v1498_v41 = vrot.slane %v1447_v21, 2  ;;  %v2179_v44 = vrot.slane %v2130_v15, 1  ;;  %v5538_v46 = vmul.f32 %v5478_v14, %v9331_v11  ;;  %v5540_v59 = vadd.f32 %v540_v7, %v456_v39 }
  0xd8   : > { %9336 = vst [vmem:[#allocation116_spill] sm:$0xff] %v5534_v40  ;;  %v5542_v63 = vadd.f32 %v541_v9, %v457_v61  ;;  %v9338_v30 = vrot.slane %v5499_v18, 1  ;;  %v9339_v43 = vrot.slane %v5502_v10, 2  ;;  %v9341_v21 = vrot.slane %v5379_v48, 1 }
  0xd9   : > { %9337 = vst [vmem:[#allocation117_spill] sm:$0xff] %v5538_v46  ;;  %v9343_v39 = vrot.slane %v5388_v54, 2  ;;  %v2683_v7 = vrot.slane %v2634_v12, 2  ;;  %v9347_v17 = vrot.slane %v5416_v29, 2  ;;  %v932_v48 = vrot.slane %v883_v0, 1 }
  0xda   : > { %v5547_v16 = vsel %vm772_vm1, %v1085_v45, %v9338_v30  ;;  %v5552_v57 = vsel %vm1365_vm0, %v1614_v38, %v9339_v43  ;;  %v5557_v15 = vsel %vm772_vm1, %v9341_v21, %v935_v52  ;;  %v9345_v45 = vrot.slane %v5392_v6, 1  ;;  %v9355_v21 = vld [vmem:[#allocation23_spill] sm:$0xff] }
  0xdb   : > { %9340 = vst [vmem:[#allocation118_spill] sm:$0xff] %v5552_v57  ;;  %9342 = vst [vmem:[#allocation119_spill] sm:$0xff] %v5557_v15  ;;  %v5562_v9 = vsel %vm1365_vm0, %v9343_v39, %v1496_v33  ;;  %v5572_v38 = vsel %vm1365_vm0, %v9347_v17, %v2681_v62  ;;  %v1493_v58 = vrot.slane %v1444_v47, 2  ;;  %v5575_v30 = vsel %vm772_vm1, %v935_v52, %v937_v56  ;;  %v4602_v39 = vpop.permute.xlu0 %4601  ;;  %v9358_v17 = vld [vmem:[#allocation16_spill] sm:$0xff] }
  0xdc   : > { %9344 = vst [vmem:[#allocation120_spill] sm:$0xff] %v5562_v9  ;;  %v5567_v61 = vsel %vm772_vm1, %v9345_v45, %v2177_v60  ;;  %9348 = vst [vmem:[#allocation122_spill] sm:$0xff] %v5572_v38  ;;  %v5578_v54 = vsel %vm1365_vm0, %v1496_v33, %v1498_v41  ;;  %v5581_v12 = vsel %vm772_vm1, %v2177_v60, %v2179_v44  ;;  %v5583_v6 = vunpack.i.h.bf16 %v4503_v2 }
  0xdd   : > { %9346 = vst [vmem:[#allocation121_spill] sm:$0xff] %v5567_v61  ;;  %9349 = vst [vmem:[#allocation123_spill] sm:$0xff] %v5575_v30  ;;  %v899_v43 = vmul.f32 %v5451_v3, %v4945_v23  ;;  %v5589_v29 = vmul.f32 %v5472_v5, %v4945_v23  ;;  %v1460_v47 = vmul.f32 %v5451_v3, %v4967_v35  ;;  %v5600_v41 = vunpack.i.l.bf16 %v4503_v2 }
  0xde   : > { %9350 = vst [vmem:[#allocation124_spill] sm:$0xff] %v5578_v54  ;;  %9351 = vst [vmem:[#allocation125_spill] sm:$0xff] %v5581_v12  ;;  %v5595_v52 = vmul.f32 %v5472_v5, %v4967_v35  ;;  %v5598_v33 = vsel %vm1365_vm0, %v2681_v62, %v2683_v7  ;;  %v2143_v60 = vmul.f32 %v5451_v3, %v4969_v36  ;;  %v9356_v7 = vrot.slane %v5419_v19, 1 }
  0xdf   : > { %9352 = vst [vmem:[#allocation126_spill] sm:$0xff] %v5583_v6  ;;  %9353 = vst [vmem:[#allocation127_spill] sm:$0xff] %v5598_v33  ;;  %v5606_v44 = vmul.f32 %v5472_v5, %v4969_v36  ;;  %v2647_v56 = vmul.f32 %v5451_v3, %v4971_v37  ;;  %v5612_v0 = vmul.f32 %v5472_v5, %v4971_v37  ;;  %v4604_v33 = vunpack.i.h.bf16 %v4602_v39  ;;  %v4608_v27 = vpop.permute.xlu0 %4607 }
  0xe0   : > { %9354 = vst [vmem:[#allocation128_spill] sm:$0xff] %v5600_v41  ;;  %v3330_v62 = vmul.f32 %v5451_v3, %v9355_v21  ;;  %v5618_v2 = vmul.f32 %v5472_v5, %v9355_v21  ;;  %v5623_v45 = vsel %vm772_vm1, %v9356_v7, %v932_v48  ;;  %v3834_v40 = vmul.f32 %v5451_v3, %v9358_v17 }
  0xe1   : > { %9357 = vst [vmem:[#allocation129_spill] sm:$0xff] %v5623_v45  ;;  %v5629_v46 = vmul.f32 %v5472_v5, %v9358_v17  ;;  %v959_v12 = vrot.slane %v899_v43, 1  ;;  %v960_v38 = vrot.slane %v5589_v29, 1  ;;  %v1520_v10 = vrot.slane %v1460_v47, 2 }
  0xe2   : > { %v9002_v54 = vrot.slane %v5595_v52, 2  ;;  %v9359_v9 = vrot.slane %v5422_v32, 2  ;;  %v2201_v48 = vrot.slane %v2143_v60, 1  ;;  %v9003_v7 = vrot.slane %v5606_v44, 1 }
  0xe3   : > { %v4603_v3 = vunpack.i.l.bf16 %v4602_v39  ;;  %v2705_v11 = vrot.slane %v2647_v56, 2  ;;  %v9004_v18 = vrot.slane %v5612_v0, 2  ;;  %v3386_v45 = vrot.slane %v3330_v62, 1  ;;  %v5657_v56 = vpop.permute.xlu1 %4507 }
  0xe4   : > { %v5636_v19 = vsel %vm1365_vm0, %v9359_v9, %v1493_v58  ;;  %v3890_v30 = vrot.slane %v3834_v40, 2  ;;  %v904_v47 = vmul.f32 %v4604_v33, %v4945_v23  ;;  %v1465_v32 = vmul.f32 %v4604_v33, %v4967_v35 }
  0xe5   : > { %9360 = vst [vmem:[#allocation130_spill] sm:$0xff] %v5636_v19  ;;  %v5646_v9 = vmul.f32 %v5600_v41, %v9334_v51  ;;  %v5649_v58 = vsel %vm772_vm1, %v959_v12, %v960_v38  ;;  %v5654_v60 = vsel %vm1365_vm0, %v1520_v10, %v9002_v54  ;;  %v2148_v40 = vmul.f32 %v4604_v33, %v4969_v36 }
  0xe6   : > { %9362 = vst [vmem:[#allocation132_spill] sm:$0xff] %v5649_v58  ;;  %9363 = vst [vmem:[#allocation133_spill] sm:$0xff] %v5654_v60  ;;  %v2652_v62 = vmul.f32 %v4604_v33, %v4971_v37  ;;  %v5661_v39 = vmul.f32 %v4604_v33, %v9355_v21  ;;  %v901_v29 = vmul.f32 %v4603_v3, %v4945_v23  ;;  %v9366_v54 = vrot.slane %v5618_v2, 1 }
  0xe7   : > { %9361 = vst [vmem:[#allocation131_spill] sm:$0xff] %v5646_v9  ;;  %v902_v12 = vmul.f32 %v5478_v14, %v4945_v23  ;;  %v5669_v43 = vsel %vm772_vm1, %v2201_v48, %v9003_v7  ;;  %v5674_v10 = vsel %vm1365_vm0, %v2705_v11, %v9004_v18  ;;  %v903_v58 = vmul.f32 %v5476_v53, %v4945_v23 }
  0xe8   : > { %9364 = vst [vmem:[#allocation134_spill] sm:$0xff] %v5669_v43  ;;  %9365 = vst [vmem:[#allocation135_spill] sm:$0xff] %v5674_v10  ;;  %v5679_v60 = vsel %vm772_vm1, %v3386_v45, %v9366_v54  ;;  %v9368_v19 = vrot.slane %v5629_v46, 2  ;;  %v967_v48 = vrot.slane %v904_v47, 1  ;;  %v1528_v7 = vrot.slane %v1465_v32, 2  ;;  %v4513_v32 = vpop.permute.xlu1 %4512 }
  0xe9   : > { %9367 = vst [vmem:[#allocation136_spill] sm:$0xff] %v5679_v60  ;;  %v3839_v43 = vmul.f32 %v4604_v33, %v9358_v17  ;;  %v2209_v9 = vrot.slane %v2148_v40, 1  ;;  %v1462_v11 = vmul.f32 %v4603_v3, %v4967_v35  ;;  %v5692_v18 = vmul.f32 %v5476_v53, %v4967_v35 }
  0xea   : > { %v5686_v15 = vsel %vm1365_vm0, %v3890_v30, %v9368_v19  ;;  %v2145_v54 = vmul.f32 %v4603_v3, %v4969_v36  ;;  %v2713_v45 = vrot.slane %v2652_v62, 2  ;;  %v3394_v60 = vrot.slane %v5661_v39, 1 }
  0xeb   : > { %9369 = vst [vmem:[#allocation137_spill] sm:$0xff] %v5686_v15  ;;  %9370 = vst [vmem:[#allocation138_spill] sm:$0xff] %v5692_v18  ;;  %v962_v10 = vrot.slane %v901_v29, 1  ;;  %v964_v23 = vrot.slane %v902_v12, 1  ;;  %v965_v30 = vrot.slane %v903_v58, 1  ;;  %v2146_v19 = vmul.f32 %v5478_v14, %v4969_v36 }
  0xec   : > { %v2147_v33 = vmul.f32 %v5476_v53, %v4969_v36  ;;  %v2649_v47 = vmul.f32 %v4603_v3, %v4971_v37  ;;  %v5703_v40 = vmul.f32 %v5476_v53, %v4971_v37  ;;  %v3332_v62 = vmul.f32 %v4603_v3, %v9355_v21 }
  0xed   : > { %v3333_v29 = vmul.f32 %v5478_v14, %v9355_v21  ;;  %v3334_v58 = vmul.f32 %v5476_v53, %v9355_v21  ;;  %v3898_v39 = vrot.slane %v3839_v43, 2  ;;  %v1523_v12 = vrot.slane %v1462_v11, 2 }
  0xee   : > { %9371 = vst [vmem:[#allocation139_spill] sm:$0xff] %v5703_v40  ;;  %v2204_v36 = vrot.slane %v2145_v54, 1  ;;  %v5712_v35 = vsel %vm772_vm1, %v960_v38, %v962_v10  ;;  %v3836_v5 = vmul.f32 %v4603_v3, %v9358_v17  ;;  %v3837_v37 = vmul.f32 %v5478_v14, %v9358_v17 }
  0xef   : > { %9372 = vst [vmem:[#allocation140_spill] sm:$0xff] %v5712_v35  ;;  %v3838_v55 = vmul.f32 %v5476_v53, %v9358_v17  ;;  %v5720_v31 = vsel %vm772_vm1, %v964_v23, %v965_v30  ;;  %v2206_v43 = vrot.slane %v2146_v19, 1  ;;  %v2207_v11 = vrot.slane %v2147_v33, 1  ;;  %v9437_v53 = vld [vmem:[#allocation43_spill] sm:$0xff] }
  0xf0   : > { %9373 = vst [vmem:[#allocation141_spill] sm:$0xff] %v5720_v31  ;;  %v2708_v21 = vrot.slane %v2649_v47, 2  ;;  %v9024_v54 = vrot.slane %v5703_v40, 2  ;;  %v3389_v15 = vrot.slane %v3332_v62, 1  ;;  %v3391_v38 = vrot.slane %v3333_v29, 1  ;;  %v4518_v47 = vpop.permute.xlu1 %4517 }
  0xf1   : > { %v3392_v10 = vrot.slane %v3334_v58, 1  ;;  %v5724_v3 = vsel %vm772_vm1, %v965_v30, %v967_v48  ;;  %v9375_v14 = vrot.slane %v5595_v52, 2  ;;  %v9377_v17 = vrot.slane %v5692_v18, 2 }
  0xf2   : > { %9374 = vst [vmem:[#allocation142_spill] sm:$0xff] %v5724_v3  ;;  %v9379_v19 = vrot.slane %v5606_v44, 1  ;;  %v3893_v62 = vrot.slane %v3836_v5, 2  ;;  %v3895_v29 = vrot.slane %v3837_v37, 2  ;;  %v3896_v48 = vrot.slane %v3838_v55, 2 }
  0xf3   : > { %v5729_v35 = vsel %vm1365_vm0, %v9375_v14, %v1523_v12  ;;  %v5734_v23 = vsel %vm1365_vm0, %v9377_v17, %v1528_v7  ;;  %v5742_v30 = vunpack.i.l.bf16 %v5657_v56  ;;  %v5745_v14 = vsel %vm772_vm1, %v2206_v43, %v2207_v11 }
  0xf4   : > { %9376 = vst [vmem:[#allocation143_spill] sm:$0xff] %v5729_v35  ;;  %9378 = vst [vmem:[#allocation144_spill] sm:$0xff] %v5734_v23  ;;  %v5739_v33 = vsel %vm772_vm1, %v9379_v19, %v2204_v36  ;;  %v5748_v52 = vsel %vm772_vm1, %v2207_v11, %v2209_v9  ;;  %v9383_v17 = vrot.slane %v5612_v0, 2  ;;  %v4609_v36 = vunpack.i.l.bf16 %v4608_v27  ;;  %v4613_v0 = vpop.permute.xlu0 %4612  ;;  %v9430_v35 = vld [vmem:[#allocation33_spill] sm:$0xff] }
  0xf5   : > { %9380 = vst [vmem:[#allocation145_spill] sm:$0xff] %v5739_v33  ;;  %9381 = vst [vmem:[#allocation146_spill] sm:$0xff] %v5745_v14  ;;  %v5758_v37 = vsel %vm1365_vm0, %v9024_v54, %v2713_v45  ;;  %v9386_v55 = vrot.slane %v5618_v2, 1  ;;  %v5766_v7 = vsel %vm772_vm1, %v3391_v38, %v3392_v10  ;;  %v5769_v9 = vunpack.i.h.bf16 %v5657_v56  ;;  %v4524_v38 = vpop.permute.xlu1 %4523  ;;  %v9426_v33 = vld [vmem:[#allocation32_spill] sm:$0xff] }
  0xf6   : > { %9382 = vst [vmem:[#allocation147_spill] sm:$0xff] %v5748_v52  ;;  %v5753_v44 = vsel %vm1365_vm0, %v9383_v17, %v2708_v21  ;;  %9385 = vst [vmem:[#allocation149_spill] sm:$0xff] %v5758_v37  ;;  %v5772_v21 = vsel %vm772_vm1, %v3392_v10, %v3394_v60  ;;  %v5774_v58 = vunpack.i.h.bf16 %v4513_v32  ;;  %v5776_v12 = vunpack.i.l.bf16 %v4513_v32  ;;  %v9402_v10 = vld [vmem:[#allocation24_spill] sm:$0xff] }
  0xf7   : > { %9384 = vst [vmem:[#allocation148_spill] sm:$0xff] %v5753_v44  ;;  %v5763_v5 = vsel %vm772_vm1, %v9386_v55, %v3389_v15  ;;  %9388 = vst [vmem:[#allocation151_spill] sm:$0xff] %v5766_v7  ;;  %v5778_v45 = vunpack.i.h.bf16 %v4608_v27  ;;  %v9394_v2 = vrot.slane %v5629_v46, 2  ;;  %v5786_v43 = vsel %vm1365_vm0, %v3895_v29, %v3896_v48  ;;  %v9409_v55 = vld [vmem:[#allocation25_spill] sm:$0xff] }
  0xf8   : > { %9387 = vst [vmem:[#allocation150_spill] sm:$0xff] %v5763_v5  ;;  %9389 = vst [vmem:[#allocation152_spill] sm:$0xff] %v5769_v9  ;;  %v5789_v56 = vsel %vm1365_vm0, %v3896_v48, %v3898_v39  ;;  %v5793_v60 = vmul.f32 %v5742_v30, %v9334_v51  ;;  %v542_v32 = vmul.f32 %v4609_v36, %v9334_v51  ;;  %v5799_v11 = vunpack.i.h.bf16 %v4518_v47  ;;  %v9407_v48 = vld [vmem:[#allocation28_spill] sm:$0xff]  ;;  %v4618_v23 = vpop.permute.xlu0 %4617  ;;  %v9423_v7 = vld [vmem:[#allocation29_spill] sm:$0xff] }
  0xf9   : > { %9390 = vst [vmem:[#allocation153_spill] sm:$0xff] %v5772_v21  ;;  %9391 = vst [vmem:[#allocation154_spill] sm:$0xff] %v5774_v58  ;;  %v5783_v15 = vsel %vm1365_vm0, %v9394_v2, %v3893_v62  ;;  %v5797_v27 = vmul.f32 %v4609_v36, %v4948_v24  ;;  %v5801_v46 = vunpack.i.l.bf16 %v4518_v47  ;;  %v5805_v19 = vmul.f32 %v5742_v30, %v9402_v10  ;;  %v9405_v62 = vld [vmem:[#allocation21_spill] sm:$0xff] }
  0xfa   : > { %9392 = vst [vmem:[#allocation155_spill] sm:$0xff] %v5776_v12  ;;  %9393 = vst [vmem:[#allocation156_spill] sm:$0xff] %v5778_v45  ;;  %v5808_v39 = vmul.f32 %v4609_v36, %v4985_v49  ;;  %v5811_v29 = vmul.f32 %v4609_v36, %v9405_v62  ;;  %v5814_v17 = vmul.f32 %v4609_v36, %v9407_v48  ;;  %v5835_v37 = vunpack.i.h.bf16 %v4613_v0 }
  0xfb   : > { %9395 = vst [vmem:[#allocation157_spill] sm:$0xff] %v5783_v15  ;;  %9396 = vst [vmem:[#allocation158_spill] sm:$0xff] %v5786_v43  ;;  %v5818_v2 = vmul.f32 %v5742_v30, %v9409_v55  ;;  %v5822_v47 = vmul.f32 %v5776_v12, %v9402_v10  ;;  %v5826_v54 = vmul.f32 %v5776_v12, %v9409_v55  ;;  %v5837_v18 = vunpack.i.l.bf16 %v4613_v0 }
  0xfc   : > { %9397 = vst [vmem:[#allocation159_spill] sm:$0xff] %v5789_v56  ;;  %9398 = vst [vmem:[#allocation160_spill] sm:$0xff] %v5793_v60  ;;  %v5830_v40 = vmul.f32 %v5778_v45, %v9334_v51  ;;  %v5833_v14 = vmul.f32 %v4609_v36, %v9402_v10  ;;  %v4525_v31 = vunpack.i.l.bf16 %v4524_v38  ;;  %v558_v56 = vadd.f32 %v542_v32, %v5319_v22 }
  0xfd   : > { %9399 = vst [vmem:[#allocation161_spill] sm:$0xff] %v5797_v27  ;;  %9400 = vst [vmem:[#allocation162_spill] sm:$0xff] %v5799_v11  ;;  %v5843_v15 = vmul.f32 %v5799_v11, %v9409_v55  ;;  %v5847_v21 = vmul.f32 %v5801_v46, %v9402_v10  ;;  %v5854_v5 = vmul.f32 %v5801_v46, %v9409_v55  ;;  %v5864_v43 = vunpack.i.h.bf16 %v4618_v23  ;;  %v9435_v27 = vld [vmem:[#allocation36_spill] sm:$0xff] }
  0xfe   : > { %9401 = vst [vmem:[#allocation163_spill] sm:$0xff] %v5801_v46  ;;  %9403 = vst [vmem:[#allocation164_spill] sm:$0xff] %v5805_v19  ;;  %v5858_v22 = vmul.f32 %v5837_v18, %v9402_v10  ;;  %v5862_v32 = vmul.f32 %v5837_v18, %v9409_v55  ;;  %v5868_v36 = vunpack.i.l.bf16 %v4618_v23  ;;  %v642_v0 = vmul.f32 %v4525_v31, %v9423_v7 }
  0xff   : > { %9404 = vst [vmem:[#allocation165_spill] sm:$0xff] %v5808_v39  ;;  %9406 = vst [vmem:[#allocation166_spill] sm:$0xff] %v5811_v29  ;;  %v5889_v23 = vmul.f32 %v5583_v6, %v4985_v49  ;;  %v9434_v29 = vld [vmem:[#allocation34_spill] sm:$0xff]  ;;  %v2763_v45 = vmul.f32 %v5769_v9, %v9407_v48  ;;  %v3949_v50 = vmul.f32 %v5742_v30, %v9439_v4 }
 0x100   : > { %9408 = vst [vmem:[#allocation167_spill] sm:$0xff] %v5814_v17  ;;  %9410 = vst [vmem:[#allocation168_spill] sm:$0xff] %v5818_v2  ;;  %v5897_v2 = vmul.f32 %v5742_v30, %v4948_v24  ;;  %v5905_v52 = vmul.f32 %v5868_v36, %v9409_v55  ;;  %v5912_v17 = vmul.f32 %v4525_v31, %v9430_v35 }
 0x101   : > { %9411 = vst [vmem:[#allocation169_spill] sm:$0xff] %v5822_v47  ;;  %9412 = vst [vmem:[#allocation170_spill] sm:$0xff] %v5826_v54  ;;  %v9424_v54 = vld [vmem:[#allocation30_spill] sm:$0xff]  ;;  %v5881_v47 = vmul.f32 %v4525_v31, %v9426_v33  ;;  %v5918_v39 = vmul.f32 %v4525_v31, %v9434_v29  ;;  %v5958_v55 = vmul.f32 %v5769_v9, %v9405_v62 }
 0x102   : > { %9413 = vst [vmem:[#allocation171_spill] sm:$0xff] %v5833_v14  ;;  %9414 = vst [vmem:[#allocation172_spill] sm:$0xff] %v5835_v37  ;;  %v5878_v44 = vmul.f32 %v4525_v31, %v9424_v54 }
 0x103   : > { %9415 = vst [vmem:[#allocation173_spill] sm:$0xff] %v5837_v18  ;;  %9416 = vst [vmem:[#allocation174_spill] sm:$0xff] %v5843_v15  ;;  %v5873_v15 = vmul.f32 %v5600_v41, %v4948_v24  ;;  %v2315_v37 = vrot.slane %v5958_v55, 1  ;;  %v4529_v18 = vpop.permute.xlu1 %4528 }
 0x104   : > { %9417 = vst [vmem:[#allocation175_spill] sm:$0xff] %v5847_v21  ;;  %9418 = vst [vmem:[#allocation176_spill] sm:$0xff] %v5854_v5  ;;  %v5866_v21 = vunpack.i.h.bf16 %v4524_v38  ;;  %v1572_v5 = vmul.f32 %v5600_v41, %v4985_v49  ;;  %v5885_v38 = vmul.f32 %v5583_v6, %v4948_v24 }
 0x105   : > { %9419 = vst [vmem:[#allocation177_spill] sm:$0xff] %v5858_v22  ;;  %9420 = vst [vmem:[#allocation178_spill] sm:$0xff] %v5862_v32  ;;  %v5893_v32 = vmul.f32 %v5868_v36, %v9402_v10  ;;  %v5901_v22 = vmul.f32 %v5769_v9, %v4948_v24  ;;  %v5915_v10 = vadd.f32 %v642_v0, %v558_v56 }
 0x106   : > { %9421 = vst [vmem:[#allocation179_spill] sm:$0xff] %v5864_v43  ;;  %9422 = vst [vmem:[#allocation180_spill] sm:$0xff] %v5868_v36  ;;  %v1624_v19 = vrot.slane %v1572_v5, 2  ;;  %v5909_v3 = vmul.f32 %v5866_v21, %v9430_v35  ;;  %v5921_v5 = vmul.f32 %v4525_v31, %v9435_v27  ;;  %v5934_v56 = vmul.f32 %v5742_v30, %v4985_v49  ;;  %v4629_v27 = vpop.permute.xlu0 %4628 }
 0x107   : > { %9425 = vst [vmem:[#allocation29_spill] sm:$0xff] %v5878_v44  ;;  %9427 = vst [vmem:[#allocation181_spill] sm:$0xff] %v5881_v47  ;;  %v5938_v31 = vmul.f32 %v5769_v9, %v4985_v49  ;;  %v2762_v0 = vmul.f32 %v5742_v30, %v9407_v48  ;;  %v2815_v43 = vrot.slane %v2763_v45, 2  ;;  %v1100_v36 = vrot.slane %v5897_v2, 1  ;;  %v4534_v25 = vpop.permute.xlu1 %4533 }
 0x108   : > { %9428 = vst [vmem:[#allocation182_spill] sm:$0xff] %v5893_v32  ;;  %9429 = vst [vmem:[#allocation183_spill] sm:$0xff] %v5905_v52  ;;  %v9035_v32 = vrot.slane %v5889_v23, 2  ;;  %v5946_v52 = vmul.f32 %v5600_v41, %v9405_v62  ;;  %v1101_v46 = vrot.slane %v5901_v22, 1  ;;  %v3446_v47 = vmul.f32 %v5600_v41, %v9437_v53 }
 0x109   : > { %9431 = vst [vmem:[#allocation184_spill] sm:$0xff] %v5909_v3  ;;  %9432 = vst [vmem:[#allocation185_spill] sm:$0xff] %v5912_v17  ;;  %v5962_v3 = vmul.f32 %v5600_v41, %v9407_v48  ;;  %v2814_v11 = vrot.slane %v2762_v0, 2  ;;  %v5974_v44 = vmul.f32 %v5583_v6, %v9437_v53  ;;  %v1629_v29 = vrot.slane %v5934_v56, 2 }
 0x10a   : > { %9433 = vst [vmem:[#allocation186_spill] sm:$0xff] %v5915_v10  ;;  %v5930_v60 = vsel %vm1365_vm0, %v1624_v19, %v9035_v32  ;;  %v5950_v19 = vmul.f32 %v5583_v6, %v9405_v62  ;;  %v5954_v32 = vmul.f32 %v5742_v30, %v9405_v62  ;;  %v1630_v58 = vrot.slane %v5938_v31, 2 }
 0x10b   : > { %9436 = vst [vmem:[#allocation187_spill] sm:$0xff] %v5930_v60  ;;  %v5966_v60 = vmul.f32 %v5583_v6, %v9407_v48  ;;  %v5979_v12 = vsel %vm1365_vm0, %v2814_v11, %v2815_v43  ;;  %v3450_v45 = vmul.f32 %v5769_v9, %v9437_v53  ;;  %v2309_v2 = vrot.slane %v5946_v52, 1 }
 0x10c   : > { %9438 = vst [vmem:[#allocation188_spill] sm:$0xff] %v5979_v12  ;;  %v2314_v0 = vrot.slane %v5954_v32, 1  ;;  %v2809_v51 = vrot.slane %v5962_v3, 2  ;;  %v3449_v11 = vmul.f32 %v5742_v30, %v9437_v53  ;;  %v4631_v31 = vunpack.i.h.bf16 %v4629_v27 }
 0x10d   : > { %v3494_v12 = vrot.slane %v3446_v47, 1  ;;  %v3946_v52 = vmul.f32 %v5600_v41, %v9439_v4  ;;  %v3950_v32 = vmul.f32 %v5769_v9, %v9439_v4  ;;  %v3500_v22 = vrot.slane %v3450_v45, 1 }
 0x10e   : > { %v1048_v55 = vmul.f32 %v4631_v31, %v4948_v24  ;;  %v1577_v3 = vmul.f32 %v4631_v31, %v4985_v49  ;;  %v2264_v56 = vmul.f32 %v4631_v31, %v9405_v62  ;;  %v2764_v34 = vmul.f32 %v4631_v31, %v9407_v48 }
 0x10f   : > { %v3451_v17 = vmul.f32 %v4631_v31, %v9437_v53  ;;  %v3951_v47 = vmul.f32 %v4631_v31, %v9439_v4  ;;  %v4630_v61 = vunpack.i.l.bf16 %v4629_v27  ;;  %v6004_v41 = vmul.f32 %v5583_v6, %v9439_v4 }
 0x110   : > { %v1103_v14 = vrot.slane %v1048_v55, 1  ;;  %v1632_v9 = vrot.slane %v1577_v3, 2  ;;  %v2317_v45 = vrot.slane %v2264_v56, 1  ;;  %v4000_v20 = vrot.slane %v3950_v32, 2  ;;  %v4635_v3 = vpop.permute.xlu0 %4634 }
 0x111   : > { %v2817_v28 = vrot.slane %v2764_v34, 2  ;;  %v3502_v26 = vrot.slane %v3451_v17, 1  ;;  %v4002_v57 = vrot.slane %v3951_v47, 2  ;;  %v1045_v30 = vmul.f32 %v4630_v61, %v4948_v24 }
 0x112   : > { %v6009_v10 = vsel %vm772_vm1, %v1101_v46, %v1103_v14  ;;  %v6012_v27 = vsel %vm1365_vm0, %v1630_v58, %v1632_v9  ;;  %v6015_v31 = vsel %vm772_vm1, %v2315_v37, %v2317_v45  ;;  %v3499_v9 = vrot.slane %v3449_v11, 1 }
 0x113   : > { %9440 = vst [vmem:[#allocation189_spill] sm:$0xff] %v6009_v10  ;;  %9441 = vst [vmem:[#allocation190_spill] sm:$0xff] %v6012_v27  ;;  %v6018_v55 = vsel %vm1365_vm0, %v2815_v43, %v2817_v28  ;;  %v6021_v34 = vsel %vm772_vm1, %v3500_v22, %v3502_v26  ;;  %v6024_v17 = vsel %vm1365_vm0, %v4000_v20, %v4002_v57  ;;  %v9446_v47 = vrot.slane %v5885_v38, 1  ;;  %v9515_v10 = vld [vmem:[#allocation35_spill] sm:$0xff] }
 0x114   : > { %9442 = vst [vmem:[#allocation191_spill] sm:$0xff] %v6015_v31  ;;  %9443 = vst [vmem:[#allocation192_spill] sm:$0xff] %v6018_v55  ;;  %v1574_v32 = vmul.f32 %v4630_v61, %v4985_v49  ;;  %v9447_v28 = vrot.slane %v5873_v15, 1  ;;  %v6038_v57 = vsel %vm772_vm1, %v1100_v36, %v1101_v46  ;;  %v6041_v43 = vsel %vm1365_vm0, %v1629_v29, %v1630_v58 }
 0x115   : > { %9444 = vst [vmem:[#allocation193_spill] sm:$0xff] %v6021_v34  ;;  %9445 = vst [vmem:[#allocation194_spill] sm:$0xff] %v6024_v17  ;;  %v9451_v45 = vrot.slane %v5950_v19, 1  ;;  %v6049_v56 = vsel %vm772_vm1, %v2314_v0, %v2315_v37  ;;  %v9454_v14 = vrot.slane %v5966_v60, 2  ;;  %v3994_v58 = vrot.slane %v3946_v52, 2 }
 0x116   : > { %v6035_v26 = vsel %vm772_vm1, %v9447_v28, %v9446_v47  ;;  %9449 = vst [vmem:[#allocation196_spill] sm:$0xff] %v6038_v57  ;;  %9450 = vst [vmem:[#allocation197_spill] sm:$0xff] %v6041_v43  ;;  %v9456_v47 = vrot.slane %v5974_v44, 1  ;;  %v3995_v29 = vrot.slane %v6004_v41, 2  ;;  %v3999_v36 = vrot.slane %v3949_v50, 2 }
 0x117   : > { %9448 = vst [vmem:[#allocation195_spill] sm:$0xff] %v6035_v26  ;;  %v6046_v11 = vsel %vm772_vm1, %v2309_v2, %v9451_v45  ;;  %9453 = vst [vmem:[#allocation199_spill] sm:$0xff] %v6049_v56  ;;  %v6054_v15 = vsel %vm1365_vm0, %v2809_v51, %v9454_v14  ;;  %v1098_v28 = vrot.slane %v1045_v30, 1  ;;  %v4637_v2 = vunpack.i.h.bf16 %v4635_v3  ;;  %v6062_v45 = vpop.permute.xlu1 %4538 }
 0x118   : > { %9452 = vst [vmem:[#allocation198_spill] sm:$0xff] %v6046_v11  ;;  %9455 = vst [vmem:[#allocation200_spill] sm:$0xff] %v6054_v15  ;;  %v6059_v46 = vsel %vm772_vm1, %v3494_v12, %v9456_v47  ;;  %v6065_v37 = vsel %vm772_vm1, %v3499_v9, %v3500_v22  ;;  %v1627_v0 = vrot.slane %v1574_v32, 2  ;;  %v6067_v17 = vunpack.i.h.bf16 %v4529_v18 }
 0x119   : > { %9457 = vst [vmem:[#allocation201_spill] sm:$0xff] %v6059_v46  ;;  %9458 = vst [vmem:[#allocation202_spill] sm:$0xff] %v6065_v37  ;;  %v4636_v51 = vunpack.i.l.bf16 %v4635_v3  ;;  %v2261_v14 = vmul.f32 %v4630_v61, %v9405_v62  ;;  %v2761_v12 = vmul.f32 %v4630_v61, %v9407_v48  ;;  %v6071_v47 = vunpack.i.l.bf16 %v4529_v18  ;;  %v9544_v62 = vld [vmem:[#allocation60_spill] sm:$0xff] }
 0x11a   : > { %9459 = vst [vmem:[#allocation203_spill] sm:$0xff] %v6067_v17  ;;  %v6074_v41 = vmul.f32 %v4637_v2, %v9424_v54  ;;  %v3448_v50 = vmul.f32 %v4630_v61, %v9437_v53  ;;  %v3948_v52 = vmul.f32 %v4630_v61, %v9439_v4  ;;  %v6081_v9 = vsel %vm1365_vm0, %v3994_v58, %v3995_v29  ;;  %v9530_v53 = vld [vmem:[#allocation52_spill] sm:$0xff] }
 0x11b   : > { %9460 = vst [vmem:[#allocation204_spill] sm:$0xff] %v6071_v47  ;;  %v640_v22 = vmul.f32 %v4636_v51, %v9423_v7  ;;  %v1193_v30 = vmul.f32 %v4636_v51, %v9424_v54  ;;  %9461 = vst [vmem:[#allocation205_spill] sm:$0xff] %v6081_v9  ;;  %v6084_v32 = vsel %vm1365_vm0, %v3999_v36, %v4000_v20  ;;  %v9463_v18 = vrot.slane %v5885_v38, 1  ;;  %v9469_v38 = vld [vmem:[#allocation31_spill] sm:$0xff]  ;;  %v4545_v31 = vpop.permute.xlu1 %4544 }
 0x11c   : > { %9462 = vst [vmem:[#allocation206_spill] sm:$0xff] %v6084_v32  ;;  %v6091_v34 = vunpack.i.l.bf16 %v4534_v25  ;;  %v9466_v37 = vrot.slane %v5889_v23, 2  ;;  %v9069_v55 = vrot.slane %v6074_v41, 1  ;;  %v2312_v46 = vrot.slane %v2261_v14, 1  ;;  %v9551_v47 = vld [vmem:[#allocation155_spill] sm:$0xff] }
 0x11d   : > { %v6089_v3 = vsel %vm772_vm1, %v9463_v18, %v1098_v28  ;;  %v656_v58 = vadd.f32 %v640_v22, %v5540_v59  ;;  %v1241_v9 = vrot.slane %v1193_v30, 1  ;;  %v2812_v20 = vrot.slane %v2761_v12, 2  ;;  %v9471_v28 = vld [vmem:[#allocation39_spill] sm:$0xff] }
 0x11e   : > { %9464 = vst [vmem:[#allocation207_spill] sm:$0xff] %v6089_v3  ;;  %9465 = vst [vmem:[#allocation208_spill] sm:$0xff] %v6091_v34  ;;  %v6096_v61 = vsel %vm1365_vm0, %v9466_v37, %v1627_v0  ;;  %v6100_v36 = vunpack.i.h.bf16 %v4534_v25  ;;  %v9470_v32 = vrot.slane %v9469_v38, 1  ;;  %v9472_v18 = vrot.slane %v9471_v28, 1  ;;  %v9474_v25 = vld [vmem:[#allocation44_spill] sm:$0xff]  ;;  %v9524_v3 = vld [vmem:[#allocation2_spill] sm:$0xff] }
 0x11f   : > { %9467 = vst [vmem:[#allocation209_spill] sm:$0xff] %v6096_v61  ;;  %v3497_v23 = vrot.slane %v3448_v50, 1  ;;  %v3997_v56 = vrot.slane %v3948_v52, 2  ;;  %v6109_v37 = vmul.f32 %v5261_v8, %v9335_v42  ;;  %v6113_v59 = vmul.f32 %v6091_v34, %v9430_v35  ;;  %v4640_v52 = vpop.permute.xlu0 %4639 }
 0x120   : > { %9468 = vst [vmem:[#allocation210_spill] sm:$0xff] %v6100_v36  ;;  %v775_v15 = vsel %vm772_vm1, %v9472_v18, %v9470_v32  ;;  %v6117_v14 = vmul.f32 %v6091_v34, %v9474_v25  ;;  %v641_v12 = vmul.f32 %v4637_v2, %v9423_v7  ;;  %v6121_v22 = vmul.f32 %v4637_v2, %v9426_v33  ;;  %v9478_v2 = vld [vmem:[#allocation47_spill] sm:$0xff] }
 0x121   : > { %v829_v0 = vadd.f32 %v775_v15, %v656_v58  ;;  %9473 = vst [vmem:[#allocation31_spill] sm:$0xff] %v6113_v59  ;;  %v1243_v8 = vsel %vm772_vm1, %v1241_v9, %v9069_v55  ;;  %v1690_v15 = vmul.f32 %v4636_v51, %v9426_v33  ;;  %v4547_v30 = vunpack.i.h.bf16 %v4545_v31  ;;  %v9476_v58 = vld [vmem:[#allocation56_spill] sm:$0xff] }
 0x122   : > { %9475 = vst [vmem:[#allocation39_spill] sm:$0xff] %v6117_v14  ;;  %v4546_v32 = vunpack.i.l.bf16 %v4545_v31  ;;  %v459_v28 = vadd.f32 %v5426_v1, %v9476_v58  ;;  %v643_v18 = vmul.f32 %v5866_v21, %v9423_v7  ;;  %v9477_v14 = vld [vmem:[#allocation3_spill] sm:$0xff]  ;;  %v9481_v9 = vrot.slane %v5966_v60, 2 }
 0x123   : > { %v985_v50 = vadd.f32 %v5483_v13, %v829_v0  ;;  %v728_v59 = vmul.f32 %v9478_v2, %v9477_v14  ;;  %v9479_v13 = vrot.slane %v5950_v19, 1  ;;  %v729_v1 = vmul.f32 %v4547_v30, %v9477_v14 }
 0x124   : > { %v6142_v51 = vsel %vm1365_vm0, %v9481_v9, %v2812_v20  ;;  %v9483_v58 = vrot.slane %v5974_v44, 1  ;;  %v6152_v11 = vsel %vm1365_vm0, %v3995_v29, %v3997_v56  ;;  %v559_v19 = vadd.f32 %v5830_v40, %v459_v28  ;;  %v9486_v44 = vld [vmem:[#allocation49_spill] sm:$0xff]  ;;  %v9489_v29 = vld [vmem:[#allocation26_spill] sm:$0xff] }
 0x125   : > { %v6137_v0 = vsel %vm772_vm1, %v9479_v13, %v2312_v46  ;;  %9482 = vst [vmem:[#allocation3_spill] sm:$0xff] %v6142_v51  ;;  %v1141_v31 = vadd.f32 %v5547_v16, %v985_v50  ;;  %9485 = vst [vmem:[#allocation212_spill] sm:$0xff] %v6152_v11  ;;  %v779_v46 = vrot.slane %v728_v59, 1  ;;  %v9070_v60 = vrot.slane %v6121_v22, 2  ;;  %v9490_v11 = vld [vmem:[#allocation45_spill] sm:$0xff]  ;;  %v4645_v59 = vpop.permute.xlu0 %4644 }
 0x126   : > { %9480 = vst [vmem:[#allocation56_spill] sm:$0xff] %v6137_v0  ;;  %v6149_v55 = vsel %vm772_vm1, %v9483_v58, %v3497_v23  ;;  %v781_v20 = vrot.slane %v729_v1, 1  ;;  %v726_v9 = vmul.f32 %v4546_v32, %v9477_v14  ;;  %v657_v16 = vadd.f32 %v641_v12, %v5542_v63  ;;  %v9488_v58 = vld [vmem:[#allocation55_spill] sm:$0xff] }
 0x127   : > { %9484 = vst [vmem:[#allocation211_spill] sm:$0xff] %v6149_v55  ;;  %v1297_v13 = vadd.f32 %v1243_v8, %v1141_v31  ;;  %v1738_v50 = vrot.slane %v1690_v15, 2  ;;  %v659_v51 = vadd.f32 %v643_v18, %v559_v19  ;;  %v9487_v0 = vrot.slane %v9486_v44, 1  ;;  %v9491_v8 = vld [vmem:[#allocation186_spill] sm:$0xff]  ;;  %v9497_v18 = vld [vmem:[#allocation109_spill] sm:$0xff] }
 0x128   : > { %v1826_v40 = vmul.f32 %v9490_v11, %v9489_v29  ;;  %v782_v28 = vsel %vm772_vm1, %v779_v46, %v781_v20  ;;  %v6169_v1 = vunpack.i.h.bf16 %v6062_v45  ;;  %v6172_v63 = vunpack.i.l.bf16 %v6062_v45  ;;  %v9546_v29 = vld [vmem:[#allocation59_spill] sm:$0xff] }
 0x129   : > { %v780_v23 = vsel %vm772_vm1, %v9487_v0, %v779_v46  ;;  %v1422_v56 = vadd.f32 %v9488_v58, %v1297_v13  ;;  %v6174_v12 = vunpack.i.h.bf16 %v4640_v52  ;;  %v6176_v15 = vadd.f32 %v782_v28, %v659_v51  ;;  %v9499_v13 = vld [vmem:[#allocation6_spill] sm:$0xff] }
 0x12a   : > { %v6166_v31 = vadd.f32 %v780_v23, %v9491_v8  ;;  %9493 = vst [vmem:[#allocation55_spill] sm:$0xff] %v6169_v1  ;;  %9494 = vst [vmem:[#allocation45_spill] sm:$0xff] %v6172_v63  ;;  %v6179_v19 = vunpack.i.l.bf16 %v4640_v52  ;;  %v776_v11 = vrot.slane %v726_v9, 1  ;;  %v1319_v46 = vmul.f32 %v4546_v32, %v9499_v13  ;;  %v9501_v51 = vld [vmem:[#allocation118_spill] sm:$0xff]  ;;  %v9503_v52 = vld [vmem:[#allocation7_spill] sm:$0xff] }
 0x12b   : > { %9495 = vst [vmem:[#allocation186_spill] sm:$0xff] %v6174_v12  ;;  %9496 = vst [vmem:[#allocation213_spill] sm:$0xff] %v6176_v15  ;;  %v1546_v0 = vadd.f32 %v9497_v18, %v1422_v56  ;;  %v1740_v20 = vsel %vm1365_vm0, %v1738_v50, %v9070_v60  ;;  %v6185_v44 = vunpack.i.h.bf16 %v4645_v59  ;;  %v1322_v45 = vmul.f32 %v4547_v30, %v9499_v13  ;;  %v9507_v18 = vld [vmem:[#allocation9_spill] sm:$0xff] }
 0x12c   : > { %9492 = vst [vmem:[#allocation49_spill] sm:$0xff] %v6166_v31  ;;  %9498 = vst [vmem:[#allocation109_spill] sm:$0xff] %v6179_v19  ;;  %v1321_v23 = vmul.f32 %v9478_v2, %v9499_v13  ;;  %v6191_v28 = vunpack.i.l.bf16 %v4645_v59  ;;  %v2002_v56 = vmul.f32 %v4547_v30, %v9503_v52  ;;  %v2001_v32 = vmul.f32 %v9478_v2, %v9503_v52 }
 0x12d   : > { %9500 = vst [vmem:[#allocation214_spill] sm:$0xff] %v6185_v44  ;;  %v1670_v58 = vadd.f32 %v9501_v51, %v1546_v0  ;;  %v6198_v9 = vmul.f32 %v6172_v63, %v9430_v35  ;;  %v6202_v50 = vmul.f32 %v6172_v63, %v9474_v25  ;;  %v6206_v8 = vmul.f32 %v6179_v19, %v9430_v35 }
 0x12e   : > { %9502 = vst [vmem:[#allocation118_spill] sm:$0xff] %v6191_v28  ;;  %v2510_v59 = vmul.f32 %v4547_v30, %v9507_v18  ;;  %v6211_v51 = vmul.f32 %v6179_v19, %v9474_v25  ;;  %v9509_v60 = vrot.slane %v9469_v38, 1  ;;  %v6218_v27 = vmul.f32 %v6191_v28, %v9430_v35  ;;  %v4650_v30 = vpop.permute.xlu0 %4649  ;;  %v9550_v19 = vld [vmem:[#allocation172_spill] sm:$0xff] }
 0x12f   : > { %9504 = vst [vmem:[#allocation215_spill] sm:$0xff] %v6198_v9  ;;  %9505 = vst [vmem:[#allocation216_spill] sm:$0xff] %v6202_v50  ;;  %v1794_v0 = vadd.f32 %v1740_v20, %v1670_v58  ;;  %v1369_v9 = vrot.slane %v1319_v46, 2  ;;  %v1374_v50 = vrot.slane %v1322_v45, 2  ;;  %v1372_v43 = vrot.slane %v1321_v23, 2  ;;  %v9514_v45 = vld [vmem:[#allocation57_spill] sm:$0xff] }
 0x130   : > { %9506 = vst [vmem:[#allocation217_spill] sm:$0xff] %v6206_v8  ;;  %9508 = vst [vmem:[#allocation218_spill] sm:$0xff] %v6211_v51  ;;  %v777_v55 = vsel %vm772_vm1, %v9509_v60, %v776_v11  ;;  %v2509_v8 = vmul.f32 %v9478_v2, %v9507_v18  ;;  %v6224_v58 = vmul.f32 %v6191_v28, %v9474_v25  ;;  %v2051_v51 = vrot.slane %v2002_v56, 1  ;;  %v9513_v11 = vld [vmem:[#allocation53_spill] sm:$0xff] }
 0x131   : > { %9510 = vst [vmem:[#allocation219_spill] sm:$0xff] %v6218_v27  ;;  %v1842_v20 = vadd.f32 %v1826_v40, %v1794_v0  ;;  %v2049_v38 = vrot.slane %v2001_v32, 1  ;;  %v2559_v61 = vrot.slane %v2510_v59, 2  ;;  %v6226_v60 = vadd.f32 %v777_v55, %v657_v16  ;;  %v9520_v55 = vld [vmem:[#allocation50_spill] sm:$0xff] }
 0x132   : > { %9511 = vst [vmem:[#allocation220_spill] sm:$0xff] %v6224_v58  ;;  %v739_v46 = vmul.f32 %v9513_v11, %v9477_v14  ;;  %v6232_v23 = vmul.f32 %v9514_v45, %v9477_v14  ;;  %v9516_v40 = vrot.slane %v9515_v10, 2  ;;  %v6240_v58 = vunpack.i.h.bf16 %v4650_v30  ;;  %v4576_v10 = vpop.permute.xlu1 %4575 }
 0x133   : > { %9512 = vst [vmem:[#allocation221_spill] sm:$0xff] %v6226_v60  ;;  %v1886_v27 = vadd.f32 %v6109_v37, %v1842_v20  ;;  %v6242_v56 = vunpack.i.l.bf16 %v4650_v30  ;;  %v9521_v16 = vrot.slane %v9520_v55, 2  ;;  %v6250_v59 = vsel %vm1365_vm0, %v1372_v43, %v1374_v50  ;;  %v9525_v20 = vld [vmem:[#allocation171_spill] sm:$0xff] }
 0x134   : > { %v6238_v0 = vsel %vm1365_vm0, %v9516_v40, %v1369_v9  ;;  %9518 = vst [vmem:[#allocation222_spill] sm:$0xff] %v6240_v58  ;;  %9523 = vst [vmem:[#allocation224_spill] sm:$0xff] %v6250_v59  ;;  %v2557_v57 = vrot.slane %v2509_v8, 2  ;;  %v351_v37 = vmul.f32 %v9514_v45, %v9524_v3  ;;  %v9526_v40 = vld [vmem:[#allocation51_spill] sm:$0xff]  ;;  %v6260_v55 = vmul.f32 %v9513_v11, %v9499_v13 }
 0x135   : > { %9517 = vst [vmem:[#allocation35_spill] sm:$0xff] %v6238_v0  ;;  %9519 = vst [vmem:[#allocation223_spill] sm:$0xff] %v6242_v56  ;;  %v6247_v32 = vsel %vm1365_vm0, %v9521_v16, %v1372_v43  ;;  %v1930_v9 = vadd.f32 %v9525_v20, %v1886_v27  ;;  %v9527_v26 = vrot.slane %v9526_v40, 1  ;;  %v6264_v16 = vmul.f32 %v9514_v45, %v9499_v13 }
 0x136   : > { %9522 = vst [vmem:[#allocation50_spill] sm:$0xff] %v6247_v32  ;;  %v798_v43 = vrot.slane %v739_v46, 1  ;;  %v799_v50 = vrot.slane %v6232_v23, 1  ;;  %v6269_v8 = vmul.f32 %v9513_v11, %v9503_v52  ;;  %v6273_v27 = vmul.f32 %v9514_v45, %v9503_v52 }
 0x137   : > { %v2050_v30 = vsel %vm772_vm1, %v9527_v26, %v2049_v38  ;;  %v9528_v26 = vld [vmem:[#allocation185_spill] sm:$0xff]  ;;  %v6277_v40 = vsel %vm772_vm1, %v2049_v38, %v2051_v51  ;;  %v6281_v4 = vmul.f32 %v9513_v11, %v9507_v18  ;;  %v4578_v46 = vunpack.i.h.bf16 %v4576_v10 }
 0x138   : > { %v1974_v20 = vadd.f32 %v9528_v26, %v1930_v9  ;;  %9529 = vst [vmem:[#allocation2_spill] sm:$0xff] %v6277_v40  ;;  %v9531_v23 = vrot.slane %v9530_v53, 2  ;;  %v6289_v2 = vsel %vm1365_vm0, %v2557_v57, %v2559_v61  ;;  %v6293_v59 = vmul.f32 %v6240_v58, %v9474_v25  ;;  %v9536_v53 = vld [vmem:[#allocation12_spill] sm:$0xff]  ;;  %v9537_v26 = vld [vmem:[#allocation98_spill] sm:$0xff] }
 0x139   : > { %9533 = vst [vmem:[#allocation51_spill] sm:$0xff] %v6289_v2  ;;  %v6297_v51 = vmul.f32 %v9514_v45, %v9507_v18  ;;  %v6301_v9 = vmul.f32 %v6242_v56, %v9474_v25  ;;  %v741_v25 = vmul.f32 %v4578_v46, %v9477_v14  ;;  %v6335_v61 = vmul.f32 %v4578_v46, %v9499_v13  ;;  %v9543_v40 = vld [vmem:[#allocation106_spill] sm:$0xff] }
 0x13a   : > { %v6286_v35 = vsel %vm1365_vm0, %v9531_v23, %v2557_v57  ;;  %9534 = vst [vmem:[#allocation185_spill] sm:$0xff] %v6293_v59  ;;  %v2104_v38 = vadd.f32 %v2050_v30, %v1974_v20  ;;  %v449_v23 = vmul.f32 %v9537_v26, %v9536_v53  ;;  %v800_v57 = vsel %vm772_vm1, %v798_v43, %v799_v50  ;;  %v9540_v20 = vld [vmem:[#allocation11_spill] sm:$0xff]  ;;  %v9541_v59 = vld [vmem:[#allocation8_spill] sm:$0xff]  ;;  %v9552_v58 = vld [vmem:[#allocation154_spill] sm:$0xff] }
 0x13b   : > { %9532 = vst [vmem:[#allocation171_spill] sm:$0xff] %v6286_v35  ;;  %9535 = vst [vmem:[#allocation52_spill] sm:$0xff] %v6301_v9  ;;  %v9538_v35 = vld [vmem:[#allocation121_spill] sm:$0xff]  ;;  %v6316_v9 = vmul.f32 %v9513_v11, %v9540_v20  ;;  %v6322_v43 = vmul.f32 %v9514_v45, %v9540_v20  ;;  %v6326_v2 = vmul.f32 %v9513_v11, %v9541_v59  ;;  %v801_v42 = vrot.slane %v741_v25, 1  ;;  %v9548_v26 = vld [vmem:[#allocation19_spill] sm:$0xff] }
 0x13c   : > { %v6311_v32 = vadd.f32 %v9538_v35, %v2104_v38  ;;  %v9542_v35 = vld [vmem:[#allocation58_spill] sm:$0xff]  ;;  %v6332_v30 = vmul.f32 %v9514_v45, %v9541_v59  ;;  %v451_v0 = vmul.f32 %v9543_v40, %v9536_v53  ;;  %v6342_v48 = vmul.f32 %v4578_v46, %v9503_v52  ;;  %v9545_v45 = vld [vmem:[#allocation103_spill] sm:$0xff]  ;;  %v9549_v40 = vld [vmem:[#allocation173_spill] sm:$0xff] }
 0x13d   : > { %v349_v38 = vmul.f32 %v9542_v35, %v9524_v3  ;;  %v6345_v11 = vmul.f32 %v4578_v46, %v9507_v18  ;;  %v6348_v60 = vmul.f32 %v4578_v46, %v9540_v20  ;;  %v464_v49 = vadd.f32 %v9545_v45, %v9544_v62 }
 0x13e   : > { %9539 = vst [vmem:[#allocation12_spill] sm:$0xff] %v6311_v32  ;;  %v6337_v32 = vunpack.i.l.bf16 %v4576_v10  ;;  %v9547_v10 = vld [vmem:[#allocation111_spill] sm:$0xff]  ;;  %v467_v31 = vadd.f32 %v451_v0, %v351_v37  ;;  %v548_v12 = vmul.f32 %v9549_v40, %v9548_v26  ;;  %v549_v17 = vmul.f32 %v9550_v19, %v9548_v26 }
 0x13f   : > { %v465_v24 = vadd.f32 %v449_v23, %v349_v38  ;;  %v466_v15 = vadd.f32 %v9547_v10, %v9546_v29  ;;  %v550_v6 = vmul.f32 %v9551_v47, %v9548_v26  ;;  %v551_v1 = vmul.f32 %v9552_v58, %v9548_v26  ;;  %v9553_v58 = vld [vmem:[#allocation54_spill] sm:$0xff] }
 0x140   : > { %v648_v62 = vmul.f32 %v6091_v34, %v9423_v7  ;;  %v649_v25 = vmul.f32 %v6100_v36, %v9423_v7  ;;  %v650_v29 = vmul.f32 %v6191_v28, %v9423_v7  ;;  %v651_v45 = vmul.f32 %v6185_v44, %v9423_v7  ;;  %v9611_v44 = vld [vmem:[#allocation83_spill] sm:$0xff] }
 0x141   : > { %v564_v0 = vadd.f32 %v548_v12, %v464_v49  ;;  %v565_v37 = vadd.f32 %v549_v17, %v465_v24  ;;  %v566_v23 = vadd.f32 %v550_v6, %v466_v15  ;;  %v567_v38 = vadd.f32 %v551_v1, %v467_v31 }
 0x142   : > { %v802_v10 = vsel %vm772_vm1, %v799_v50, %v801_v42  ;;  %v736_v47 = vmul.f32 %v9553_v58, %v9477_v14  ;;  %v737_v34 = vmul.f32 %v9542_v35, %v9477_v14  ;;  %v738_v36 = vmul.f32 %v6337_v32, %v9477_v14 }
 0x143   : > { %v664_v19 = vadd.f32 %v648_v62, %v564_v0  ;;  %v665_v28 = vadd.f32 %v649_v25, %v565_v37  ;;  %v666_v40 = vadd.f32 %v650_v29, %v566_v23  ;;  %v667_v63 = vadd.f32 %v651_v45, %v567_v38 }
 0x144   : > { %v3709_v49 = vmul.f32 %v4578_v46, %v9541_v59  ;;  %v793_v24 = vrot.slane %v736_v47, 1  ;;  %v794_v6 = vrot.slane %v737_v34, 1  ;;  %v796_v17 = vrot.slane %v738_v36, 1 }
 0x145   : > { %v6378_v31 = vadd.f32 %v800_v57, %v666_v40  ;;  %v6380_v42 = vadd.f32 %v802_v10, %v667_v63  ;;  %v1329_v1 = vmul.f32 %v9553_v58, %v9499_v13  ;;  %v1330_v12 = vmul.f32 %v9542_v35, %v9499_v13 }
 0x146   : > { %v3253_v15 = vrot.slane %v6316_v9, 1  ;;  %v795_v50 = vsel %vm772_vm1, %v793_v24, %v794_v6  ;;  %v797_v62 = vsel %vm772_vm1, %v794_v6, %v796_v17  ;;  %v1331_v34 = vmul.f32 %v6337_v32, %v9499_v13 }
 0x147   : > { %v3254_v47 = vrot.slane %v6322_v43, 1  ;;  %v3761_v36 = vrot.slane %v6326_v2, 2  ;;  %v6393_v63 = vadd.f32 %v795_v50, %v664_v19  ;;  %v6395_v40 = vadd.f32 %v797_v62, %v665_v28 }
 0x148   : > { %v3762_v46 = vrot.slane %v6332_v30, 2  ;;  %v1394_v57 = vrot.slane %v6335_v61, 2  ;;  %v2071_v9 = vrot.slane %v6342_v48, 1  ;;  %v2579_v25 = vrot.slane %v6345_v11, 2 }
 0x149   : > { %v3256_v29 = vrot.slane %v6348_v60, 1  ;;  %v3764_v45 = vrot.slane %v3709_v49, 2  ;;  %v1386_v0 = vrot.slane %v1329_v1, 2  ;;  %v1387_v37 = vrot.slane %v1330_v12, 2 }
 0x14a   : > { %v9554_v43 = vrot.slane %v6264_v16, 2  ;;  %v9555_v2 = vrot.slane %v6260_v55, 2  ;;  %v1389_v28 = vrot.slane %v1331_v34, 2  ;;  %v2009_v61 = vmul.f32 %v9553_v58, %v9503_v52 }
 0x14b   : > { %v2010_v48 = vmul.f32 %v9542_v35, %v9503_v52  ;;  %v9557_v11 = vrot.slane %v6273_v27, 1  ;;  %v9558_v60 = vrot.slane %v6269_v8, 1  ;;  %v9560_v23 = vrot.slane %v6297_v51, 2  ;;  %v4665_v27 = vpop.permute.xlu0 %4664 }
 0x14c   : > { %v6407_v19 = vsel %vm1365_vm0, %v9555_v2, %v9554_v43  ;;  %v9561_v55 = vrot.slane %v6281_v4, 2  ;;  %v6428_v10 = vsel %vm772_vm1, %v3253_v15, %v3254_v47  ;;  %v2011_v49 = vmul.f32 %v6337_v32, %v9503_v52 }
 0x14d   : > { %9556 = vst [vmem:[#allocation121_spill] sm:$0xff] %v6407_v19  ;;  %v6418_v30 = vsel %vm772_vm1, %v9558_v60, %v9557_v11  ;;  %9563 = vst [vmem:[#allocation59_spill] sm:$0xff] %v6428_v10  ;;  %v6433_v24 = vsel %vm1365_vm0, %v3761_v36, %v3762_v46  ;;  %v9565_v8 = vmov %v9554_v43  ;;  %v9567_v17 = vmov %v9557_v11  ;;  %v9576_v60 = vld [vmem:[#allocation34_spill] sm:$0xff] }
 0x14e   : > { %9559 = vst [vmem:[#allocation60_spill] sm:$0xff] %v6418_v30  ;;  %v6425_v38 = vsel %vm1365_vm0, %v9561_v55, %v9560_v23  ;;  %9564 = vst [vmem:[#allocation111_spill] sm:$0xff] %v6433_v24  ;;  %v6438_v6 = vsel %vm1365_vm0, %v9565_v8, %v1394_v57  ;;  %v6443_v4 = vsel %vm772_vm1, %v9567_v17, %v2071_v9  ;;  %v9569_v12 = vmov %v9560_v23  ;;  %v9577_v55 = vld [vmem:[#allocation36_spill] sm:$0xff] }
 0x14f   : > { %9562 = vst [vmem:[#allocation103_spill] sm:$0xff] %v6425_v38  ;;  %9566 = vst [vmem:[#allocation19_spill] sm:$0xff] %v6438_v6  ;;  %v2517_v1 = vmul.f32 %v9553_v58, %v9507_v18  ;;  %v6450_v15 = vsel %vm1365_vm0, %v9569_v12, %v2579_v25  ;;  %v6453_v50 = vsel %vm772_vm1, %v3254_v47, %v3256_v29  ;;  %v2063_v36 = vrot.slane %v2009_v61, 1 }
 0x150   : > { %9568 = vst [vmem:[#allocation225_spill] sm:$0xff] %v6443_v4  ;;  %9570 = vst [vmem:[#allocation226_spill] sm:$0xff] %v6450_v15  ;;  %v6456_v16 = vsel %vm1365_vm0, %v3762_v46, %v3764_v45  ;;  %v6459_v62 = vsel %vm1365_vm0, %v1386_v0, %v1387_v37  ;;  %v6462_v34 = vsel %vm1365_vm0, %v1387_v37, %v1389_v28  ;;  %v2064_v57 = vrot.slane %v2010_v48, 1 }
 0x151   : > { %9571 = vst [vmem:[#allocation227_spill] sm:$0xff] %v6453_v50  ;;  %9572 = vst [vmem:[#allocation228_spill] sm:$0xff] %v6456_v16  ;;  %v2518_v51 = vmul.f32 %v9542_v35, %v9507_v18  ;;  %v2066_v9 = vrot.slane %v2011_v49, 1  ;;  %v2519_v47 = vmul.f32 %v6337_v32, %v9507_v18  ;;  %v3196_v46 = vmul.f32 %v9553_v58, %v9540_v20 }
 0x152   : > { %9573 = vst [vmem:[#allocation229_spill] sm:$0xff] %v6459_v62  ;;  %9574 = vst [vmem:[#allocation230_spill] sm:$0xff] %v6462_v34  ;;  %v3197_v25 = vmul.f32 %v9542_v35, %v9540_v20  ;;  %v2571_v29 = vrot.slane %v2517_v1, 2  ;;  %v3198_v45 = vmul.f32 %v6337_v32, %v9540_v20  ;;  %v3704_v0 = vmul.f32 %v9553_v58, %v9541_v59 }
 0x153   : > { %v4667_v37 = vunpack.i.h.bf16 %v4665_v27  ;;  %v3705_v43 = vmul.f32 %v9542_v35, %v9541_v59  ;;  %v3706_v2 = vmul.f32 %v6337_v32, %v9541_v59  ;;  %v1197_v28 = vmul.f32 %v5866_v21, %v9424_v54 }
 0x154   : > { %v1694_v61 = vmul.f32 %v5866_v21, %v9426_v33  ;;  %v6485_v48 = vsel %vm772_vm1, %v2063_v36, %v2064_v57  ;;  %v2572_v11 = vrot.slane %v2518_v51, 2  ;;  %v2385_v23 = vmul.f32 %v5866_v21, %v9576_v60 }
 0x155   : > { %9575 = vst [vmem:[#allocation231_spill] sm:$0xff] %v6485_v48  ;;  %v2881_v49 = vmul.f32 %v5866_v21, %v9577_v55  ;;  %v2574_v8 = vrot.slane %v2519_v47, 2  ;;  %v3248_v17 = vrot.slane %v3196_v46, 1  ;;  %v3249_v1 = vrot.slane %v3197_v25, 1 }
 0x156   : > { %v1198_v32 = vmul.f32 %v4667_v37, %v9424_v54  ;;  %v6493_v12 = vsel %vm772_vm1, %v2064_v57, %v2066_v9  ;;  %v3251_v16 = vrot.slane %v3198_v45, 1  ;;  %v3756_v24 = vrot.slane %v3704_v0, 2 }
 0x157   : > { %9578 = vst [vmem:[#allocation232_spill] sm:$0xff] %v6493_v12  ;;  %v4666_v50 = vunpack.i.l.bf16 %v4665_v27  ;;  %v3757_v36 = vrot.slane %v3705_v43, 2  ;;  %v3759_v10 = vrot.slane %v3706_v2, 2  ;;  %v1247_v51 = vrot.slane %v1197_v28, 1  ;;  %v9585_v2 = vld [vmem:[#allocation29_spill] sm:$0xff] }
 0x158   : > { %v1744_v15 = vrot.slane %v1694_v61, 2  ;;  %v2433_v38 = vrot.slane %v2385_v23, 1  ;;  %v2929_v4 = vrot.slane %v2881_v49, 2  ;;  %v1695_v30 = vmul.f32 %v4667_v37, %v9426_v33 }
 0x159   : > { %v2386_v21 = vmul.f32 %v4667_v37, %v9576_v60  ;;  %v6498_v47 = vsel %vm1365_vm0, %v2571_v29, %v2572_v11  ;;  %v6501_v46 = vsel %vm1365_vm0, %v2572_v11, %v2574_v8  ;;  %v6504_v57 = vsel %vm772_vm1, %v3248_v17, %v3249_v1  ;;  %v9587_v11 = vld [vmem:[#allocation181_spill] sm:$0xff] }
 0x15a   : > { %9579 = vst [vmem:[#allocation233_spill] sm:$0xff] %v6498_v47  ;;  %9580 = vst [vmem:[#allocation234_spill] sm:$0xff] %v6501_v46  ;;  %v1249_v27 = vrot.slane %v1198_v32, 1  ;;  %v6507_v9 = vsel %vm772_vm1, %v3249_v1, %v3251_v16  ;;  %v2882_v25 = vmul.f32 %v4667_v37, %v9577_v55  ;;  %v1195_v45 = vmul.f32 %v4666_v50, %v9424_v54  ;;  %v9592_v1 = vld [vmem:[#allocation61_spill] sm:$0xff] }
 0x15b   : > { %9581 = vst [vmem:[#allocation235_spill] sm:$0xff] %v6504_v57  ;;  %9582 = vst [vmem:[#allocation236_spill] sm:$0xff] %v6507_v9  ;;  %v1692_v0 = vmul.f32 %v4666_v50, %v9426_v33  ;;  %v6513_v43 = vsel %vm1365_vm0, %v3756_v24, %v3757_v36  ;;  %v6516_v29 = vsel %vm1365_vm0, %v3757_v36, %v3759_v10  ;;  %v9586_v28 = vrot.slane %v9585_v2, 1  ;;  %v9593_v36 = vld [vmem:[#allocation62_spill] sm:$0xff] }
 0x15c   : > { %9583 = vst [vmem:[#allocation237_spill] sm:$0xff] %v6513_v43  ;;  %9584 = vst [vmem:[#allocation238_spill] sm:$0xff] %v6516_v29  ;;  %v9588_v16 = vrot.slane %v9587_v11, 2  ;;  %v9589_v37 = vrot.slane %v5918_v39, 1  ;;  %v9590_v24 = vrot.slane %v5921_v5, 2  ;;  %v1746_v49 = vrot.slane %v1695_v30, 2  ;;  %v4581_v5 = vpop.permute.xlu1 %4580 }
 0x15d   : > { %v6521_v61 = vsel %vm772_vm1, %v9586_v28, %v1247_v51  ;;  %v2435_v8 = vrot.slane %v2386_v21, 1  ;;  %v6539_v17 = vsel %vm772_vm1, %v1247_v51, %v1249_v27  ;;  %v6543_v32 = vmul.f32 %v9592_v1, %v9524_v3  ;;  %v9594_v30 = vld [vmem:[#allocation105_spill] sm:$0xff] }
 0x15e   : > { %v6526_v23 = vsel %vm1365_vm0, %v9588_v16, %v1744_v15  ;;  %v6531_v50 = vsel %vm772_vm1, %v9589_v37, %v2433_v38  ;;  %v6536_v10 = vsel %vm1365_vm0, %v9590_v24, %v2929_v4  ;;  %v745_v39 = vmul.f32 %v9593_v36, %v9477_v14 }
 0x15f   : > { %9591 = vst [vmem:[#allocation29_spill] sm:$0xff] %v6536_v10  ;;  %v6549_v2 = vmul.f32 %v9592_v1, %v9477_v14  ;;  %v2931_v28 = vrot.slane %v2882_v25, 2  ;;  %v1244_v11 = vrot.slane %v1195_v45, 1  ;;  %v1741_v16 = vrot.slane %v1692_v0, 2 }
 0x160   : > { %v453_v21 = vmul.f32 %v9594_v30, %v9536_v53  ;;  %v6555_v51 = vmul.f32 %v9592_v1, %v9499_v13  ;;  %v3205_v27 = vmul.f32 %v9593_v36, %v9540_v20  ;;  %v6561_v37 = vmul.f32 %v9592_v1, %v9540_v20  ;;  %v9613_v30 = vld [vmem:[#allocation68_spill] sm:$0xff] }
 0x161   : > { %v3713_v24 = vmul.f32 %v9593_v36, %v9541_v59  ;;  %v6566_v25 = vsel %vm1365_vm0, %v1744_v15, %v1746_v49  ;;  %v6569_v45 = vsel %vm772_vm1, %v2433_v38, %v2435_v8  ;;  %v3714_v0 = vmul.f32 %v9592_v1, %v9541_v59 }
 0x162   : > { %9595 = vst [vmem:[#allocation181_spill] sm:$0xff] %v6555_v51  ;;  %9596 = vst [vmem:[#allocation239_spill] sm:$0xff] %v6566_v25  ;;  %v4583_v29 = vunpack.i.h.bf16 %v4581_v5  ;;  %v808_v43 = vrot.slane %v745_v39, 1  ;;  %v809_v9 = vrot.slane %v6549_v2, 1  ;;  %v6576_v57 = vmul.f32 %v9593_v36, %v9503_v52 }
 0x163   : > { %9597 = vst [vmem:[#allocation240_spill] sm:$0xff] %v6569_v45  ;;  %v6580_v46 = vmul.f32 %v9592_v1, %v9503_v52  ;;  %v6583_v15 = vsel %vm1365_vm0, %v2929_v4, %v2931_v28  ;;  %v9601_v38 = vrot.slane %v6074_v41, 1  ;;  %v9602_v8 = vrot.slane %v6121_v22, 2 }
 0x164   : > { %9598 = vst [vmem:[#allocation241_spill] sm:$0xff] %v6576_v57  ;;  %9600 = vst [vmem:[#allocation243_spill] sm:$0xff] %v6583_v15  ;;  %v6597_v2 = vmul.f32 %v9592_v1, %v9507_v18  ;;  %v3263_v12 = vrot.slane %v3205_v27, 1  ;;  %v3264_v4 = vrot.slane %v6561_v37, 1  ;;  %v3771_v28 = vrot.slane %v3713_v24, 2  ;;  %v9609_v57 = vld [vmem:[#allocation163_spill] sm:$0xff] }
 0x165   : > { %9599 = vst [vmem:[#allocation242_spill] sm:$0xff] %v6580_v46  ;;  %v6588_v49 = vsel %vm772_vm1, %v9601_v38, %v1244_v11  ;;  %v6593_v39 = vsel %vm1365_vm0, %v9602_v8, %v1741_v16  ;;  %v3772_v48 = vrot.slane %v3714_v0, 2  ;;  %v747_v41 = vmul.f32 %v4583_v29, %v9477_v14  ;;  %v9606_v0 = vld [vmem:[#allocation64_spill] sm:$0xff]  ;;  %v9608_v38 = vld [vmem:[#allocation107_spill] sm:$0xff] }
 0x166   : > { %9603 = vst [vmem:[#allocation244_spill] sm:$0xff] %v6597_v2  ;;  %v6603_v11 = vmul.f32 %v4583_v29, %v9499_v13  ;;  %v2020_v22 = vmul.f32 %v4583_v29, %v9503_v52  ;;  %v810_v16 = vsel %vm772_vm1, %v808_v43, %v809_v9  ;;  %v6610_v47 = vmul.f32 %v4583_v29, %v9507_v18 }
 0x167   : > { %v3207_v37 = vmul.f32 %v4583_v29, %v9540_v20  ;;  %v6614_v24 = vunpack.i.l.bf16 %v4581_v5  ;;  %v353_v51 = vmul.f32 %v9606_v0, %v9524_v3  ;;  %v6619_v6 = vsel %vm772_vm1, %v3263_v12, %v3264_v4  ;;  %v9612_v12 = vld [vmem:[#allocation110_spill] sm:$0xff] }
 0x168   : > { %9604 = vst [vmem:[#allocation245_spill] sm:$0xff] %v6603_v11  ;;  %9605 = vst [vmem:[#allocation246_spill] sm:$0xff] %v6610_v47  ;;  %v3715_v43 = vmul.f32 %v4583_v29, %v9541_v59  ;;  %v455_v8 = vmul.f32 %v9608_v38, %v9536_v53  ;;  %v554_v19 = vmul.f32 %v9609_v57, %v9548_v26  ;;  %v811_v2 = vrot.slane %v747_v41, 1  ;;  %v9614_v29 = vld [vmem:[#allocation115_spill] sm:$0xff]  ;;  %v9615_v57 = vld [vmem:[#allocation180_spill] sm:$0xff] }
 0x169   : > { %9607 = vst [vmem:[#allocation247_spill] sm:$0xff] %v6619_v6  ;;  %v6627_v27 = vsel %vm1365_vm0, %v3771_v28, %v3772_v48  ;;  %v2081_v34 = vrot.slane %v2020_v22, 1  ;;  %v468_v6 = vadd.f32 %v9612_v12, %v9611_v44  ;;  %v470_v35 = vadd.f32 %v9614_v29, %v9613_v30  ;;  %v9616_v41 = vld [vmem:[#allocation179_spill] sm:$0xff]  ;;  %v9617_v44 = vld [vmem:[#allocation162_spill] sm:$0xff]  ;;  %v9618_v30 = vld [vmem:[#allocation45_spill] sm:$0xff] }
 0x16a   : > { %9610 = vst [vmem:[#allocation248_spill] sm:$0xff] %v6627_v27  ;;  %v654_v58 = vmul.f32 %v6242_v56, %v9423_v7  ;;  %v3266_v38 = vrot.slane %v3207_v37, 1  ;;  %v552_v28 = vmul.f32 %v9615_v57, %v9548_v26  ;;  %v553_v27 = vmul.f32 %v9616_v41, %v9548_v26  ;;  %v9619_v37 = vld [vmem:[#allocation55_spill] sm:$0xff]  ;;  %v9620_v57 = vld [vmem:[#allocation65_spill] sm:$0xff] }
 0x16b   : > { %v744_v22 = vmul.f32 %v6614_v24, %v9477_v14  ;;  %v3774_v62 = vrot.slane %v3715_v43, 2  ;;  %v469_v5 = vadd.f32 %v453_v21, %v353_v51  ;;  %v555_v12 = vmul.f32 %v9617_v44, %v9548_v26  ;;  %v9621_v51 = vld [vmem:[#allocation222_spill] sm:$0xff] }
 0x16c   : > { %v570_v47 = vadd.f32 %v554_v19, %v470_v35  ;;  %v652_v29 = vmul.f32 %v9618_v30, %v9423_v7  ;;  %v653_v11 = vmul.f32 %v9619_v37, %v9423_v7  ;;  %v742_v1 = vmul.f32 %v9620_v57, %v9477_v14 }
 0x16d   : > { %v743_v41 = vmul.f32 %v9606_v0, %v9477_v14  ;;  %v812_v36 = vsel %vm772_vm1, %v809_v9, %v811_v2  ;;  %v471_v21 = vadd.f32 %v455_v8, %v6543_v32  ;;  %v655_v43 = vmul.f32 %v9621_v51, %v9423_v7 }
 0x16e   : > { %v670_v35 = vadd.f32 %v654_v58, %v570_v47  ;;  %v9622_v19 = vrot.slane %v6580_v46, 1  ;;  %v568_v15 = vadd.f32 %v552_v28, %v468_v6  ;;  %v569_v45 = vadd.f32 %v553_v27, %v469_v5 }
 0x16f   : > { %v806_v10 = vrot.slane %v744_v22, 1  ;;  %v6663_v25 = vsel %vm772_vm1, %v3264_v4, %v3266_v38  ;;  %v6666_v14 = vsel %vm1365_vm0, %v3772_v48, %v3774_v62  ;;  %v571_v9 = vadd.f32 %v555_v12, %v471_v21 }
 0x170   : > { %v6660_v44 = vsel %vm772_vm1, %v9622_v19, %v2081_v34  ;;  %9624 = vst [vmem:[#allocation110_spill] sm:$0xff] %v6663_v25  ;;  %9625 = vst [vmem:[#allocation68_spill] sm:$0xff] %v6666_v14  ;;  %v1335_v32 = vmul.f32 %v9620_v57, %v9499_v13  ;;  %v668_v2 = vadd.f32 %v652_v29, %v568_v15  ;;  %v803_v47 = vrot.slane %v742_v1, 1 }
 0x171   : > { %9623 = vst [vmem:[#allocation83_spill] sm:$0xff] %v6660_v44  ;;  %v669_v58 = vadd.f32 %v653_v11, %v569_v45  ;;  %v804_v8 = vrot.slane %v743_v41, 1  ;;  %v671_v46 = vadd.f32 %v655_v43, %v571_v9  ;;  %v6670_v34 = vadd.f32 %v810_v16, %v670_v35  ;;  %v4592_v44 = vpop.permute.xlu1 %4591 }
 0x172   : > { %v1336_v6 = vmul.f32 %v9606_v0, %v9499_v13  ;;  %v1337_v4 = vmul.f32 %v6614_v24, %v9499_v13  ;;  %v2015_v48 = vmul.f32 %v9620_v57, %v9503_v52  ;;  %v2016_v15 = vmul.f32 %v9606_v0, %v9503_v52 }
 0x173   : > { %9626 = vst [vmem:[#allocation115_spill] sm:$0xff] %v6670_v34  ;;  %v807_v62 = vsel %vm772_vm1, %v804_v8, %v806_v10  ;;  %v2017_v1 = vmul.f32 %v6614_v24, %v9503_v52  ;;  %v6683_v45 = vadd.f32 %v812_v36, %v671_v46  ;;  %v1396_v11 = vrot.slane %v1335_v32, 2 }
 0x174   : > { %v2523_v16 = vmul.f32 %v9620_v57, %v9507_v18  ;;  %v2524_v38 = vmul.f32 %v9606_v0, %v9507_v18  ;;  %v805_v10 = vsel %vm772_vm1, %v803_v47, %v804_v8  ;;  %v2525_v27 = vmul.f32 %v6614_v24, %v9507_v18 }
 0x175   : > { %9627 = vst [vmem:[#allocation45_spill] sm:$0xff] %v6683_v45  ;;  %v3202_v5 = vmul.f32 %v9620_v57, %v9540_v20  ;;  %v3203_v28 = vmul.f32 %v9606_v0, %v9540_v20  ;;  %v6696_v46 = vadd.f32 %v805_v10, %v668_v2  ;;  %v6698_v36 = vadd.f32 %v807_v62, %v669_v58 }
 0x176   : > { %v1397_v41 = vrot.slane %v1336_v6, 2  ;;  %v3204_v22 = vmul.f32 %v6614_v24, %v9540_v20  ;;  %v1399_v12 = vrot.slane %v1337_v4, 2  ;;  %v2073_v29 = vrot.slane %v2015_v48, 1 }
 0x177   : > { %v2074_v21 = vrot.slane %v2016_v15, 1  ;;  %v2076_v43 = vrot.slane %v2017_v1, 1  ;;  %v2581_v35 = vrot.slane %v2523_v16, 2  ;;  %v2582_v19 = vrot.slane %v2524_v38, 2 }
 0x178   : > { %v3710_v9 = vmul.f32 %v9620_v57, %v9541_v59  ;;  %v3711_v32 = vmul.f32 %v9606_v0, %v9541_v59  ;;  %v2584_v2 = vrot.slane %v2525_v27, 2  ;;  %v3258_v47 = vrot.slane %v3202_v5, 1  ;;  %v4681_v5 = vpop.permute.xlu0 %4680 }
 0x179   : > { %v3259_v58 = vrot.slane %v3203_v28, 1  ;;  %v3712_v8 = vmul.f32 %v6614_v24, %v9541_v59  ;;  %v6709_v6 = vsel %vm1365_vm0, %v1396_v11, %v1397_v41  ;;  %v3261_v4 = vrot.slane %v3204_v22, 1 }
 0x17a   : > { %9628 = vst [vmem:[#allocation249_spill] sm:$0xff] %v6709_v6  ;;  %v1211_v62 = vmul.f32 %v9618_v30, %v9424_v54  ;;  %v6715_v48 = vmul.f32 %v9619_v37, %v9424_v54  ;;  %v6718_v15 = vsel %vm1365_vm0, %v1397_v41, %v1399_v12  ;;  %v6721_v1 = vsel %vm772_vm1, %v2073_v29, %v2074_v21 }
 0x17b   : > { %9629 = vst [vmem:[#allocation250_spill] sm:$0xff] %v6718_v15  ;;  %9630 = vst [vmem:[#allocation251_spill] sm:$0xff] %v6721_v1  ;;  %v1708_v24 = vmul.f32 %v9618_v30, %v9426_v33  ;;  %v6727_v11 = vmul.f32 %v9619_v37, %v9426_v33  ;;  %v6730_v16 = vsel %vm772_vm1, %v2074_v21, %v2076_v43  ;;  %v3766_v10 = vrot.slane %v3710_v9, 2 }
 0x17c   : > { %9631 = vst [vmem:[#allocation252_spill] sm:$0xff] %v6730_v16  ;;  %v6733_v38 = vsel %vm1365_vm0, %v2581_v35, %v2582_v19  ;;  %v3767_v27 = vrot.slane %v3711_v32, 2  ;;  %v6736_v28 = vsel %vm1365_vm0, %v2582_v19, %v2584_v2  ;;  %v6739_v41 = vsel %vm772_vm1, %v3258_v47, %v3259_v58 }
 0x17d   : > { %9632 = vst [vmem:[#allocation253_spill] sm:$0xff] %v6733_v38  ;;  %9633 = vst [vmem:[#allocation254_spill] sm:$0xff] %v6736_v28  ;;  %v3769_v22 = vrot.slane %v3712_v8, 2  ;;  %v2399_v12 = vmul.f32 %v9618_v30, %v9576_v60  ;;  %v6744_v29 = vsel %vm772_vm1, %v3259_v58, %v3261_v4  ;;  %v1271_v21 = vrot.slane %v1211_v62, 1  ;;  %v9638_v4 = vld [vmem:[#allocation37_spill] sm:$0xff] }
 0x17e   : > { %9634 = vst [vmem:[#allocation255_spill] sm:$0xff] %v6739_v41  ;;  %9635 = vst [vmem:[#allocation256_spill] sm:$0xff] %v6744_v29  ;;  %v1272_v43 = vrot.slane %v6715_v48, 1  ;;  %v2400_v35 = vmul.f32 %v9619_v37, %v9576_v60  ;;  %v1768_v9 = vrot.slane %v1708_v24, 2  ;;  %v1769_v19 = vrot.slane %v6727_v11, 2 }
 0x17f   : > { %v6750_v32 = vunpack.i.h.bf16 %v4681_v5  ;;  %v4682_v2 = vunpack.i.l.bf16 %v4681_v5  ;;  %v6753_v47 = vsel %vm1365_vm0, %v3766_v10, %v3767_v27  ;;  %v2895_v8 = vmul.f32 %v9618_v30, %v9577_v55  ;;  %v9640_v10 = vld [vmem:[#allocation41_spill] sm:$0xff] }
 0x180   : > { %9637 = vst [vmem:[#allocation258_spill] sm:$0xff] %v6753_v47  ;;  %v6759_v58 = vmul.f32 %v9619_v37, %v9577_v55  ;;  %v3586_v62 = vmul.f32 %v9618_v30, %v9638_v4  ;;  %v6764_v48 = vsel %vm1365_vm0, %v3767_v27, %v3769_v22  ;;  %v2457_v24 = vrot.slane %v2399_v12, 1 }
 0x181   : > { %9636 = vst [vmem:[#allocation257_spill] sm:$0xff] %v6750_v32  ;;  %9639 = vst [vmem:[#allocation259_spill] sm:$0xff] %v6764_v48  ;;  %v6768_v11 = vmul.f32 %v9619_v37, %v9638_v4  ;;  %v4082_v5 = vmul.f32 %v9618_v30, %v9640_v10  ;;  %v6773_v59 = vsel %vm772_vm1, %v1271_v21, %v1272_v43  ;;  %v2458_v20 = vrot.slane %v2400_v35, 1 }
 0x182   : > { %v6777_v52 = vmul.f32 %v9619_v37, %v9640_v10  ;;  %v1216_v27 = vmul.f32 %v6750_v32, %v9424_v54  ;;  %v6782_v22 = vsel %vm1365_vm0, %v1768_v9, %v1769_v19  ;;  %v2404_v12 = vmul.f32 %v6750_v32, %v9576_v60 }
 0x183   : > { %9641 = vst [vmem:[#allocation260_spill] sm:$0xff] %v6782_v22  ;;  %v1213_v18 = vmul.f32 %v4682_v2, %v9424_v54  ;;  %v6789_v30 = vmul.f32 %v9621_v51, %v9576_v60  ;;  %v2953_v21 = vrot.slane %v2895_v8, 2  ;;  %v2954_v35 = vrot.slane %v6759_v58, 2 }
 0x184   : > { %v3642_v34 = vrot.slane %v3586_v62, 1  ;;  %v6794_v13 = vmul.f32 %v9621_v51, %v9424_v54  ;;  %v3643_v9 = vrot.slane %v6768_v11, 1  ;;  %v4138_v14 = vrot.slane %v4082_v5, 2 }
 0x185   : > { %9642 = vst [vmem:[#allocation261_spill] sm:$0xff] %v6789_v30  ;;  %v1710_v48 = vmul.f32 %v4682_v2, %v9426_v33  ;;  %v2401_v47 = vmul.f32 %v4682_v2, %v9576_v60  ;;  %v1279_v29 = vrot.slane %v1216_v27, 1  ;;  %v6802_v8 = vmul.f32 %v6750_v32, %v9638_v4  ;;  %v9667_v33 = vld [vmem:[#allocation46_spill] sm:$0xff] }
 0x186   : > { %9643 = vst [vmem:[#allocation262_spill] sm:$0xff] %v6794_v13  ;;  %v6806_v58 = vmul.f32 %v6750_v32, %v9640_v10  ;;  %v2465_v62 = vrot.slane %v2404_v12, 1  ;;  %v1274_v41 = vrot.slane %v1213_v18, 1  ;;  %v2897_v5 = vmul.f32 %v4682_v2, %v9577_v55 }
 0x187   : > { %v6811_v28 = vsel %vm772_vm1, %v2457_v24, %v2458_v20  ;;  %v3588_v27 = vmul.f32 %v4682_v2, %v9638_v4  ;;  %v3589_v38 = vmul.f32 %v6242_v56, %v9638_v4  ;;  %v6818_v16 = vsel %vm1365_vm0, %v2953_v21, %v2954_v35 }
 0x188   : > { %9644 = vst [vmem:[#allocation263_spill] sm:$0xff] %v6811_v28  ;;  %9645 = vst [vmem:[#allocation264_spill] sm:$0xff] %v6818_v16  ;;  %v6821_v12 = vsel %vm772_vm1, %v3642_v34, %v3643_v9  ;;  %v1771_v18 = vrot.slane %v1710_v48, 2  ;;  %v2460_v11 = vrot.slane %v2401_v47, 1  ;;  %v9647_v32 = vrot.slane %v6777_v52, 2  ;;  %v9661_v16 = vld [vmem:[#allocation95_spill] sm:$0xff] }
 0x189   : > { %9646 = vst [vmem:[#allocation265_spill] sm:$0xff] %v6821_v12  ;;  %v3650_v25 = vrot.slane %v6802_v8, 1  ;;  %v4146_v28 = vrot.slane %v6806_v58, 2  ;;  %v9649_v1 = vrot.slane %v6794_v13, 1  ;;  %v6836_v21 = vsel %vm772_vm1, %v1272_v43, %v1274_v41  ;;  %v9654_v58 = vld [vmem:[#allocation38_spill] sm:$0xff]  ;;  %v9660_v12 = vld [vmem:[#allocation13_spill] sm:$0xff] }
 0x18a   : > { %v6826_v24 = vsel %vm1365_vm0, %v4138_v14, %v9647_v32  ;;  %9651 = vst [vmem:[#allocation268_spill] sm:$0xff] %v6836_v21  ;;  %v9652_v34 = vrot.slane %v6789_v30, 1  ;;  %v2956_v48 = vrot.slane %v2897_v5, 2  ;;  %v3590_v14 = vmul.f32 %v9621_v51, %v9638_v4  ;;  %v9658_v5 = vld [vmem:[#allocation42_spill] sm:$0xff] }
 0x18b   : > { %9648 = vst [vmem:[#allocation266_spill] sm:$0xff] %v6826_v24  ;;  %v6833_v37 = vsel %vm772_vm1, %v9649_v1, %v1279_v29  ;;  %v3645_v32 = vrot.slane %v3588_v27, 1  ;;  %v3647_v8 = vrot.slane %v3589_v38, 1  ;;  %v345_v13 = vmul.f32 %v9654_v58, %v9524_v3  ;;  %v9655_v1 = vld [vmem:[#allocation94_spill] sm:$0xff] }
 0x18c   : > { %9650 = vst [vmem:[#allocation267_spill] sm:$0xff] %v6833_v37  ;;  %v6841_v47 = vsel %vm772_vm1, %v9652_v34, %v2465_v62  ;;  %v445_v29 = vmul.f32 %v9655_v1, %v9536_v53  ;;  %v6850_v41 = vsel %vm1365_vm0, %v1769_v19, %v1771_v18  ;;  %v6853_v43 = vsel %vm772_vm1, %v2458_v20, %v2460_v11  ;;  %v9659_v34 = vld [vmem:[#allocation101_spill] sm:$0xff]  ;;  %v9662_v19 = vld [vmem:[#allocation4_spill] sm:$0xff]  ;;  %v9663_v11 = vld [vmem:[#allocation14_spill] sm:$0xff] }
 0x18d   : > { %9653 = vst [vmem:[#allocation269_spill] sm:$0xff] %v6841_v47  ;;  %9656 = vst [vmem:[#allocation38_spill] sm:$0xff] %v6850_v41  ;;  %v4084_v62 = vmul.f32 %v4682_v2, %v9640_v10  ;;  %v460_v30 = vadd.f32 %v9659_v34, %v9658_v5  ;;  %v4085_v38 = vmul.f32 %v6242_v56, %v9640_v10  ;;  %v3648_v4 = vrot.slane %v3590_v14, 1 }
 0x18e   : > { %9657 = vst [vmem:[#allocation94_spill] sm:$0xff] %v6853_v43  ;;  %v4086_v27 = vmul.f32 %v9621_v51, %v9640_v10  ;;  %v461_v24 = vadd.f32 %v445_v29, %v345_v13  ;;  %v1448_v0 = vmul.f32 %v9661_v16, %v9660_v12  ;;  %v887_v18 = vmul.f32 %v9661_v16, %v9662_v19  ;;  %v9664_v29 = vld [vmem:[#allocation15_spill] sm:$0xff] }
 0x18f   : > { %v6868_v20 = vmul.f32 %v9655_v1, %v9662_v19  ;;  %v6872_v2 = vmul.f32 %v9655_v1, %v9660_v12  ;;  %v2131_v5 = vmul.f32 %v9661_v16, %v9663_v11  ;;  %v6878_v13 = vmul.f32 %v9655_v1, %v9663_v11 }
 0x190   : > { %v1500_v34 = vrot.slane %v1448_v0, 2  ;;  %v2635_v56 = vmul.f32 %v9661_v16, %v9664_v29  ;;  %v6884_v43 = vmul.f32 %v9655_v1, %v9664_v29  ;;  %v6887_v57 = vsel %vm1365_vm0, %v2954_v35, %v2956_v48 }
 0x191   : > { %9665 = vst [vmem:[#allocation42_spill] sm:$0xff] %v6887_v57  ;;  %v6890_v10 = vsel %vm772_vm1, %v3643_v9, %v3645_v32  ;;  %v9137_v0 = vrot.slane %v6872_v2, 2  ;;  %v4141_v47 = vrot.slane %v4084_v62, 2  ;;  %v4143_v55 = vrot.slane %v4085_v38, 2  ;;  %v9669_v9 = vld [vmem:[#allocation23_spill] sm:$0xff] }
 0x192   : > { %9666 = vst [vmem:[#allocation101_spill] sm:$0xff] %v6890_v10  ;;  %v4144_v60 = vrot.slane %v4086_v27, 2  ;;  %v347_v54 = vmul.f32 %v9667_v33, %v9524_v3  ;;  %v939_v41 = vrot.slane %v887_v18, 1  ;;  %v940_v22 = vrot.slane %v6868_v20, 1  ;;  %v9670_v27 = vld [vmem:[#allocation16_spill] sm:$0xff] }
 0x193   : > { %v6899_v35 = vsel %vm1365_vm0, %v1500_v34, %v9137_v0  ;;  %v3318_v48 = vmul.f32 %v9661_v16, %v9669_v9  ;;  %v2181_v14 = vrot.slane %v2131_v5, 1  ;;  %v2685_v62 = vrot.slane %v2635_v56, 2  ;;  %v9671_v34 = vld [vmem:[#allocation102_spill] sm:$0xff] }
 0x194   : > { %9668 = vst [vmem:[#allocation95_spill] sm:$0xff] %v6899_v35  ;;  %v6907_v3 = vmul.f32 %v9655_v1, %v9669_v9  ;;  %v3822_v18 = vmul.f32 %v9661_v16, %v9670_v27  ;;  %v6911_v20 = vunpack.i.h.bf16 %v4592_v44  ;;  %v447_v0 = vmul.f32 %v9671_v34, %v9536_v53 }
 0x195   : > { %v6916_v10 = vsel %vm772_vm1, %v3647_v8, %v3648_v4  ;;  %v6919_v5 = vsel %vm772_vm1, %v3648_v4, %v3650_v25  ;;  %v9674_v56 = vrot.slane %v6777_v52, 2  ;;  %v6927_v32 = vsel %vm1365_vm0, %v4143_v55, %v4144_v60 }
 0x196   : > { %9672 = vst [vmem:[#allocation4_spill] sm:$0xff] %v6916_v10  ;;  %9673 = vst [vmem:[#allocation270_spill] sm:$0xff] %v6919_v5  ;;  %v6930_v57 = vsel %vm1365_vm0, %v4144_v60, %v4146_v28  ;;  %v941_v35 = vsel %vm772_vm1, %v939_v41, %v940_v22  ;;  %v3366_v53 = vrot.slane %v3318_v48, 1  ;;  %v6935_v8 = vmul.f32 %v9655_v1, %v9670_v27  ;;  %v9682_v60 = vld [vmem:[#allocation48_spill] sm:$0xff]  ;;  %v9690_v48 = vld [vmem:[#allocation109_spill] sm:$0xff] }
 0x197   : > { %v6924_v38 = vsel %vm1365_vm0, %v9674_v56, %v4141_v47  ;;  %9676 = vst [vmem:[#allocation272_spill] sm:$0xff] %v6927_v32  ;;  %9677 = vst [vmem:[#allocation273_spill] sm:$0xff] %v6930_v57  ;;  %v9678_v25 = vrot.slane %v6878_v13, 1  ;;  %v9680_v4 = vrot.slane %v6884_v43, 2  ;;  %v6947_v47 = vunpack.i.l.bf16 %v4592_v44  ;;  %v9683_v28 = vld [vmem:[#allocation104_spill] sm:$0xff] }
 0x198   : > { %9675 = vst [vmem:[#allocation271_spill] sm:$0xff] %v6924_v38  ;;  %v462_v41 = vadd.f32 %v9683_v28, %v9682_v60  ;;  %v3870_v56 = vrot.slane %v3822_v18, 2  ;;  %v892_v57 = vmul.f32 %v6911_v20, %v9662_v19  ;;  %v463_v32 = vadd.f32 %v447_v0, %v347_v54  ;;  %v9685_v38 = vld [vmem:[#allocation152_spill] sm:$0xff]  ;;  %v9689_v28 = vld [vmem:[#allocation203_spill] sm:$0xff]  ;;  %v9691_v54 = vld [vmem:[#allocation186_spill] sm:$0xff] }
 0x199   : > { %v6940_v52 = vsel %vm772_vm1, %v2181_v14, %v9678_v25  ;;  %v6945_v55 = vsel %vm1365_vm0, %v2685_v62, %v9680_v4  ;;  %v9684_v14 = vld [vmem:[#allocation126_spill] sm:$0xff]  ;;  %v547_v5 = vmul.f32 %v9685_v38, %v9548_v26  ;;  %v9686_v62 = vld [vmem:[#allocation131_spill] sm:$0xff]  ;;  %v9687_v44 = vld [vmem:[#allocation160_spill] sm:$0xff]  ;;  %v645_v18 = vmul.f32 %v9689_v28, %v9423_v7 }
 0x19a   : > { %9679 = vst [vmem:[#allocation274_spill] sm:$0xff] %v6940_v52  ;;  %9681 = vst [vmem:[#allocation275_spill] sm:$0xff] %v6945_v55  ;;  %v545_v25 = vmul.f32 %v9684_v14, %v9548_v26  ;;  %v560_v4 = vadd.f32 %v9686_v62, %v460_v30  ;;  %v562_v10 = vadd.f32 %v9687_v44, %v462_v41  ;;  %v9688_v55 = vld [vmem:[#allocation204_spill] sm:$0xff]  ;;  %v9692_v30 = vld [vmem:[#allocation97_spill] sm:$0xff]  ;;  %v947_v62 = vrot.slane %v892_v57, 1 }
 0x19b   : > { %v644_v60 = vmul.f32 %v9688_v55, %v9423_v7  ;;  %v646_v52 = vmul.f32 %v9690_v48, %v9423_v7  ;;  %v647_v0 = vmul.f32 %v9691_v54, %v9423_v7  ;;  %v563_v51 = vadd.f32 %v547_v5, %v463_v32  ;;  %v9694_v5 = vld [vmem:[#allocation84_spill] sm:$0xff] }
 0x19c   : > { %v561_v33 = vadd.f32 %v545_v25, %v461_v24  ;;  %v889_v26 = vmul.f32 %v6947_v47, %v9662_v19  ;;  %v890_v41 = vmul.f32 %v9692_v30, %v9662_v19  ;;  %v891_v37 = vmul.f32 %v9671_v34, %v9662_v19  ;;  %v9693_v24 = vld [vmem:[#allocation66_spill] sm:$0xff]  ;;  %v9695_v57 = vld [vmem:[#allocation76_spill] sm:$0xff] }
 0x19d   : > { %v660_v44 = vadd.f32 %v644_v60, %v560_v4  ;;  %v662_v38 = vadd.f32 %v646_v52, %v562_v10  ;;  %v663_v6 = vadd.f32 %v647_v0, %v563_v51  ;;  %v9139_v7 = vrot.slane %v6935_v8, 2  ;;  %v9696_v10 = vld [vmem:[#allocation70_spill] sm:$0xff] }
 0x19e   : > { %v661_v15 = vadd.f32 %v645_v18, %v561_v33  ;;  %v942_v48 = vrot.slane %v889_v26, 1  ;;  %v944_v45 = vrot.slane %v890_v41, 1  ;;  %v945_v54 = vrot.slane %v891_v37, 1 }
 0x19f   : > { %v833_v32 = vadd.f32 %v9693_v24, %v660_v44  ;;  %v835_v25 = vadd.f32 %v9694_v5, %v662_v38  ;;  %v1453_v21 = vmul.f32 %v6911_v20, %v9660_v12  ;;  %v836_v52 = vadd.f32 %v9696_v10, %v663_v6 }
 0x1a0   : > { %v834_v4 = vadd.f32 %v9695_v57, %v661_v15  ;;  %v943_v60 = vsel %vm772_vm1, %v940_v22, %v942_v48  ;;  %v946_v33 = vsel %vm772_vm1, %v944_v45, %v945_v54  ;;  %v948_v51 = vsel %vm772_vm1, %v945_v54, %v947_v62 }
 0x1a1   : > { %v6984_v18 = vadd.f32 %v941_v35, %v833_v32  ;;  %v1450_v0 = vmul.f32 %v6947_v47, %v9660_v12  ;;  %v9698_v37 = vrot.slane %v6907_v3, 1  ;;  %v6995_v15 = vadd.f32 %v946_v33, %v835_v25 }
 0x1a2   : > { %v6993_v26 = vadd.f32 %v943_v60, %v834_v4  ;;  %v6997_v6 = vadd.f32 %v948_v51, %v836_v52  ;;  %v2136_v45 = vmul.f32 %v6911_v20, %v9663_v11  ;;  %v1451_v22 = vmul.f32 %v9692_v30, %v9660_v12 }
 0x1a3   : > { %9697 = vst [vmem:[#allocation48_spill] sm:$0xff] %v6984_v18  ;;  %v6991_v38 = vsel %vm772_vm1, %v3366_v53, %v9698_v37  ;;  %9701 = vst [vmem:[#allocation131_spill] sm:$0xff] %v6995_v15  ;;  %v1452_v35 = vmul.f32 %v9671_v34, %v9660_v12  ;;  %v2133_v48 = vmul.f32 %v6947_v47, %v9663_v11  ;;  %v1508_v44 = vrot.slane %v1453_v21, 2 }
 0x1a4   : > { %9699 = vst [vmem:[#allocation104_spill] sm:$0xff] %v6991_v38  ;;  %9700 = vst [vmem:[#allocation126_spill] sm:$0xff] %v6993_v26  ;;  %v7010_v53 = vsel %vm1365_vm0, %v3870_v56, %v9139_v7  ;;  %v2640_v54 = vmul.f32 %v6911_v20, %v9664_v29  ;;  %v2638_v41 = vmul.f32 %v9692_v30, %v9664_v29  ;;  %v1503_v5 = vrot.slane %v1450_v0, 2 }
 0x1a5   : > { %9702 = vst [vmem:[#allocation160_spill] sm:$0xff] %v6997_v6  ;;  %9703 = vst [vmem:[#allocation203_spill] sm:$0xff] %v7010_v53  ;;  %v2639_v62 = vmul.f32 %v9671_v34, %v9664_v29  ;;  %v3323_v24 = vmul.f32 %v6911_v20, %v9669_v9  ;;  %v7022_v32 = vmul.f32 %v6911_v20, %v9670_v27  ;;  %v1505_v10 = vrot.slane %v1451_v22, 2 }
 0x1a6   : > { %v2134_v56 = vmul.f32 %v9692_v30, %v9663_v11  ;;  %v2135_v25 = vmul.f32 %v9671_v34, %v9663_v11  ;;  %v2690_v57 = vrot.slane %v2638_v41, 2  ;;  %v1506_v52 = vrot.slane %v1452_v35, 2 }
 0x1a7   : > { %v2691_v4 = vrot.slane %v2639_v62, 2  ;;  %v2184_v60 = vrot.slane %v2133_v48, 1  ;;  %v2637_v21 = vmul.f32 %v6947_v47, %v9664_v29  ;;  %v3320_v20 = vmul.f32 %v6947_v47, %v9669_v9 }
 0x1a8   : > { %v3321_v51 = vmul.f32 %v9692_v30, %v9669_v9  ;;  %v3322_v0 = vmul.f32 %v9671_v34, %v9669_v9  ;;  %v2189_v37 = vrot.slane %v2136_v45, 1  ;;  %v2693_v41 = vrot.slane %v2640_v54, 2 }
 0x1a9   : > { %v7031_v33 = vsel %vm1365_vm0, %v2690_v57, %v2691_v4  ;;  %v3374_v22 = vrot.slane %v3323_v24, 1  ;;  %v3878_v35 = vrot.slane %v7022_v32, 2  ;;  %v9705_v48 = vrot.slane %v6872_v2, 2 }
 0x1aa   : > { %9704 = vst [vmem:[#allocation66_spill] sm:$0xff] %v7031_v33  ;;  %v2186_v57 = vrot.slane %v2134_v56, 1  ;;  %v2187_v7 = vrot.slane %v2135_v25, 1  ;;  %v3824_v53 = vmul.f32 %v6947_v47, %v9670_v27  ;;  %v7048_v38 = vsel %vm1365_vm0, %v1505_v10, %v1506_v52  ;;  %v9711_v10 = vld [vmem:[#allocation96_spill] sm:$0xff] }
 0x1ab   : > { %v7043_v62 = vsel %vm1365_vm0, %v9705_v48, %v1503_v5  ;;  %9707 = vst [vmem:[#allocation76_spill] sm:$0xff] %v7048_v38  ;;  %v7051_v33 = vsel %vm1365_vm0, %v1506_v52, %v1508_v44  ;;  %v9709_v45 = vrot.slane %v6878_v13, 1  ;;  %v2688_v2 = vrot.slane %v2637_v21, 2  ;;  %v9712_v52 = vld [vmem:[#allocation98_spill] sm:$0xff] }
 0x1ac   : > { %9706 = vst [vmem:[#allocation84_spill] sm:$0xff] %v7043_v62  ;;  %9708 = vst [vmem:[#allocation70_spill] sm:$0xff] %v7051_v33  ;;  %v3369_v24 = vrot.slane %v3320_v20, 1  ;;  %v3371_v32 = vrot.slane %v3321_v51, 1  ;;  %v3372_v5 = vrot.slane %v3322_v0, 1  ;;  %v3825_v56 = vmul.f32 %v9692_v30, %v9670_v27 }
 0x1ad   : > { %v7056_v54 = vsel %vm772_vm1, %v9709_v45, %v2184_v60  ;;  %v3826_v47 = vmul.f32 %v9671_v34, %v9670_v27  ;;  %v3873_v25 = vrot.slane %v3824_v53, 2  ;;  %v893_v44 = vmul.f32 %v9711_v10, %v9662_v19 }
 0x1ae   : > { %9710 = vst [vmem:[#allocation276_spill] sm:$0xff] %v7056_v54  ;;  %v894_v13 = vmul.f32 %v9712_v52, %v9662_v19  ;;  %v7067_v60 = vsel %vm772_vm1, %v2186_v57, %v2187_v7  ;;  %v7070_v21 = vsel %vm772_vm1, %v2187_v7, %v2189_v37  ;;  %v1454_v20 = vmul.f32 %v9711_v10, %v9660_v12 }
 0x1af   : > { %9713 = vst [vmem:[#allocation277_spill] sm:$0xff] %v7067_v60  ;;  %9714 = vst [vmem:[#allocation278_spill] sm:$0xff] %v7070_v21  ;;  %v7076_v51 = vmul.f32 %v9712_v52, %v9660_v12  ;;  %v9715_v53 = vrot.slane %v6884_v43, 2  ;;  %v7084_v48 = vsel %vm1365_vm0, %v2691_v4, %v2693_v41  ;;  %v2137_v57 = vmul.f32 %v9711_v10, %v9663_v11  ;;  %v4597_v41 = vpop.permute.xlu1 %4596 }
 0x1b0   : > { %9717 = vst [vmem:[#allocation280_spill] sm:$0xff] %v7084_v48  ;;  %v7090_v7 = vmul.f32 %v9712_v52, %v9663_v11  ;;  %v9718_v37 = vrot.slane %v6907_v3, 1  ;;  %v7098_v43 = vsel %vm772_vm1, %v3371_v32, %v3372_v5  ;;  %v3875_v4 = vrot.slane %v3825_v56, 2 }
 0x1b1   : > { %v7081_v0 = vsel %vm1365_vm0, %v9715_v53, %v2688_v2  ;;  %9720 = vst [vmem:[#allocation282_spill] sm:$0xff] %v7098_v43  ;;  %v7101_v2 = vsel %vm772_vm1, %v3372_v5, %v3374_v22  ;;  %v9722_v53 = vrot.slane %v6935_v8, 2  ;;  %v949_v21 = vrot.slane %v893_v44, 1 }
 0x1b2   : > { %9716 = vst [vmem:[#allocation279_spill] sm:$0xff] %v7081_v0  ;;  %v7095_v45 = vsel %vm772_vm1, %v9718_v37, %v3369_v24  ;;  %9721 = vst [vmem:[#allocation283_spill] sm:$0xff] %v7101_v2  ;;  %v3876_v0 = vrot.slane %v3826_v47, 2  ;;  %v950_v60 = vrot.slane %v894_v13, 1  ;;  %v1510_v3 = vrot.slane %v1454_v20, 2  ;;  %v9724_v20 = vld [vmem:[#allocation100_spill] sm:$0xff] }
 0x1b3   : > { %9719 = vst [vmem:[#allocation281_spill] sm:$0xff] %v7095_v45  ;;  %v7106_v48 = vsel %vm1365_vm0, %v9722_v53, %v3873_v25  ;;  %v2641_v32 = vmul.f32 %v9711_v10, %v9664_v29  ;;  %v7113_v22 = vmul.f32 %v9712_v52, %v9664_v29  ;;  %v2191_v5 = vrot.slane %v2137_v57, 1  ;;  %v9726_v24 = vld [vmem:[#allocation106_spill] sm:$0xff] }
 0x1b4   : > { %9723 = vst [vmem:[#allocation284_spill] sm:$0xff] %v7106_v48  ;;  %v3324_v8 = vmul.f32 %v9711_v10, %v9669_v9  ;;  %v4599_v25 = vunpack.i.h.bf16 %v4597_v41  ;;  %v7120_v47 = vmul.f32 %v9712_v52, %v9669_v9  ;;  %v3828_v44 = vmul.f32 %v9711_v10, %v9670_v27 }
 0x1b5   : > { %v7124_v13 = vunpack.i.l.bf16 %v4597_v41  ;;  %v896_v37 = vmul.f32 %v9724_v20, %v9662_v19  ;;  %v7129_v57 = vsel %vm1365_vm0, %v3875_v4, %v3876_v0  ;;  %v7133_v53 = vmul.f32 %v9712_v52, %v9670_v27 }
 0x1b6   : > { %9725 = vst [vmem:[#allocation285_spill] sm:$0xff] %v7129_v57  ;;  %v898_v56 = vmul.f32 %v4599_v25, %v9662_v19  ;;  %v897_v48 = vmul.f32 %v9726_v24, %v9662_v19  ;;  %v7139_v2 = vsel %vm1365_vm0, %v3876_v0, %v3878_v35  ;;  %v951_v41 = vsel %vm772_vm1, %v949_v21, %v950_v60 }
 0x1b7   : > { %9727 = vst [vmem:[#allocation286_spill] sm:$0xff] %v7139_v2  ;;  %v2695_v43 = vrot.slane %v2641_v32, 2  ;;  %v9728_v4 = vrot.slane %v7076_v51, 2  ;;  %v895_v34 = vmul.f32 %v7124_v13, %v9662_v19  ;;  %v954_v30 = vrot.slane %v896_v37, 1 }
 0x1b8   : > { %v957_v54 = vrot.slane %v898_v56, 1  ;;  %v9730_v33 = vrot.slane %v7090_v7, 1  ;;  %v3376_v0 = vrot.slane %v3324_v8, 1  ;;  %v9143_v21 = vrot.slane %v7120_v47, 1 }
 0x1b9   : > { %v7146_v57 = vsel %vm1365_vm0, %v1510_v3, %v9728_v4  ;;  %v3880_v32 = vrot.slane %v3828_v44, 2  ;;  %v9142_v45 = vrot.slane %v7133_v53, 2  ;;  %v952_v2 = vrot.slane %v895_v34, 1 }
 0x1ba   : > { %9729 = vst [vmem:[#allocation287_spill] sm:$0xff] %v7146_v57  ;;  %v7153_v35 = vsel %vm772_vm1, %v2191_v5, %v9730_v33  ;;  %v955_v38 = vrot.slane %v897_v48, 1  ;;  %v7158_v3 = vadd.f32 %v951_v41, %v6393_v63  ;;  %v9732_v56 = vrot.slane %v7113_v22, 2 }
 0x1bb   : > { %9731 = vst [vmem:[#allocation288_spill] sm:$0xff] %v7153_v35  ;;  %v1459_v37 = vmul.f32 %v4599_v25, %v9660_v12  ;;  %v2142_v33 = vmul.f32 %v4599_v25, %v9663_v11  ;;  %v2646_v5 = vmul.f32 %v4599_v25, %v9664_v29  ;;  %v7169_v8 = vmul.f32 %v4599_v25, %v9669_v9 }
 0x1bc   : > { %v7163_v19 = vsel %vm1365_vm0, %v2695_v43, %v9732_v56  ;;  %v953_v34 = vsel %vm772_vm1, %v950_v60, %v952_v2  ;;  %v956_v48 = vsel %vm772_vm1, %v954_v30, %v955_v38  ;;  %v958_v63 = vsel %vm772_vm1, %v955_v38, %v957_v54 }
 0x1bd   : > { %9733 = vst [vmem:[#allocation289_spill] sm:$0xff] %v7163_v19  ;;  %v7175_v44 = vadd.f32 %v953_v34, %v6395_v40  ;;  %v7178_v43 = vadd.f32 %v956_v48, %v6378_v31  ;;  %v7181_v41 = vadd.f32 %v958_v63, %v6380_v42  ;;  %v1456_v4 = vmul.f32 %v7124_v13, %v9660_v12 }
 0x1be   : > { %v7188_v60 = vsel %vm772_vm1, %v3376_v0, %v9143_v21  ;;  %v1457_v30 = vmul.f32 %v9724_v20, %v9660_v12  ;;  %v1458_v40 = vmul.f32 %v9726_v24, %v9660_v12  ;;  %v2139_v31 = vmul.f32 %v7124_v13, %v9663_v11 }
 0x1bf   : > { %9734 = vst [vmem:[#allocation290_spill] sm:$0xff] %v7188_v60  ;;  %v7199_v42 = vsel %vm1365_vm0, %v3880_v32, %v9142_v45  ;;  %v7202_v38 = vmul.f32 %v4599_v25, %v9670_v27  ;;  %v2140_v54 = vmul.f32 %v9724_v20, %v9663_v11  ;;  %v2141_v2 = vmul.f32 %v9726_v24, %v9663_v11 }
 0x1c0   : > { %9735 = vst [vmem:[#allocation291_spill] sm:$0xff] %v7199_v42  ;;  %v1518_v0 = vrot.slane %v1459_v37, 2  ;;  %v2643_v56 = vmul.f32 %v7124_v13, %v9664_v29  ;;  %v2644_v34 = vmul.f32 %v9724_v20, %v9664_v29  ;;  %v2645_v32 = vmul.f32 %v9726_v24, %v9664_v29 }
 0x1c1   : > { %v2199_v48 = vrot.slane %v2142_v33, 1  ;;  %v2703_v63 = vrot.slane %v2646_v5, 2  ;;  %v3384_v25 = vrot.slane %v7169_v8, 1  ;;  %v1513_v45 = vrot.slane %v1456_v4, 2 }
 0x1c2   : > { %v1515_v21 = vrot.slane %v1457_v30, 2  ;;  %v1516_v12 = vrot.slane %v1458_v40, 2  ;;  %v2194_v42 = vrot.slane %v2139_v31, 1  ;;  %v3326_v37 = vmul.f32 %v7124_v13, %v9669_v9 }
 0x1c3   : > { %v2196_v11 = vrot.slane %v2140_v54, 1  ;;  %v2197_v60 = vrot.slane %v2141_v2, 1  ;;  %v3327_v19 = vmul.f32 %v9724_v20, %v9669_v9  ;;  %v3328_v35 = vmul.f32 %v9726_v24, %v9669_v9 }
 0x1c4   : > { %v2698_v29 = vrot.slane %v2643_v56, 2  ;;  %v2700_v33 = vrot.slane %v2644_v34, 2  ;;  %v2701_v5 = vrot.slane %v2645_v32, 2  ;;  %v3831_v8 = vmul.f32 %v9724_v20, %v9670_v27 }
 0x1c5   : > { %v3888_v4 = vrot.slane %v7202_v38, 2  ;;  %v9736_v30 = vrot.slane %v7076_v51, 2  ;;  %v3830_v31 = vmul.f32 %v7124_v13, %v9670_v27  ;;  %v3832_v54 = vmul.f32 %v9726_v24, %v9670_v27  ;;  %v4624_v38 = vpop.permute.xlu1 %4623 }
 0x1c6   : > { %v7234_v2 = vsel %vm1365_vm0, %v1515_v21, %v1516_v12  ;;  %v7237_v56 = vsel %vm1365_vm0, %v1516_v12, %v1518_v0  ;;  %v3379_v34 = vrot.slane %v3326_v37, 1  ;;  %v3885_v32 = vrot.slane %v3831_v8, 2 }
 0x1c7   : > { %v7227_v40 = vsel %vm1365_vm0, %v9736_v30, %v1513_v45  ;;  %9738 = vst [vmem:[#allocation293_spill] sm:$0xff] %v7234_v2  ;;  %9739 = vst [vmem:[#allocation294_spill] sm:$0xff] %v7237_v56  ;;  %v9740_v51 = vrot.slane %v7090_v7, 1  ;;  %v3381_v30 = vrot.slane %v3327_v19, 1  ;;  %v3382_v9 = vrot.slane %v3328_v35, 1 }
 0x1c8   : > { %9737 = vst [vmem:[#allocation292_spill] sm:$0xff] %v7227_v40  ;;  %v3886_v13 = vrot.slane %v3832_v54, 2  ;;  %v7245_v20 = vsel %vm772_vm1, %v2196_v11, %v2197_v60  ;;  %v7248_v21 = vsel %vm772_vm1, %v2197_v60, %v2199_v48  ;;  %v9744_v12 = vrot.slane %v7113_v22, 2  ;;  %v9751_v48 = vld [vmem:[#allocation49_spill] sm:$0xff]  ;;  %v9774_v40 = vld [vmem:[#allocation28_spill] sm:$0xff] }
 0x1c9   : > { %v7242_v45 = vsel %vm772_vm1, %v9740_v51, %v2194_v42  ;;  %9742 = vst [vmem:[#allocation296_spill] sm:$0xff] %v7245_v20  ;;  %9743 = vst [vmem:[#allocation297_spill] sm:$0xff] %v7248_v21  ;;  %v7256_v37 = vsel %vm1365_vm0, %v2700_v33, %v2701_v5  ;;  %v7259_v7 = vsel %vm1365_vm0, %v2701_v5, %v2703_v63  ;;  %v3883_v19 = vrot.slane %v3830_v31, 2  ;;  %v9753_v54 = vld [vmem:[#allocation213_spill] sm:$0xff]  ;;  %v9754_v33 = vld [vmem:[#allocation123_spill] sm:$0xff] }
 0x1ca   : > { %9741 = vst [vmem:[#allocation295_spill] sm:$0xff] %v7242_v45  ;;  %v7253_v0 = vsel %vm1365_vm0, %v9744_v12, %v2698_v29  ;;  %9746 = vst [vmem:[#allocation299_spill] sm:$0xff] %v7256_v37  ;;  %v7262_v35 = vsel %vm1365_vm0, %v3885_v32, %v3886_v13  ;;  %v4626_v11 = vunpack.i.h.bf16 %v4624_v38  ;;  %v9749_v42 = vrot.slane %v7120_v47, 1  ;;  %v9752_v29 = vld [vmem:[#allocation119_spill] sm:$0xff]  ;;  %v9756_v5 = vld [vmem:[#allocation26_spill] sm:$0xff] }
 0x1cb   : > { %9745 = vst [vmem:[#allocation298_spill] sm:$0xff] %v7253_v0  ;;  %9747 = vst [vmem:[#allocation300_spill] sm:$0xff] %v7259_v7  ;;  %v4625_v22 = vunpack.i.l.bf16 %v4624_v38  ;;  %v987_v8 = vadd.f32 %v9752_v29, %v9751_v48  ;;  %v988_v51 = vadd.f32 %v9754_v33, %v9753_v54  ;;  %v7274_v63 = vsel %vm772_vm1, %v3381_v30, %v3382_v9  ;;  %v9757_v31 = vld [vmem:[#allocation27_spill] sm:$0xff]  ;;  %v9761_v48 = vld [vmem:[#allocation88_spill] sm:$0xff] }
 0x1cc   : > { %9748 = vst [vmem:[#allocation301_spill] sm:$0xff] %v7262_v35  ;;  %v7267_v60 = vsel %vm772_vm1, %v9749_v42, %v3379_v34  ;;  %9755 = vst [vmem:[#allocation49_spill] sm:$0xff] %v7274_v63  ;;  %v7278_v32 = vmul.f32 %v9757_v31, %v9756_v5  ;;  %v7282_v47 = vmul.f32 %v9654_v58, %v9756_v5  ;;  %v9758_v34 = vld [vmem:[#allocation5_spill] sm:$0xff]  ;;  %v9762_v54 = vld [vmem:[#allocation156_spill] sm:$0xff]  ;;  %v9763_v27 = vrot.slane %v7133_v53, 2 }
 0x1cd   : > { %9750 = vst [vmem:[#allocation302_spill] sm:$0xff] %v7267_v60  ;;  %v1042_v12 = vmul.f32 %v4626_v11, %v9758_v34  ;;  %v7286_v38 = vsel %vm772_vm1, %v3382_v9, %v3384_v25  ;;  %v9760_v42 = vld [vmem:[#allocation17_spill] sm:$0xff]  ;;  %v1039_v30 = vmul.f32 %v4625_v22, %v9758_v34  ;;  %v1041_v33 = vmul.f32 %v9762_v54, %v9758_v34  ;;  %v9766_v37 = vld [vmem:[#allocation20_spill] sm:$0xff] }
 0x1ce   : > { %9759 = vst [vmem:[#allocation119_spill] sm:$0xff] %v7286_v38  ;;  %v7290_v29 = vmul.f32 %v9761_v48, %v9760_v42  ;;  %v7298_v35 = vsel %vm1365_vm0, %v9763_v27, %v3883_v19  ;;  %v7302_v63 = vmul.f32 %v9661_v16, %v9760_v42  ;;  %v7306_v9 = vmul.f32 %v9655_v1, %v9760_v42  ;;  %v9765_v48 = vld [vmem:[#allocation10_spill] sm:$0xff]  ;;  %v9768_v21 = vld [vmem:[#allocation221_spill] sm:$0xff]  ;;  %v9770_v45 = vld [vmem:[#allocation112_spill] sm:$0xff] }
 0x1cf   : > { %9764 = vst [vmem:[#allocation213_spill] sm:$0xff] %v7298_v35  ;;  %v1093_v25 = vrot.slane %v1042_v12, 1  ;;  %v7310_v38 = vmul.f32 %v9757_v31, %v9765_v48  ;;  %v1088_v60 = vrot.slane %v1039_v30, 1  ;;  %v1091_v7 = vrot.slane %v1041_v33, 1  ;;  %v9767_v35 = vld [vmem:[#allocation21_spill] sm:$0xff] }
 0x1d0   : > { %v1570_v53 = vmul.f32 %v9762_v54, %v9766_v37  ;;  %v7316_v27 = vmul.f32 %v9654_v58, %v9765_v48  ;;  %v1571_v19 = vmul.f32 %v4626_v11, %v9766_v37  ;;  %v7320_v0 = vmul.f32 %v4626_v11, %v9767_v35  ;;  %v9769_v12 = vld [vmem:[#allocation129_spill] sm:$0xff] }
 0x1d1   : > { %v986_v20 = vadd.f32 %v9769_v12, %v9768_v21  ;;  %v9771_v31 = vrot.slane %v9770_v45, 1  ;;  %v9772_v33 = vld [vmem:[#allocation161_spill] sm:$0xff]  ;;  %v1094_v2 = vsel %vm772_vm1, %v1091_v7, %v1093_v25  ;;  %v1568_v58 = vmul.f32 %v4625_v22, %v9766_v37  ;;  %v9776_v45 = vld [vmem:[#allocation18_spill] sm:$0xff] }
 0x1d2   : > { %v9773_v24 = vrot.slane %v9772_v33, 1  ;;  %v7333_v57 = vmul.f32 %v4626_v11, %v9774_v40  ;;  %v1144_v15 = vadd.f32 %v1094_v2, %v988_v51  ;;  %v7336_v21 = vsel %vm1365_vm0, %v3886_v13, %v3888_v4  ;;  %v9777_v51 = vld [vmem:[#allocation35_spill] sm:$0xff] }
 0x1d3   : > { %v1089_v30 = vsel %vm772_vm1, %v9771_v31, %v1088_v60  ;;  %9775 = vst [vmem:[#allocation123_spill] sm:$0xff] %v7336_v21  ;;  %v7340_v60 = vmul.f32 %v9661_v16, %v9776_v45  ;;  %v1620_v12 = vrot.slane %v1570_v53, 2  ;;  %v1622_v13 = vrot.slane %v1571_v19, 2  ;;  %v9778_v53 = vld [vmem:[#allocation50_spill] sm:$0xff]  ;;  %v9779_v31 = vld [vmem:[#allocation224_spill] sm:$0xff] }
 0x1d4   : > { %v1092_v56 = vsel %vm772_vm1, %v9773_v24, %v1091_v7  ;;  %v1142_v62 = vadd.f32 %v1089_v30, %v986_v20  ;;  %v7344_v24 = vmul.f32 %v9762_v54, %v9767_v35  ;;  %v7348_v7 = vmul.f32 %v9655_v1, %v9776_v45  ;;  %v9791_v21 = vld [vmem:[#allocation24_spill] sm:$0xff] }
 0x1d5   : > { %v1143_v6 = vadd.f32 %v1092_v56, %v987_v8  ;;  %v1300_v4 = vadd.f32 %v6539_v17, %v1144_v15  ;;  %v4655_v56 = vpop.permute.xlu1 %4654  ;;  %v1617_v11 = vrot.slane %v1568_v58, 2  ;;  %v9782_v17 = vld [vmem:[#allocation166_spill] sm:$0xff]  ;;  %v7369_v19 = vmul.f32 %v9762_v54, %v9774_v40 }
 0x1d6   : > { %v1298_v20 = vadd.f32 %v6588_v49, %v1142_v62  ;;  %v9151_v22 = vrot.slane %v7344_v24, 1  ;;  %v9780_v49 = vld [vmem:[#allocation165_spill] sm:$0xff]  ;;  %v9783_v15 = vrot.slane %v9782_v17, 1  ;;  %v7371_v33 = vunpack.i.h.bf16 %v4655_v56  ;;  %v9784_v58 = vld [vmem:[#allocation130_spill] sm:$0xff] }
 0x1d7   : > { %v1299_v2 = vadd.f32 %v6521_v61, %v1143_v6  ;;  %v1425_v30 = vadd.f32 %v9779_v31, %v1300_v4  ;;  %v9781_v62 = vrot.slane %v9780_v49, 2  ;;  %v9787_v31 = vld [vmem:[#allocation12_spill] sm:$0xff]  ;;  %v1915_v26 = vmul.f32 %v9762_v54, %v9791_v21 }
 0x1d8   : > { %v1423_v25 = vadd.f32 %v9777_v51, %v1298_v20  ;;  %v2306_v6 = vsel %vm772_vm1, %v9783_v15, %v9151_v22  ;;  %v9786_v51 = vld [vmem:[#allocation124_spill] sm:$0xff]  ;;  %v1623_v15 = vsel %vm1365_vm0, %v1620_v12, %v1622_v13  ;;  %v9790_v22 = vld [vmem:[#allocation47_spill] sm:$0xff] }
 0x1d9   : > { %v1424_v1 = vadd.f32 %v9778_v53, %v1299_v2  ;;  %v1621_v61 = vsel %vm1365_vm0, %v9781_v62, %v1620_v12  ;;  %v9785_v2 = vld [vmem:[#allocation120_spill] sm:$0xff]  ;;  %v1549_v53 = vadd.f32 %v9786_v51, %v1425_v30  ;;  %v2360_v49 = vadd.f32 %v2306_v6, %v9787_v31  ;;  %v9788_v62 = vld [vmem:[#allocation113_spill] sm:$0xff] }
 0x1da   : > { %v1547_v20 = vadd.f32 %v9784_v58, %v1423_v25  ;;  %v9789_v8 = vrot.slane %v9788_v62, 2  ;;  %v1827_v16 = vmul.f32 %v9790_v22, %v9756_v5  ;;  %v9792_v30 = vld [vmem:[#allocation128_spill] sm:$0xff]  ;;  %v1054_v12 = vmul.f32 %v7371_v33, %v9758_v34  ;;  %v9793_v22 = vld [vmem:[#allocation239_spill] sm:$0xff] }
 0x1db   : > { %v1548_v4 = vadd.f32 %v9785_v2, %v1424_v1  ;;  %v1673_v58 = vadd.f32 %v1623_v15, %v1549_v53  ;;  %v2488_v1 = vadd.f32 %v6531_v50, %v2360_v49  ;;  %v1916_v6 = vmul.f32 %v9792_v30, %v9791_v21  ;;  %v9795_v50 = vld [vmem:[#allocation33_spill] sm:$0xff]  ;;  %v9797_v31 = vld [vmem:[#allocation44_spill] sm:$0xff]  ;;  %v9799_v15 = vld [vmem:[#allocation167_spill] sm:$0xff] }
 0x1dc   : > { %v1618_v17 = vsel %vm1365_vm0, %v9789_v8, %v1617_v11  ;;  %v1917_v2 = vmul.f32 %v9684_v14, %v9791_v21  ;;  %v2805_v11 = vrot.slane %v7369_v19, 2  ;;  %v1961_v51 = vmul.f32 %v9689_v28, %v9795_v50  ;;  %v9796_v53 = vld [vmem:[#allocation25_spill] sm:$0xff] }
 0x1dd   : > { %v1671_v18 = vadd.f32 %v1618_v17, %v1547_v20  ;;  %v1672_v25 = vadd.f32 %v1621_v61, %v1548_v4  ;;  %v1797_v8 = vadd.f32 %v9793_v22, %v1673_v58  ;;  %v9794_v61 = vld [vmem:[#allocation171_spill] sm:$0xff]  ;;  %v1960_v4 = vmul.f32 %v9688_v55, %v9795_v50 }
 0x1de   : > { %v2612_v20 = vadd.f32 %v9794_v61, %v2488_v1  ;;  %v3104_v19 = vmul.f32 %v9792_v30, %v9796_v53  ;;  %v3148_v49 = vmul.f32 %v9688_v55, %v9797_v31  ;;  %v1113_v1 = vrot.slane %v1054_v12, 1  ;;  %v9801_v61 = vld [vmem:[#allocation173_spill] sm:$0xff]  ;;  %v9803_v12 = vld [vmem:[#allocation155_spill] sm:$0xff] }
 0x1df   : > { %v1795_v13 = vadd.f32 %v6593_v39, %v1671_v18  ;;  %v1796_v54 = vadd.f32 %v6526_v23, %v1672_v25  ;;  %v1845_v23 = vadd.f32 %v7282_v47, %v1797_v8  ;;  %v9798_v18 = vld [vmem:[#allocation122_spill] sm:$0xff]  ;;  %v9800_v25 = vrot.slane %v9799_v15, 2  ;;  %v9802_v47 = vld [vmem:[#allocation172_spill] sm:$0xff] }
 0x1e0   : > { %v2736_v17 = vadd.f32 %v9798_v18, %v2612_v20  ;;  %v7411_v22 = vunpack.i.l.bf16 %v4655_v56  ;;  %v1049_v30 = vmul.f32 %v9801_v61, %v9758_v34  ;;  %v1052_v56 = vmul.f32 %v9803_v12, %v9758_v34  ;;  %v9804_v20 = vld [vmem:[#allocation154_spill] sm:$0xff] }
 0x1e1   : > { %v1843_v62 = vadd.f32 %v1827_v16, %v1795_v13  ;;  %v1844_v39 = vadd.f32 %v7278_v32, %v1796_v54  ;;  %v2806_v58 = vsel %vm1365_vm0, %v9800_v25, %v2805_v11  ;;  %v1889_v32 = vadd.f32 %v7306_v9, %v1845_v23 }
 0x1e2   : > { %v2860_v13 = vadd.f32 %v2806_v58, %v2736_v17  ;;  %v1050_v54 = vmul.f32 %v9802_v47, %v9758_v34  ;;  %v1051_v8 = vmul.f32 %v7411_v22, %v9758_v34  ;;  %v1053_v18 = vmul.f32 %v9804_v20, %v9758_v34  ;;  %v9806_v58 = vld [vmem:[#allocation184_spill] sm:$0xff] }
 0x1e3   : > { %v1887_v45 = vadd.f32 %v7290_v29, %v1843_v62  ;;  %v1888_v16 = vadd.f32 %v7302_v63, %v1844_v39  ;;  %v1933_v29 = vadd.f32 %v1917_v2, %v1889_v32  ;;  %v9805_v62 = vld [vmem:[#allocation29_spill] sm:$0xff]  ;;  %v1105_v39 = vrot.slane %v1049_v30, 1  ;;  %v9807_v2 = vld [vmem:[#allocation2_spill] sm:$0xff] }
 0x1e4   : > { %v2984_v63 = vadd.f32 %v9805_v62, %v2860_v13  ;;  %v1106_v9 = vrot.slane %v1050_v54, 1  ;;  %v1108_v23 = vrot.slane %v1051_v8, 1  ;;  %v1110_v17 = vrot.slane %v1052_v56, 1  ;;  %v9809_v13 = vld [vmem:[#allocation78_spill] sm:$0xff]  ;;  %v9818_v62 = vld [vmem:[#allocation240_spill] sm:$0xff] }
 0x1e5   : > { %v1931_v15 = vadd.f32 %v1915_v26, %v1887_v45  ;;  %v1932_v25 = vadd.f32 %v1916_v6, %v1888_v16  ;;  %v1977_v52 = vadd.f32 %v1961_v51, %v1933_v29  ;;  %v7431_v50 = vmul.f32 %v7371_v33, %v9766_v37  ;;  %v9808_v16 = vld [vmem:[#allocation86_spill] sm:$0xff] }
 0x1e6   : > { %v3032_v10 = vadd.f32 %v7310_v38, %v2984_v63  ;;  %v1107_v26 = vsel %vm772_vm1, %v1105_v39, %v1106_v9  ;;  %v1109_v45 = vsel %vm772_vm1, %v1106_v9, %v1108_v23  ;;  %v1111_v6 = vrot.slane %v1053_v18, 1  ;;  %v9812_v18 = vld [vmem:[#allocation125_spill] sm:$0xff]  ;;  %v9819_v63 = vld [vmem:[#allocation90_spill] sm:$0xff]  ;;  %v9820_v23 = vld [vmem:[#allocation43_spill] sm:$0xff] }
 0x1e7   : > { %v1975_v55 = vadd.f32 %v9806_v58, %v1931_v15  ;;  %v1976_v48 = vadd.f32 %v1960_v4, %v1932_v25  ;;  %v7440_v54 = vadd.f32 %v9809_v13, %v1977_v52  ;;  %v7446_v8 = vadd.f32 %v1107_v26, %v7158_v3 }
 0x1e8   : > { %v3076_v4 = vadd.f32 %v7340_v60, %v3032_v10  ;;  %v1112_v38 = vsel %vm772_vm1, %v1110_v17, %v1111_v6  ;;  %v1114_v51 = vsel %vm772_vm1, %v1111_v6, %v1113_v1  ;;  %v7449_v56 = vadd.f32 %v1109_v45, %v7175_v44  ;;  %v9821_v6 = vld [vmem:[#allocation51_spill] sm:$0xff] }
 0x1e9   : > { %v2105_v30 = vadd.f32 %v9807_v2, %v1975_v55  ;;  %v7437_v32 = vadd.f32 %v9808_v16, %v1976_v48  ;;  %9810 = vst [vmem:[#allocation27_spill] sm:$0xff] %v7446_v8  ;;  %v7453_v48 = vadd.f32 %v1112_v38, %v7178_v43  ;;  %v7456_v52 = vadd.f32 %v1114_v51, %v7181_v41 }
 0x1ea   : > { %9811 = vst [vmem:[#allocation5_spill] sm:$0xff] %v7449_v56  ;;  %v3120_v15 = vadd.f32 %v3104_v19, %v3076_v4  ;;  %v9815_v10 = vrot.slane %v7320_v0, 1  ;;  %v9816_v60 = vrot.slane %v7344_v24, 1  ;;  %v9817_v3 = vrot.slane %v7333_v57, 2 }
 0x1eb   : > { %v2233_v55 = vadd.f32 %v9812_v18, %v2105_v30  ;;  %9813 = vst [vmem:[#allocation88_spill] sm:$0xff] %v7453_v48  ;;  %9814 = vst [vmem:[#allocation156_spill] sm:$0xff] %v7456_v52  ;;  %v7468_v25 = vmul.f32 %v9684_v14, %v9796_v53  ;;  %v7472_v43 = vmul.f32 %v9689_v28, %v9797_v31  ;;  %v1642_v0 = vrot.slane %v7431_v50, 2  ;;  %v9822_v30 = vld [vmem:[#allocation22_spill] sm:$0xff] }
 0x1ec   : > { %v2308_v1 = vsel %vm772_vm1, %v9816_v60, %v9815_v10  ;;  %v2808_v44 = vsel %vm1365_vm0, %v2805_v11, %v9817_v3  ;;  %v3164_v19 = vadd.f32 %v3148_v49, %v3120_v15  ;;  %v2270_v24 = vmul.f32 %v7371_v33, %v9767_v35  ;;  %v9823_v15 = vld [vmem:[#allocation127_spill] sm:$0xff] }
 0x1ed   : > { %v2361_v41 = vadd.f32 %v2308_v1, %v2233_v55  ;;  %v7479_v57 = vmul.f32 %v7371_v33, %v9774_v40  ;;  %v1578_v11 = vmul.f32 %v9801_v61, %v9766_v37  ;;  %v1579_v14 = vmul.f32 %v9802_v47, %v9766_v37 }
 0x1ee   : > { %v1580_v29 = vmul.f32 %v7411_v22, %v9766_v37  ;;  %v7489_v50 = vadd.f32 %v9819_v63, %v3164_v19  ;;  %v1581_v39 = vmul.f32 %v9803_v12, %v9766_v37  ;;  %v1582_v9 = vmul.f32 %v9804_v20, %v9766_v37 }
 0x1ef   : > { %v2489_v49 = vadd.f32 %v9818_v62, %v2361_v41  ;;  %v7497_v17 = vmul.f32 %v7371_v33, %v9820_v23  ;;  %v2265_v58 = vmul.f32 %v9801_v61, %v9767_v35  ;;  %v2266_v26 = vmul.f32 %v9802_v47, %v9767_v35 }
 0x1f0   : > { %v2267_v45 = vmul.f32 %v7411_v22, %v9767_v35  ;;  %v7508_v16 = vmul.f32 %v7371_v33, %v9822_v30  ;;  %v2268_v13 = vmul.f32 %v9803_v12, %v9767_v35  ;;  %v2269_v4 = vmul.f32 %v9804_v20, %v9767_v35 }
 0x1f1   : > { %v2613_v2 = vadd.f32 %v9821_v6, %v2489_v49  ;;  %v2327_v38 = vrot.slane %v2270_v24, 1  ;;  %v1634_v51 = vrot.slane %v1578_v11, 2  ;;  %v1635_v18 = vrot.slane %v1579_v14, 2 }
 0x1f2   : > { %v1637_v55 = vrot.slane %v1580_v29, 2  ;;  %v2827_v60 = vrot.slane %v7479_v57, 2  ;;  %v1639_v1 = vrot.slane %v1581_v39, 2  ;;  %v1640_v3 = vrot.slane %v1582_v9, 2  ;;  %v9826_v29 = vld [vmem:[#allocation243_spill] sm:$0xff] }
 0x1f3   : > { %v2737_v10 = vadd.f32 %v9823_v15, %v2613_v2  ;;  %v2319_v33 = vrot.slane %v2265_v58, 1  ;;  %v2320_v19 = vrot.slane %v2266_v26, 1  ;;  %v2322_v62 = vrot.slane %v2267_v45, 1 }
 0x1f4   : > { %v2324_v6 = vrot.slane %v2268_v13, 1  ;;  %v2325_v52 = vrot.slane %v2269_v4, 1  ;;  %v7519_v24 = vsel %vm1365_vm0, %v1634_v51, %v1635_v18  ;;  %v7522_v11 = vsel %vm1365_vm0, %v1635_v18, %v1637_v55 }
 0x1f5   : > { %v2861_v49 = vadd.f32 %v2808_v44, %v2737_v10  ;;  %9824 = vst [vmem:[#allocation221_spill] sm:$0xff] %v7519_v24  ;;  %9825 = vst [vmem:[#allocation129_spill] sm:$0xff] %v7522_v11  ;;  %v2765_v57 = vmul.f32 %v9801_v61, %v9774_v40  ;;  %v2766_v14 = vmul.f32 %v9802_v47, %v9774_v40 }
 0x1f6   : > { %v7530_v44 = vsel %vm1365_vm0, %v1639_v1, %v1640_v3  ;;  %v7533_v9 = vsel %vm1365_vm0, %v1640_v3, %v1642_v0  ;;  %v2767_v58 = vmul.f32 %v7411_v22, %v9774_v40  ;;  %v7538_v26 = vsel %vm772_vm1, %v2319_v33, %v2320_v19 }
 0x1f7   : > { %v2985_v39 = vadd.f32 %v9826_v29, %v2861_v49  ;;  %9827 = vst [vmem:[#allocation112_spill] sm:$0xff] %v7530_v44  ;;  %9828 = vst [vmem:[#allocation161_spill] sm:$0xff] %v7533_v9  ;;  %v7541_v45 = vsel %vm772_vm1, %v2320_v19, %v2322_v62  ;;  %v2768_v2 = vmul.f32 %v9803_v12, %v9774_v40  ;;  %v2819_v55 = vrot.slane %v2765_v57, 2  ;;  %v4660_v29 = vpop.permute.xlu1 %4659 }
 0x1f8   : > { %9829 = vst [vmem:[#allocation35_spill] sm:$0xff] %v7538_v26  ;;  %9830 = vst [vmem:[#allocation50_spill] sm:$0xff] %v7541_v45  ;;  %v2769_v13 = vmul.f32 %v9804_v20, %v9774_v40  ;;  %v7549_v0 = vsel %vm772_vm1, %v2324_v6, %v2325_v52  ;;  %v7552_v51 = vsel %vm772_vm1, %v2325_v52, %v2327_v38  ;;  %v2820_v15 = vrot.slane %v2766_v14, 2 }
 0x1f9   : > { %v3033_v4 = vadd.f32 %v7316_v27, %v2985_v39  ;;  %9831 = vst [vmem:[#allocation224_spill] sm:$0xff] %v7549_v0  ;;  %9832 = vst [vmem:[#allocation165_spill] sm:$0xff] %v7552_v51  ;;  %v3452_v18 = vmul.f32 %v9801_v61, %v9820_v23  ;;  %v3453_v10 = vmul.f32 %v9802_v47, %v9820_v23  ;;  %v2822_v27 = vrot.slane %v2767_v58, 2 }
 0x1fa   : > { %v3454_v1 = vmul.f32 %v7411_v22, %v9820_v23  ;;  %v3455_v33 = vmul.f32 %v9803_v12, %v9820_v23  ;;  %v3456_v52 = vmul.f32 %v9804_v20, %v9820_v23  ;;  %v3952_v38 = vmul.f32 %v9801_v61, %v9822_v30 }
 0x1fb   : > { %v3077_v3 = vadd.f32 %v7348_v7, %v3033_v4  ;;  %v3953_v19 = vmul.f32 %v9802_v47, %v9822_v30  ;;  %v3955_v62 = vmul.f32 %v9803_v12, %v9822_v30  ;;  %v3956_v49 = vmul.f32 %v9804_v20, %v9822_v30 }
 0x1fc   : > { %v2824_v6 = vrot.slane %v2768_v2, 2  ;;  %v2825_v57 = vrot.slane %v2769_v13, 2  ;;  %v3504_v14 = vrot.slane %v3452_v18, 1  ;;  %v3505_v39 = vrot.slane %v3453_v10, 1  ;;  %v9835_v2 = vld [vmem:[#allocation80_spill] sm:$0xff] }
 0x1fd   : > { %v3121_v7 = vadd.f32 %v7468_v25, %v3077_v3  ;;  %v3507_v58 = vrot.slane %v3454_v1, 1  ;;  %v4009_v4 = vrot.slane %v3955_v62, 2  ;;  %v4010_v63 = vrot.slane %v3956_v49, 2  ;;  %v9847_v62 = vld [vmem:[#allocation61_spill] sm:$0xff] }
 0x1fe   : > { %v3509_v41 = vrot.slane %v3455_v33, 1  ;;  %v3510_v51 = vrot.slane %v3456_v52, 1  ;;  %v3954_v12 = vmul.f32 %v7411_v22, %v9822_v30  ;;  %v4004_v0 = vrot.slane %v3952_v38, 2 }
 0x1ff   : > { %v3165_v61 = vadd.f32 %v7472_v43, %v3121_v7  ;;  %v4005_v45 = vrot.slane %v3953_v19, 2  ;;  %v7578_v26 = vsel %vm1365_vm0, %v4009_v4, %v4010_v63  ;;  %v7580_v25 = vunpack.i.h.bf16 %v4660_v29  ;;  %v9852_v4 = vld [vmem:[#allocation162_spill] sm:$0xff] }
 0x200   : > { %9833 = vst [vmem:[#allocation166_spill] sm:$0xff] %v7578_v26  ;;  %v7586_v18 = vsel %vm1365_vm0, %v2819_v55, %v2820_v15  ;;  %v7589_v43 = vsel %vm1365_vm0, %v2820_v15, %v2822_v27  ;;  %v7592_v10 = vsel %vm1365_vm0, %v2824_v6, %v2825_v57  ;;  %v7595_v22 = vsel %vm1365_vm0, %v2825_v57, %v2827_v60  ;;  %v9845_v60 = vld [vmem:[#allocation62_spill] sm:$0xff]  ;;  %v9849_v6 = vld [vmem:[#allocation180_spill] sm:$0xff] }
 0x201   : > { %9834 = vst [vmem:[#allocation130_spill] sm:$0xff] %v7580_v25  ;;  %v7583_v13 = vadd.f32 %v9835_v2, %v3165_v61  ;;  %9836 = vst [vmem:[#allocation120_spill] sm:$0xff] %v7586_v18  ;;  %v7598_v1 = vsel %vm772_vm1, %v3504_v14, %v3505_v39  ;;  %v7601_v3 = vsel %vm772_vm1, %v3505_v39, %v3507_v58  ;;  %v7603_v33 = vunpack.i.l.bf16 %v4660_v29  ;;  %v9851_v58 = vld [vmem:[#allocation132_spill] sm:$0xff] }
 0x202   : > { %9837 = vst [vmem:[#allocation124_spill] sm:$0xff] %v7589_v43  ;;  %9838 = vst [vmem:[#allocation12_spill] sm:$0xff] %v7592_v10  ;;  %v7606_v55 = vsel %vm772_vm1, %v3509_v41, %v3510_v51  ;;  %v9843_v15 = vrot.slane %v7497_v17, 1  ;;  %v4007_v52 = vrot.slane %v3954_v12, 2  ;;  %v7615_v38 = vmul.f32 %v9845_v60, %v9756_v5  ;;  %v9848_v17 = vld [vmem:[#allocation140_spill] sm:$0xff]  ;;  %v9917_v43 = vld [vmem:[#allocation186_spill] sm:$0xff] }
 0x203   : > { %9839 = vst [vmem:[#allocation113_spill] sm:$0xff] %v7595_v22  ;;  %9840 = vst [vmem:[#allocation47_spill] sm:$0xff] %v7598_v1  ;;  %v7618_v19 = vsel %vm1365_vm0, %v4004_v0, %v4005_v45  ;;  %v7622_v49 = vmul.f32 %v9847_v62, %v9756_v5  ;;  %v1060_v41 = vmul.f32 %v7580_v25, %v9758_v34  ;;  %v9850_v0 = vld [vmem:[#allocation179_spill] sm:$0xff]  ;;  %v9855_v26 = vrot.slane %v7508_v16, 2 }
 0x204   : > { %9841 = vst [vmem:[#allocation128_spill] sm:$0xff] %v7601_v3  ;;  %9842 = vst [vmem:[#allocation239_spill] sm:$0xff] %v7606_v55  ;;  %v7611_v27 = vsel %vm772_vm1, %v3510_v51, %v9843_v15  ;;  %v998_v7 = vadd.f32 %v9848_v17, %v6698_v36  ;;  %v7630_v51 = vmul.f32 %v7580_v25, %v9767_v35  ;;  %v9874_v3 = vld [vmem:[#allocation38_spill] sm:$0xff] }
 0x205   : > { %9844 = vst [vmem:[#allocation171_spill] sm:$0xff] %v7611_v27  ;;  %9846 = vst [vmem:[#allocation44_spill] sm:$0xff] %v7618_v19  ;;  %v1055_v57 = vmul.f32 %v9849_v6, %v9758_v34  ;;  %v1056_v14 = vmul.f32 %v9850_v0, %v9758_v34  ;;  %v1057_v29 = vmul.f32 %v7603_v33, %v9758_v34 }
 0x206   : > { %v7640_v39 = vmul.f32 %v7580_v25, %v9820_v23  ;;  %v997_v36 = vadd.f32 %v9851_v58, %v6696_v46  ;;  %v7646_v61 = vmul.f32 %v9852_v4, %v9758_v34  ;;  %v1584_v12 = vmul.f32 %v9849_v6, %v9766_v37 }
 0x207   : > { %v1115_v2 = vrot.slane %v1055_v57, 1  ;;  %v1116_v15 = vrot.slane %v1056_v14, 1  ;;  %v1118_v62 = vrot.slane %v1057_v29, 1  ;;  %v1585_v17 = vmul.f32 %v9850_v0, %v9766_v37  ;;  %v9857_v14 = vld [vmem:[#allocation163_spill] sm:$0xff] }
 0x208   : > { %9853 = vst [vmem:[#allocation122_spill] sm:$0xff] %v7646_v61  ;;  %v7653_v60 = vsel %vm1365_vm0, %v4005_v45, %v4007_v52  ;;  %v7658_v46 = vsel %vm1365_vm0, %v4010_v63, %v9855_v26  ;;  %v1123_v58 = vrot.slane %v1060_v41, 1  ;;  %v1586_v19 = vmul.f32 %v7603_v33, %v9766_v37 }
 0x209   : > { %9854 = vst [vmem:[#allocation167_spill] sm:$0xff] %v7653_v60  ;;  %9856 = vst [vmem:[#allocation173_spill] sm:$0xff] %v7658_v46  ;;  %v7664_v57 = vmul.f32 %v7580_v25, %v9822_v30  ;;  %v7668_v29 = vmul.f32 %v9857_v14, %v9758_v34  ;;  %v1117_v45 = vsel %vm772_vm1, %v1115_v2, %v1116_v15  ;;  %v9160_v63 = vrot.slane %v7646_v61, 1 }
 0x20a   : > { %v1119_v52 = vsel %vm772_vm1, %v1116_v15, %v1118_v62  ;;  %v7674_v16 = vmul.f32 %v7580_v25, %v9766_v37  ;;  %v1153_v26 = vadd.f32 %v1117_v45, %v997_v36  ;;  %v2337_v46 = vrot.slane %v7630_v51, 1  ;;  %v9860_v15 = vld [vmem:[#allocation268_spill] sm:$0xff]  ;;  %v9861_v37 = vld [vmem:[#allocation45_spill] sm:$0xff]  ;;  %v9862_v36 = vld [vmem:[#allocation142_spill] sm:$0xff] }
 0x20b   : > { %9858 = vst [vmem:[#allocation172_spill] sm:$0xff] %v7668_v29  ;;  %v1154_v41 = vadd.f32 %v1119_v52, %v998_v7  ;;  %v1644_v27 = vrot.slane %v1584_v12, 2  ;;  %v1645_v55 = vrot.slane %v1585_v17, 2  ;;  %v1124_v34 = vsel %vm772_vm1, %v9160_v63, %v1123_v58  ;;  %v9863_v17 = vld [vmem:[#allocation249_spill] sm:$0xff]  ;;  %v9864_v52 = vld [vmem:[#allocation250_spill] sm:$0xff]  ;;  %v9873_v29 = vld [vmem:[#allocation260_spill] sm:$0xff] }
 0x20c   : > { %9859 = vst [vmem:[#allocation155_spill] sm:$0xff] %v7674_v16  ;;  %v1309_v2 = vadd.f32 %v6773_v59, %v1153_v26  ;;  %v1647_v25 = vrot.slane %v1586_v19, 2  ;;  %v1000_v7 = vadd.f32 %v9862_v36, %v9861_v37  ;;  %v2271_v12 = vmul.f32 %v9849_v6, %v9767_v35  ;;  %v9867_v36 = vld [vmem:[#allocation143_spill] sm:$0xff] }
 0x20d   : > { %v1310_v62 = vadd.f32 %v9860_v15, %v1154_v41  ;;  %v2272_v59 = vmul.f32 %v9850_v0, %v9767_v35  ;;  %v2273_v19 = vmul.f32 %v7603_v33, %v9767_v35  ;;  %v1646_v26 = vsel %vm1365_vm0, %v1644_v27, %v1645_v55  ;;  %v9866_v15 = vld [vmem:[#allocation133_spill] sm:$0xff] }
 0x20e   : > { %v1434_v45 = vadd.f32 %v9863_v17, %v1309_v2  ;;  %v1156_v58 = vadd.f32 %v1124_v34, %v1000_v7  ;;  %v7699_v37 = vmul.f32 %v9852_v4, %v9767_v35  ;;  %v2771_v41 = vmul.f32 %v9849_v6, %v9774_v40 }
 0x20f   : > { %v1435_v60 = vadd.f32 %v9864_v52, %v1310_v62  ;;  %v1648_v17 = vsel %vm1365_vm0, %v1645_v55, %v1647_v25  ;;  %v9868_v52 = vld [vmem:[#allocation107_spill] sm:$0xff]  ;;  %v2329_v63 = vrot.slane %v2271_v12, 1  ;;  %v2330_v34 = vrot.slane %v2272_v59, 1  ;;  %v9871_v25 = vld [vmem:[#allocation33_spill] sm:$0xff]  ;;  %v9872_v55 = vld [vmem:[#allocation222_spill] sm:$0xff] }
 0x210   : > { %9865 = vst [vmem:[#allocation29_spill] sm:$0xff] %v7699_v37  ;;  %v1558_v2 = vadd.f32 %v9866_v15, %v1434_v45  ;;  %v1883_v51 = vmul.f32 %v9868_v52, %v9760_v42  ;;  %v2772_v27 = vmul.f32 %v9850_v0, %v9774_v40  ;;  %v2773_v7 = vmul.f32 %v7603_v33, %v9774_v40 }
 0x211   : > { %v1559_v62 = vadd.f32 %v9867_v36, %v1435_v60  ;;  %v1927_v45 = vmul.f32 %v9852_v4, %v9791_v21  ;;  %v2332_v15 = vrot.slane %v2273_v19, 1  ;;  %v9869_v60 = vld [vmem:[#allocation267_spill] sm:$0xff]  ;;  %v1971_v52 = vmul.f32 %v9872_v55, %v9871_v25  ;;  %v9900_v55 = vld [vmem:[#allocation126_spill] sm:$0xff] }
 0x212   : > { %v1682_v16 = vadd.f32 %v1646_v26, %v1558_v2  ;;  %v7715_v36 = vadd.f32 %v9869_v60, %v1156_v58  ;;  %v9165_v12 = vrot.slane %v7699_v37, 1  ;;  %v2829_v59 = vrot.slane %v2771_v41, 2  ;;  %v9898_v37 = vld [vmem:[#allocation48_spill] sm:$0xff] }
 0x213   : > { %v1683_v35 = vadd.f32 %v1648_v17, %v1559_v62  ;;  %v2830_v40 = vrot.slane %v2772_v27, 2  ;;  %v2832_v26 = vrot.slane %v2773_v7, 2  ;;  %v7723_v2 = vsel %vm772_vm1, %v2329_v63, %v2330_v34 }
 0x214   : > { %9870 = vst [vmem:[#allocation184_spill] sm:$0xff] %v7715_v36  ;;  %v1806_v61 = vadd.f32 %v9873_v29, %v1682_v16  ;;  %9875 = vst [vmem:[#allocation2_spill] sm:$0xff] %v7723_v2  ;;  %v3458_v19 = vmul.f32 %v9849_v6, %v9820_v23  ;;  %v3459_v58 = vmul.f32 %v9850_v0, %v9820_v23 }
 0x215   : > { %v1807_v1 = vadd.f32 %v9874_v3, %v1683_v35  ;;  %v3460_v62 = vmul.f32 %v7603_v33, %v9820_v23  ;;  %v7736_v35 = vsel %vm772_vm1, %v2330_v34, %v2332_v15  ;;  %v2338_v3 = vsel %vm772_vm1, %v9165_v12, %v2337_v46 }
 0x216   : > { %v7732_v41 = vadd.f32 %v7615_v38, %v1806_v61  ;;  %9877 = vst [vmem:[#allocation78_spill] sm:$0xff] %v7736_v35  ;;  %v7742_v16 = vsel %vm1365_vm0, %v2829_v59, %v2830_v40  ;;  %v3461_v63 = vmul.f32 %v9857_v14, %v9820_v23  ;;  %v3462_v17 = vmul.f32 %v9852_v4, %v9820_v23 }
 0x217   : > { %v1855_v29 = vadd.f32 %v7622_v49, %v1807_v1  ;;  %9878 = vst [vmem:[#allocation125_spill] sm:$0xff] %v7742_v16  ;;  %v3514_v38 = vrot.slane %v3458_v19, 1  ;;  %v7749_v1 = vsel %vm1365_vm0, %v2830_v40, %v2832_v26  ;;  %v3515_v49 = vrot.slane %v3459_v58, 1 }
 0x218   : > { %9876 = vst [vmem:[#allocation86_spill] sm:$0xff] %v7732_v41  ;;  %9879 = vst [vmem:[#allocation240_spill] sm:$0xff] %v7749_v1  ;;  %v3517_v34 = vrot.slane %v3460_v62, 1  ;;  %v3519_v27 = vrot.slane %v3461_v63, 1  ;;  %v3520_v7 = vrot.slane %v3462_v17, 1  ;;  %v3958_v46 = vmul.f32 %v9849_v6, %v9822_v30  ;;  %v9903_v41 = vld [vmem:[#allocation196_spill] sm:$0xff] }
 0x219   : > { %v1899_v61 = vadd.f32 %v1883_v51, %v1855_v29  ;;  %v3959_v15 = vmul.f32 %v9850_v0, %v9822_v30  ;;  %v7756_v59 = vsel %vm772_vm1, %v3514_v38, %v3515_v49  ;;  %v3960_v40 = vmul.f32 %v7603_v33, %v9822_v30 }
 0x21a   : > { %9880 = vst [vmem:[#allocation90_spill] sm:$0xff] %v7756_v59  ;;  %v7759_v19 = vsel %vm772_vm1, %v3515_v49, %v3517_v34  ;;  %v7764_v51 = vsel %vm772_vm1, %v3519_v27, %v3520_v7  ;;  %v9883_v26 = vrot.slane %v7640_v39, 1  ;;  %v3962_v58 = vmul.f32 %v9852_v4, %v9822_v30  ;;  %v9886_v39 = vld [vmem:[#allocation46_spill] sm:$0xff]  ;;  %v9887_v27 = vld [vmem:[#allocation83_spill] sm:$0xff] }
 0x21b   : > { %v1943_v60 = vadd.f32 %v1927_v45, %v1899_v61  ;;  %9881 = vst [vmem:[#allocation51_spill] sm:$0xff] %v7759_v19  ;;  %9882 = vst [vmem:[#allocation127_spill] sm:$0xff] %v7764_v51  ;;  %v3961_v45 = vmul.f32 %v9857_v14, %v9822_v30  ;;  %v4014_v29 = vrot.slane %v3958_v46, 2  ;;  %v4015_v63 = vrot.slane %v3959_v15, 2  ;;  %v9885_v61 = vld [vmem:[#allocation40_spill] sm:$0xff]  ;;  %v9909_v19 = vld [vmem:[#allocation34_spill] sm:$0xff] }
 0x21c   : > { %v7769_v6 = vsel %vm772_vm1, %v3520_v7, %v9883_v26  ;;  %v4017_v17 = vrot.slane %v3960_v40, 2  ;;  %v4020_v33 = vrot.slane %v3962_v58, 2  ;;  %v7777_v49 = vmul.f32 %v9885_v61, %v9756_v5  ;;  %v9890_v46 = vld [vmem:[#allocation96_spill] sm:$0xff] }
 0x21d   : > { %9884 = vst [vmem:[#allocation243_spill] sm:$0xff] %v7769_v6  ;;  %v1987_v62 = vadd.f32 %v1971_v52, %v1943_v60  ;;  %v4019_v38 = vrot.slane %v3961_v45, 2  ;;  %v7781_v34 = vmul.f32 %v9886_v39, %v9756_v5  ;;  %v7785_v26 = vsel %vm1365_vm0, %v4014_v29, %v4015_v63  ;;  %v4671_v60 = vpop.permute.xlu1 %4670 }
 0x21e   : > { %9888 = vst [vmem:[#allocation80_spill] sm:$0xff] %v7785_v26  ;;  %v7788_v52 = vsel %vm1365_vm0, %v4015_v63, %v4017_v17  ;;  %v7792_v15 = vmul.f32 %v9890_v46, %v9760_v42  ;;  %v9892_v45 = vrot.slane %v7664_v57, 2  ;;  %v9896_v17 = vld [vmem:[#allocation147_spill] sm:$0xff]  ;;  %v7823_v23 = vunpack.i.l.bf16 %v4671_v60  ;;  %v9907_v26 = vld [vmem:[#allocation204_spill] sm:$0xff] }
 0x21f   : > { %v2117_v7 = vadd.f32 %v9887_v27, %v1987_v62  ;;  %9889 = vst [vmem:[#allocation61_spill] sm:$0xff] %v7788_v52  ;;  %v7795_v40 = vsel %vm1365_vm0, %v4019_v38, %v4020_v33  ;;  %v9894_v62 = vld [vmem:[#allocation98_spill] sm:$0xff] }
 0x220   : > { %9891 = vst [vmem:[#allocation140_spill] sm:$0xff] %v7795_v40  ;;  %v7800_v58 = vsel %vm1365_vm0, %v4020_v33, %v9892_v45  ;;  %v7804_v29 = vmul.f32 %v9894_v62, %v9760_v42  ;;  %v9895_v27 = vld [vmem:[#allocation10_spill] sm:$0xff]  ;;  %v4673_v45 = vunpack.i.h.bf16 %v4671_v60  ;;  %v9908_v60 = vld [vmem:[#allocation32_spill] sm:$0xff] }
 0x221   : > { %9893 = vst [vmem:[#allocation180_spill] sm:$0xff] %v7800_v58  ;;  %v7808_v63 = vmul.f32 %v9885_v61, %v9895_v27  ;;  %v2245_v12 = vadd.f32 %v9896_v17, %v2117_v7  ;;  %v7813_v30 = vmul.f32 %v9886_v39, %v9895_v27  ;;  %v9897_v38 = vld [vmem:[#allocation18_spill] sm:$0xff]  ;;  %v9899_v61 = vld [vmem:[#allocation195_spill] sm:$0xff]  ;;  %v9904_v58 = vld [vmem:[#allocation160_spill] sm:$0xff]  ;;  %v1697_v10 = vmul.f32 %v9689_v28, %v9908_v60 }
 0x222   : > { %v7817_v57 = vmul.f32 %v9890_v46, %v9897_v38  ;;  %v7821_v33 = vmul.f32 %v9894_v62, %v9897_v38  ;;  %v1145_v14 = vadd.f32 %v9899_v61, %v9898_v37  ;;  %v9901_v7 = vld [vmem:[#allocation207_spill] sm:$0xff]  ;;  %v9905_v46 = vld [vmem:[#allocation189_spill] sm:$0xff]  ;;  %v9906_v52 = vld [vmem:[#allocation30_spill] sm:$0xff]  ;;  %v1701_v51 = vmul.f32 %v4673_v45, %v9908_v60 }
 0x223   : > { %v1146_v17 = vadd.f32 %v9901_v7, %v9900_v55  ;;  %v2373_v36 = vadd.f32 %v2338_v3, %v2245_v12  ;;  %v9902_v39 = vld [vmem:[#allocation131_spill] sm:$0xff]  ;;  %v1148_v40 = vadd.f32 %v9905_v46, %v9904_v58  ;;  %v1199_v62 = vmul.f32 %v9907_v26, %v9906_v52  ;;  %v9910_v37 = vld [vmem:[#allocation36_spill] sm:$0xff]  ;;  %v9911_v55 = vld [vmem:[#allocation269_spill] sm:$0xff] }
 0x224   : > { %v1147_v4 = vadd.f32 %v9903_v41, %v9902_v39  ;;  %v1204_v6 = vmul.f32 %v4673_v45, %v9906_v52  ;;  %v7838_v59 = vmul.f32 %v4673_v45, %v9909_v19  ;;  %v7841_v61 = vmul.f32 %v4673_v45, %v9910_v37  ;;  %v9913_v41 = vld [vmem:[#allocation37_spill] sm:$0xff] }
 0x225   : > { %v7844_v12 = vadd.f32 %v9911_v55, %v2373_v36  ;;  %v7847_v3 = vmul.f32 %v4673_v45, %v9913_v41  ;;  %v9914_v58 = vld [vmem:[#allocation41_spill] sm:$0xff]  ;;  %v1200_v39 = vmul.f32 %v9689_v28, %v9906_v52  ;;  %v1756_v1 = vrot.slane %v1701_v51, 2 }
 0x226   : > { %v7850_v7 = vmul.f32 %v4673_v45, %v9914_v58  ;;  %v1259_v46 = vrot.slane %v1204_v6, 1  ;;  %v1201_v55 = vmul.f32 %v7823_v23, %v9906_v52  ;;  %v1203_v18 = vmul.f32 %v9917_v43, %v9906_v52 }
 0x227   : > { %9912 = vst [vmem:[#allocation132_spill] sm:$0xff] %v7844_v12  ;;  %v9916_v12 = vld [vmem:[#allocation109_spill] sm:$0xff]  ;;  %v1251_v35 = vrot.slane %v1199_v62, 1  ;;  %v1252_v6 = vrot.slane %v1200_v39, 1  ;;  %v1696_v51 = vmul.f32 %v9907_v26, %v9908_v60  ;;  %v1698_v36 = vmul.f32 %v7823_v23, %v9908_v60 }
 0x228   : > { %9915 = vst [vmem:[#allocation268_spill] sm:$0xff] %v7850_v7  ;;  %v1202_v45 = vmul.f32 %v9916_v12, %v9906_v52  ;;  %v1254_v16 = vrot.slane %v1201_v55, 1  ;;  %v1257_v9 = vrot.slane %v1203_v18, 1  ;;  %v1699_v44 = vmul.f32 %v9916_v12, %v9908_v60  ;;  %v9918_v18 = vld [vmem:[#allocation63_spill] sm:$0xff]  ;;  %v9919_v7 = vld [vmem:[#allocation77_spill] sm:$0xff] }
 0x229   : > { %v1253_v2 = vsel %vm772_vm1, %v1251_v35, %v1252_v6  ;;  %v1700_v62 = vmul.f32 %v9917_v43, %v9908_v60  ;;  %v1748_v55 = vrot.slane %v1696_v51, 2  ;;  %v1751_v48 = vrot.slane %v1698_v36, 2  ;;  %v9922_v51 = vld [vmem:[#allocation95_spill] sm:$0xff] }
 0x22a   : > { %v1256_v22 = vrot.slane %v1202_v45, 1  ;;  %v1255_v39 = vsel %vm772_vm1, %v1252_v6, %v1254_v16  ;;  %v1301_v0 = vadd.f32 %v1253_v2, %v1145_v14  ;;  %v1749_v45 = vrot.slane %v1697_v10, 2  ;;  %v9920_v2 = vld [vmem:[#allocation85_spill] sm:$0xff]  ;;  %v9921_v6 = vld [vmem:[#allocation71_spill] sm:$0xff] }
 0x22b   : > { %v1260_v11 = vsel %vm772_vm1, %v1257_v9, %v1259_v46  ;;  %v1302_v24 = vadd.f32 %v1255_v39, %v1146_v17  ;;  %v1753_v16 = vrot.slane %v1699_v44, 2  ;;  %v1754_v14 = vrot.slane %v1700_v62, 2  ;;  %v9923_v17 = vld [vmem:[#allocation54_spill] sm:$0xff]  ;;  %v9926_v44 = vld [vmem:[#allocation76_spill] sm:$0xff]  ;;  %v9928_v36 = vld [vmem:[#allocation187_spill] sm:$0xff] }
 0x22c   : > { %v1258_v20 = vsel %vm772_vm1, %v1256_v22, %v1257_v9  ;;  %v1304_v35 = vadd.f32 %v1260_v11, %v1148_v40  ;;  %v1426_v8 = vadd.f32 %v9918_v18, %v1301_v0  ;;  %v1750_v52 = vsel %vm1365_vm0, %v1748_v55, %v1749_v45  ;;  %v9924_v11 = vld [vmem:[#allocation84_spill] sm:$0xff]  ;;  %v9927_v46 = vld [vmem:[#allocation70_spill] sm:$0xff]  ;;  %v9930_v55 = vld [vmem:[#allocation209_spill] sm:$0xff] }
 0x22d   : > { %v1303_v56 = vadd.f32 %v1258_v20, %v1147_v4  ;;  %v1427_v58 = vadd.f32 %v9919_v7, %v1302_v24  ;;  %v1752_v60 = vsel %vm1365_vm0, %v1749_v45, %v1751_v48  ;;  %v1832_v20 = vmul.f32 %v9923_v17, %v9756_v5  ;;  %v9925_v24 = vld [vmem:[#allocation58_spill] sm:$0xff]  ;;  %v9932_v18 = vld [vmem:[#allocation152_spill] sm:$0xff] }
 0x22e   : > { %v1429_v22 = vadd.f32 %v9921_v6, %v1304_v35  ;;  %v1550_v9 = vadd.f32 %v9922_v51, %v1426_v8  ;;  %v1755_v0 = vsel %vm1365_vm0, %v1753_v16, %v1754_v14  ;;  %v1757_v40 = vsel %vm1365_vm0, %v1754_v14, %v1756_v1  ;;  %v9929_v8 = vld [vmem:[#allocation97_spill] sm:$0xff] }
 0x22f   : > { %v1428_v10 = vadd.f32 %v9920_v2, %v1303_v56  ;;  %v1551_v4 = vadd.f32 %v9924_v11, %v1427_v58  ;;  %v1833_v48 = vmul.f32 %v9925_v24, %v9756_v5  ;;  %v1874_v39 = vmul.f32 %v9929_v8, %v9760_v42  ;;  %v9931_v58 = vld [vmem:[#allocation102_spill] sm:$0xff]  ;;  %v9933_v14 = vld [vmem:[#allocation197_spill] sm:$0xff] }
 0x230   : > { %v1553_v56 = vadd.f32 %v9927_v46, %v1429_v22  ;;  %v1674_v62 = vadd.f32 %v9928_v36, %v1550_v9  ;;  %v1875_v35 = vmul.f32 %v9931_v58, %v9760_v42  ;;  %v1919_v1 = vmul.f32 %v9932_v18, %v9791_v21  ;;  %v9935_v11 = vld [vmem:[#allocation274_spill] sm:$0xff] }
 0x231   : > { %v1552_v7 = vadd.f32 %v9926_v44, %v1428_v10  ;;  %v1675_v45 = vadd.f32 %v9930_v55, %v1551_v4  ;;  %v1921_v16 = vmul.f32 %v9802_v47, %v9791_v21  ;;  %v9934_v10 = vld [vmem:[#allocation190_spill] sm:$0xff]  ;;  %v1963_v51 = vmul.f32 %v9917_v43, %v9871_v25  ;;  %v9936_v44 = vld [vmem:[#allocation276_spill] sm:$0xff] }
 0x232   : > { %v1677_v6 = vadd.f32 %v9934_v10, %v1553_v56  ;;  %v1798_v22 = vadd.f32 %v1750_v52, %v1674_v62  ;;  %v2234_v4 = vadd.f32 %v9935_v11, %v7437_v32  ;;  %v2235_v46 = vadd.f32 %v9936_v44, %v7440_v54  ;;  %v9937_v62 = vld [vmem:[#allocation198_spill] sm:$0xff] }
 0x233   : > { %v1676_v2 = vadd.f32 %v9933_v14, %v1552_v7  ;;  %v1799_v9 = vadd.f32 %v1752_v60, %v1675_v45  ;;  %v2387_v36 = vmul.f32 %v9907_v26, %v9909_v19  ;;  %v2388_v52 = vmul.f32 %v9689_v28, %v9909_v19  ;;  %v9938_v45 = vld [vmem:[#allocation56_spill] sm:$0xff] }
 0x234   : > { %v1801_v21 = vadd.f32 %v1757_v40, %v1677_v6  ;;  %v1846_v7 = vadd.f32 %v7777_v49, %v1798_v22  ;;  %v2362_v60 = vadd.f32 %v9937_v62, %v2234_v4  ;;  %v2363_v14 = vadd.f32 %v9938_v45, %v2235_v46  ;;  %v9943_v45 = vld [vmem:[#allocation87_spill] sm:$0xff] }
 0x235   : > { %v1800_v55 = vadd.f32 %v1755_v0, %v1676_v2  ;;  %v1847_v56 = vadd.f32 %v7781_v34, %v1799_v9  ;;  %v2389_v32 = vmul.f32 %v7823_v23, %v9909_v19  ;;  %v2390_v0 = vmul.f32 %v9916_v12, %v9909_v19  ;;  %v9939_v9 = vld [vmem:[#allocation164_spill] sm:$0xff] }
 0x236   : > { %v1849_v10 = vadd.f32 %v1833_v48, %v1801_v21  ;;  %v1890_v11 = vadd.f32 %v1874_v39, %v1846_v7  ;;  %v2391_v49 = vmul.f32 %v9917_v43, %v9909_v19  ;;  %v2437_v2 = vrot.slane %v2387_v36, 1  ;;  %v9940_v39 = vld [vmem:[#allocation177_spill] sm:$0xff] }
 0x237   : > { %v1848_v54 = vadd.f32 %v1832_v20, %v1800_v55  ;;  %v1891_v40 = vadd.f32 %v1875_v35, %v1847_v56  ;;  %v2438_v6 = vrot.slane %v2388_v52, 1  ;;  %v2440_v44 = vrot.slane %v2389_v32, 1  ;;  %v9941_v7 = vld [vmem:[#allocation217_spill] sm:$0xff] }
 0x238   : > { %v1893_v22 = vadd.f32 %v7804_v29, %v1849_v10  ;;  %v1934_v4 = vadd.f32 %v9939_v9, %v1890_v11  ;;  %v2442_v20 = vrot.slane %v2390_v0, 1  ;;  %v2443_v48 = vrot.slane %v2391_v49, 1  ;;  %v9944_v11 = vld [vmem:[#allocation72_spill] sm:$0xff]  ;;  %v9948_v9 = vld [vmem:[#allocation278_spill] sm:$0xff] }
 0x239   : > { %v1892_v34 = vadd.f32 %v7792_v15, %v1848_v54  ;;  %v1935_v46 = vadd.f32 %v1919_v1, %v1891_v40  ;;  %v2439_v21 = vsel %vm772_vm1, %v2437_v2, %v2438_v6  ;;  %v2441_v52 = vsel %vm772_vm1, %v2438_v6, %v2440_v44  ;;  %v9945_v40 = vld [vmem:[#allocation89_spill] sm:$0xff]  ;;  %v9947_v6 = vld [vmem:[#allocation79_spill] sm:$0xff] }
 0x23a   : > { %v7933_v35 = vadd.f32 %v1921_v16, %v1893_v22  ;;  %v1978_v36 = vadd.f32 %v9941_v7, %v1934_v4  ;;  %v2444_v29 = vsel %vm772_vm1, %v2442_v20, %v2443_v48  ;;  %v9942_v56 = vrot.slane %v7838_v59, 1  ;;  %v9949_v44 = vld [vmem:[#allocation275_spill] sm:$0xff] }
 0x23b   : > { %v7931_v55 = vadd.f32 %v9940_v39, %v1892_v34  ;;  %v1979_v15 = vadd.f32 %v1963_v51, %v1935_v46  ;;  %v2490_v62 = vadd.f32 %v2439_v21, %v2362_v60  ;;  %v2491_v54 = vadd.f32 %v2441_v52, %v2363_v14  ;;  %v9946_v60 = vld [vmem:[#allocation277_spill] sm:$0xff]  ;;  %v9951_v7 = vld [vmem:[#allocation279_spill] sm:$0xff] }
 0x23c   : > { %v2446_v1 = vsel %vm772_vm1, %v2443_v48, %v9942_v56  ;;  %v2108_v32 = vadd.f32 %v9943_v45, %v1978_v36  ;;  %v2883_v10 = vmul.f32 %v9907_v26, %v9910_v37  ;;  %v2884_v16 = vmul.f32 %v9689_v28, %v9910_v37  ;;  %v9950_v48 = vld [vmem:[#allocation199_spill] sm:$0xff]  ;;  %v9953_v45 = vld [vmem:[#allocation200_spill] sm:$0xff] }
 0x23d   : > { %v2109_v0 = vadd.f32 %v9944_v11, %v1979_v15  ;;  %v2614_v51 = vadd.f32 %v9945_v40, %v2490_v62  ;;  %v2885_v49 = vmul.f32 %v7823_v23, %v9910_v37  ;;  %v2886_v59 = vmul.f32 %v9916_v12, %v9910_v37  ;;  %v9952_v56 = vld [vmem:[#allocation191_spill] sm:$0xff] }
 0x23e   : > { %v2236_v2 = vadd.f32 %v9946_v60, %v2108_v32  ;;  %v2615_v14 = vadd.f32 %v9947_v6, %v2491_v54  ;;  %v2887_v34 = vmul.f32 %v9917_v43, %v9910_v37  ;;  %v2933_v22 = vrot.slane %v2883_v10, 2 }
 0x23f   : > { %v2237_v4 = vadd.f32 %v9948_v9, %v2109_v0  ;;  %v2738_v46 = vadd.f32 %v9949_v44, %v2614_v51  ;;  %v2934_v21 = vrot.slane %v2884_v16, 2  ;;  %v2936_v20 = vrot.slane %v2885_v49, 2  ;;  %v9954_v0 = vld [vmem:[#allocation3_spill] sm:$0xff]  ;;  %v9958_v44 = vld [vmem:[#allocation66_spill] sm:$0xff] }
 0x240   : > { %v2364_v39 = vadd.f32 %v9950_v48, %v2236_v2  ;;  %v2739_v36 = vadd.f32 %v9951_v7, %v2615_v14  ;;  %v2938_v52 = vrot.slane %v2886_v59, 2  ;;  %v2939_v15 = vrot.slane %v2887_v34, 2  ;;  %v9956_v14 = vld [vmem:[#allocation69_spill] sm:$0xff]  ;;  %v9960_v48 = vld [vmem:[#allocation280_spill] sm:$0xff] }
 0x241   : > { %v2365_v62 = vadd.f32 %v9952_v56, %v2237_v4  ;;  %v2862_v32 = vadd.f32 %v9953_v45, %v2738_v46  ;;  %v2935_v54 = vsel %vm1365_vm0, %v2933_v22, %v2934_v21  ;;  %v2937_v10 = vsel %vm1365_vm0, %v2934_v21, %v2936_v20  ;;  %v9963_v56 = vld [vmem:[#allocation201_spill] sm:$0xff] }
 0x242   : > { %v2492_v11 = vadd.f32 %v2444_v29, %v2364_v39  ;;  %v2863_v40 = vadd.f32 %v9954_v0, %v2739_v36  ;;  %v2940_v16 = vsel %vm1365_vm0, %v2938_v52, %v2939_v15  ;;  %v9955_v51 = vrot.slane %v7841_v61, 2  ;;  %v9957_v61 = vld [vmem:[#allocation73_spill] sm:$0xff] }
 0x243   : > { %v2493_v60 = vadd.f32 %v2446_v1, %v2365_v62  ;;  %v2986_v59 = vadd.f32 %v2935_v54, %v2862_v32  ;;  %v3020_v2 = vmul.f32 %v9923_v17, %v9895_v27  ;;  %v3021_v6 = vmul.f32 %v9925_v24, %v9895_v27  ;;  %v9965_v32 = vld [vmem:[#allocation168_spill] sm:$0xff] }
 0x244   : > { %v2942_v49 = vsel %vm1365_vm0, %v2939_v15, %v9955_v51  ;;  %v2616_v34 = vadd.f32 %v9956_v14, %v2492_v11  ;;  %v2987_v22 = vadd.f32 %v2937_v10, %v2863_v40  ;;  %v3062_v29 = vmul.f32 %v9929_v8, %v9897_v38  ;;  %v9966_v10 = vld [vmem:[#allocation211_spill] sm:$0xff]  ;;  %v9967_v14 = vld [vmem:[#allocation218_spill] sm:$0xff] }
 0x245   : > { %v3063_v9 = vmul.f32 %v9931_v58, %v9897_v38  ;;  %v2617_v4 = vadd.f32 %v9957_v61, %v2493_v60  ;;  %v3034_v1 = vadd.f32 %v7808_v63, %v2986_v59  ;;  %v3107_v17 = vmul.f32 %v9932_v18, %v9796_v53  ;;  %v9959_v58 = vld [vmem:[#allocation104_spill] sm:$0xff]  ;;  %v9961_v63 = vld [vmem:[#allocation281_spill] sm:$0xff] }
 0x246   : > { %v3109_v24 = vmul.f32 %v9802_v47, %v9796_v53  ;;  %v2740_v46 = vadd.f32 %v9958_v44, %v2616_v34  ;;  %v3035_v21 = vadd.f32 %v7813_v30, %v2987_v22  ;;  %v3151_v8 = vmul.f32 %v9917_v43, %v9797_v31  ;;  %v9962_v47 = vld [vmem:[#allocation188_spill] sm:$0xff] }
 0x247   : > { %v3422_v20 = vadd.f32 %v9959_v58, %v7489_v50  ;;  %v2741_v39 = vadd.f32 %v9960_v48, %v2617_v4  ;;  %v3078_v7 = vadd.f32 %v3062_v29, %v3034_v1  ;;  %v3423_v36 = vadd.f32 %v9961_v63, %v7583_v13  ;;  %v9964_v50 = vld [vmem:[#allocation192_spill] sm:$0xff]  ;;  %v9970_v58 = vld [vmem:[#allocation74_spill] sm:$0xff] }
 0x248   : > { %v3574_v18 = vmul.f32 %v9907_v26, %v9913_v41  ;;  %v2864_v52 = vadd.f32 %v9962_v47, %v2740_v46  ;;  %v3079_v15 = vadd.f32 %v3063_v9, %v3035_v21  ;;  %v3575_v62 = vmul.f32 %v9689_v28, %v9913_v41  ;;  %v9974_v47 = vld [vmem:[#allocation283_spill] sm:$0xff] }
 0x249   : > { %v3550_v30 = vadd.f32 %v9963_v56, %v3422_v20  ;;  %v2865_v45 = vadd.f32 %v9964_v50, %v2741_v39  ;;  %v3122_v54 = vadd.f32 %v9965_v32, %v3078_v7  ;;  %v3551_v11 = vadd.f32 %v9966_v10, %v3423_v36  ;;  %v9971_v7 = vld [vmem:[#allocation282_spill] sm:$0xff]  ;;  %v9977_v50 = vld [vmem:[#allocation41_spill] sm:$0xff] }
 0x24a   : > { %v3576_v13 = vmul.f32 %v7823_v23, %v9913_v41  ;;  %v2988_v0 = vadd.f32 %v2940_v16, %v2864_v52  ;;  %v3123_v40 = vadd.f32 %v3107_v17, %v3079_v15  ;;  %v3577_v51 = vmul.f32 %v9916_v12, %v9913_v41  ;;  %v9969_v17 = vld [vmem:[#allocation91_spill] sm:$0xff]  ;;  %v9975_v15 = vld [vmem:[#allocation92_spill] sm:$0xff] }
 0x24b   : > { %v3578_v60 = vmul.f32 %v9917_v43, %v9913_v41  ;;  %v2989_v59 = vadd.f32 %v2942_v49, %v2865_v45  ;;  %v3166_v34 = vadd.f32 %v9967_v14, %v3122_v54  ;;  %v3622_v22 = vrot.slane %v3574_v18, 1  ;;  %v9978_v54 = vld [vmem:[#allocation193_spill] sm:$0xff]  ;;  %v9981_v14 = vld [vmem:[#allocation284_spill] sm:$0xff] }
 0x24c   : > { %v3623_v29 = vrot.slane %v3575_v62, 1  ;;  %v3036_v9 = vadd.f32 %v3020_v2, %v2988_v0  ;;  %v3167_v16 = vadd.f32 %v3151_v8, %v3123_v40  ;;  %v3625_v61 = vrot.slane %v3576_v13, 1  ;;  %v9976_v62 = vld [vmem:[#allocation202_spill] sm:$0xff]  ;;  %v9979_v13 = vld [vmem:[#allocation81_spill] sm:$0xff]  ;;  %v9980_v40 = vld [vmem:[#allocation203_spill] sm:$0xff] }
 0x24d   : > { %v3627_v4 = vrot.slane %v3577_v51, 1  ;;  %v3037_v1 = vadd.f32 %v3021_v6, %v2989_v59  ;;  %v3296_v44 = vadd.f32 %v9969_v17, %v3166_v34  ;;  %v3628_v46 = vrot.slane %v3578_v60, 1  ;;  %v9984_v17 = vld [vmem:[#allocation75_spill] sm:$0xff] }
 0x24e   : > { %v3624_v49 = vsel %vm772_vm1, %v3622_v22, %v3623_v29  ;;  %v3080_v21 = vadd.f32 %v7817_v57, %v3036_v9  ;;  %v3297_v20 = vadd.f32 %v9970_v58, %v3167_v16  ;;  %v3626_v48 = vsel %vm772_vm1, %v3623_v29, %v3625_v61  ;;  %v9973_v57 = vld [vmem:[#allocation178_spill] sm:$0xff]  ;;  %v9982_v22 = vld [vmem:[#allocation205_spill] sm:$0xff] }
 0x24f   : > { %v3678_v39 = vadd.f32 %v3624_v49, %v3550_v30  ;;  %v3081_v2 = vadd.f32 %v7821_v33, %v3037_v1  ;;  %v3424_v63 = vadd.f32 %v9971_v7, %v3296_v44  ;;  %v3629_v8 = vsel %vm772_vm1, %v3627_v4, %v3628_v46  ;;  %v9983_v16 = vld [vmem:[#allocation93_spill] sm:$0xff] }
 0x250   : > { %v9972_v6 = vrot.slane %v7847_v3, 1  ;;  %v8034_v18 = vadd.f32 %v9973_v57, %v3080_v21  ;;  %v3425_v52 = vadd.f32 %v9974_v47, %v3297_v20  ;;  %v3679_v33 = vadd.f32 %v3626_v48, %v3551_v11  ;;  %v9987_v58 = vld [vmem:[#allocation285_spill] sm:$0xff] }
 0x251   : > { %v3802_v56 = vadd.f32 %v9975_v15, %v3678_v39  ;;  %v8038_v30 = vadd.f32 %v3109_v24, %v3081_v2  ;;  %v3552_v3 = vadd.f32 %v9976_v62, %v3424_v63  ;;  %v4070_v45 = vmul.f32 %v9907_v26, %v9977_v50  ;;  %v9988_v2 = vld [vmem:[#allocation268_spill] sm:$0xff]  ;;  %v9991_v47 = vld [vmem:[#allocation57_spill] sm:$0xff]  ;;  %v8082_v15 = vld [vmem:[%s8924_s2] ss:$0 sm:$0xff] }
 0x252   : > { %v3631_v36 = vsel %vm772_vm1, %v3628_v46, %v9972_v6  ;;  %v4071_v32 = vmul.f32 %v9689_v28, %v9977_v50  ;;  %v3553_v10 = vadd.f32 %v9978_v54, %v3425_v52  ;;  %v3803_v0 = vadd.f32 %v9979_v13, %v3679_v33  ;;  %v9986_v46 = vld [vmem:[#allocation53_spill] sm:$0xff]  ;;  %v4676_v33 = vpop.permute.xlu1 %4675  ;;  %9992 = vst [vmem:[#allocation45_spill] sm:$0xff] %v8082_v15  ;;  %v9996_v13 = vld [vmem:[#allocation194_spill] sm:$0xff] }
 0x253   : > { %v3926_v51 = vadd.f32 %v9980_v40, %v3802_v56  ;;  %v4072_v11 = vmul.f32 %v7823_v23, %v9977_v50  ;;  %v3680_v60 = vadd.f32 %v3629_v8, %v3552_v3  ;;  %v4073_v24 = vmul.f32 %v9916_v12, %v9977_v50  ;;  %v9985_v12 = vld [vmem:[#allocation212_spill] sm:$0xff]  ;;  %v9990_v8 = vld [vmem:[#allocation286_spill] sm:$0xff]  ;;  %v9994_v3 = vld [vmem:[#allocation99_spill] sm:$0xff] }
 0x254   : > { %v4074_v59 = vmul.f32 %v9917_v43, %v9977_v50  ;;  %v4118_v26 = vrot.slane %v4070_v45, 2  ;;  %v3681_v28 = vadd.f32 %v3631_v36, %v3553_v10  ;;  %v3927_v34 = vadd.f32 %v9981_v14, %v3803_v0  ;;  %v9993_v56 = vld [vmem:[#allocation206_spill] sm:$0xff] }
 0x255   : > { %v4050_v29 = vadd.f32 %v9982_v22, %v3926_v51  ;;  %v4119_v9 = vrot.slane %v4071_v32, 2  ;;  %v3804_v61 = vadd.f32 %v9983_v16, %v3680_v60  ;;  %v4121_v4 = vrot.slane %v4072_v11, 2  ;;  %v9995_v32 = vld [vmem:[#allocation105_spill] sm:$0xff] }
 0x256   : > { %v4123_v23 = vrot.slane %v4073_v24, 2  ;;  %v4124_v1 = vrot.slane %v4074_v59, 2  ;;  %v3805_v44 = vadd.f32 %v9984_v17, %v3681_v28  ;;  %v4051_v49 = vadd.f32 %v9985_v12, %v3927_v34 }
 0x257   : > { %v4120_v43 = vsel %vm1365_vm0, %v4118_v26, %v4119_v9  ;;  %v8064_v21 = vmul.f32 %v9986_v46, %v9756_v5  ;;  %v3928_v20 = vadd.f32 %v9987_v58, %v3804_v61  ;;  %v4122_v48 = vsel %vm1365_vm0, %v4119_v9, %v4121_v4  ;;  %v9997_v9 = vld [vmem:[#allocation30_spill] sm:$0xff]  ;;  %v9998_v61 = vld [vmem:[#allocation32_spill] sm:$0xff]  ;;  %v10010_v58 = vld [vmem:[#allocation121_spill] sm:$0xff] }
 0x258   : > { %v4125_v39 = vsel %vm1365_vm0, %v4123_v23, %v4124_v1  ;;  %v9989_v7 = vrot.slane %v9988_v2, 2  ;;  %v3929_v6 = vadd.f32 %v9990_v8, %v3805_v44  ;;  %v4174_v36 = vadd.f32 %v4120_v43, %v4050_v29  ;;  %v10001_v8 = vld [vmem:[#allocation210_spill] sm:$0xff]  ;;  %v10007_v2 = vld [vmem:[#allocation156_spill] sm:$0xff] }
 0x259   : > { %v4175_v57 = vadd.f32 %v4122_v48, %v4051_v49  ;;  %v8077_v52 = vmul.f32 %v9991_v47, %v9756_v5  ;;  %v4052_v62 = vadd.f32 %v9993_v56, %v3928_v20  ;;  %v8087_v45 = vmul.f32 %v9994_v3, %v9760_v42  ;;  %v10008_v48 = vld [vmem:[#allocation229_spill] sm:$0xff] }
 0x25a   : > { %v4127_v63 = vsel %vm1365_vm0, %v4124_v1, %v9989_v7  ;;  %v8091_v54 = vmul.f32 %v9995_v32, %v9760_v42  ;;  %v8095_v10 = vmul.f32 %v9986_v46, %v9895_v27  ;;  %v4053_v0 = vadd.f32 %v9996_v13, %v3929_v6  ;;  %v10000_v7 = vld [vmem:[#allocation208_spill] sm:$0xff] }
 0x25b   : > { %v4197_v40 = vadd.f32 %v8082_v15, %v4174_v36  ;;  %v4198_v51 = vadd.f32 %v8082_v15, %v4175_v57  ;;  %v8103_v11 = vmul.f32 %v9991_v47, %v9895_v27  ;;  %v4176_v60 = vadd.f32 %v4125_v39, %v4052_v62  ;;  %v10002_v57 = vld [vmem:[#allocation118_spill] sm:$0xff] }
 0x25c   : > { %v8107_v24 = vmul.f32 %v9994_v3, %v9897_v38  ;;  %v8111_v59 = vmul.f32 %v9995_v32, %v9897_v38  ;;  %v4678_v26 = vunpack.i.h.bf16 %v4676_v33  ;;  %v4177_v28 = vadd.f32 %v4127_v63, %v4053_v0 }
 0x25d   : > { %v4213_v14 = vmax.f32 %v4197_v40, 0.0  ;;  %v4214_v34 = vmax.f32 %v4198_v51, 0.0  ;;  %v8113_v22 = vunpack.i.l.bf16 %v4676_v33  ;;  %v4199_v29 = vadd.f32 %v8082_v15, %v4176_v60  ;;  %v10003_v33 = vld [vmem:[#allocation214_spill] sm:$0xff] }
 0x25e   : > { %v1210_v16 = vmul.f32 %v4678_v26, %v9997_v9  ;;  %v1707_v4 = vmul.f32 %v4678_v26, %v9998_v61  ;;  %v8124_v23 = vmul.f32 %v4678_v26, %v9909_v19  ;;  %v4200_v1 = vadd.f32 %v8082_v15, %v4177_v28  ;;  %v10029_v15 = vld [vmem:[#allocation231_spill] sm:$0xff] }
 0x25f   : > { %4229 = vst [vmem:[%s8118_s19] sm:$0xff] %v4213_v14  ;;  %4230 = vst [vmem:[%s8118_s19 + $0x8] sm:$0xff] %v4214_v34  ;;  %v8130_v17 = vmul.f32 %v4678_v26, %v9910_v37  ;;  %v8133_v44 = vmul.f32 %v4678_v26, %v9913_v41  ;;  %v8136_v12 = vmul.f32 %v4678_v26, %v9977_v50  ;;  %v4215_v49 = vmax.f32 %v4199_v29, 0.0 }
 0x260   : > { %v1269_v43 = vrot.slane %v1210_v16, 1  ;;  %v1766_v46 = vrot.slane %v1707_v4, 2  ;;  %v4216_v20 = vmax.f32 %v4200_v1, 0.0  ;;  %v1205_v63 = vmul.f32 %v10000_v7, %v9997_v9 }
 0x261   : > { %9999 = vst [vmem:[#allocation142_spill] sm:$0xff] %v8136_v12  ;;  %4231 = vst [vmem:[%s8118_s19 + $0x10] sm:$0xff] %v4215_v49  ;;  %v1206_v6 = vmul.f32 %v10001_v8, %v9997_v9  ;;  %v1207_v36 = vmul.f32 %v8113_v22, %v9997_v9  ;;  %v1208_v47 = vmul.f32 %v10002_v57, %v9997_v9 }
 0x262   : > { %4232 = vst [vmem:[%s8118_s19 + $0x18] sm:$0xff] %v4216_v20  ;;  %v1209_v56 = vmul.f32 %v10003_v33, %v9997_v9  ;;  %v1702_v62 = vmul.f32 %v10000_v7, %v9998_v61  ;;  %v1703_v3 = vmul.f32 %v10001_v8, %v9998_v61  ;;  %v1704_v32 = vmul.f32 %v8113_v22, %v9998_v61  ;;  %v10004_v20 = vld [vmem:[#allocation27_spill] sm:$0xff] }
 0x263   : > { %v1261_v13 = vrot.slane %v1205_v63, 1  ;;  %v1262_v0 = vrot.slane %v1206_v6, 1  ;;  %v1264_v40 = vrot.slane %v1207_v36, 1  ;;  %v1266_v51 = vrot.slane %v1208_v47, 1  ;;  %v10005_v6 = vld [vmem:[#allocation5_spill] sm:$0xff]  ;;  %v10006_v47 = vld [vmem:[#allocation88_spill] sm:$0xff] }
 0x264   : > { %v1267_v60 = vrot.slane %v1209_v56, 1  ;;  %v1705_v26 = vmul.f32 %v10002_v57, %v9998_v61  ;;  %v1706_v28 = vmul.f32 %v10003_v33, %v9998_v61  ;;  %v1758_v14 = vrot.slane %v1702_v62, 2 }
 0x265   : > { %v1263_v34 = vsel %vm772_vm1, %v1261_v13, %v1262_v0  ;;  %v1265_v29 = vsel %vm772_vm1, %v1262_v0, %v1264_v40  ;;  %v1759_v16 = vrot.slane %v1703_v3, 2  ;;  %v1761_v4 = vrot.slane %v1704_v32, 2  ;;  %v10009_v3 = vld [vmem:[#allocation230_spill] sm:$0xff] }
 0x266   : > { %v1268_v1 = vsel %vm772_vm1, %v1266_v51, %v1267_v60  ;;  %v1270_v49 = vsel %vm772_vm1, %v1267_v60, %v1269_v43  ;;  %v1305_v63 = vadd.f32 %v1263_v34, %v10004_v20  ;;  %v1306_v36 = vadd.f32 %v1265_v29, %v10005_v6  ;;  %v10011_v60 = vld [vmem:[#allocation19_spill] sm:$0xff]  ;;  %v10012_v29 = vld [vmem:[#allocation65_spill] sm:$0xff]  ;;  %v10015_v6 = vld [vmem:[#allocation292_spill] sm:$0xff] }
 0x267   : > { %v1307_v56 = vadd.f32 %v1268_v1, %v10006_v47  ;;  %v1308_v39 = vadd.f32 %v1270_v49, %v10007_v2  ;;  %v1760_v62 = vsel %vm1365_vm0, %v1758_v14, %v1759_v16  ;;  %v1762_v13 = vsel %vm1365_vm0, %v1759_v16, %v1761_v4  ;;  %v10013_v1 = vld [vmem:[#allocation64_spill] sm:$0xff]  ;;  %v10014_v49 = vld [vmem:[#allocation287_spill] sm:$0xff]  ;;  %v10019_v47 = vld [vmem:[#allocation106_spill] sm:$0xff] }
 0x268   : > { %v1430_v0 = vadd.f32 %v10008_v48, %v1305_v63  ;;  %v1431_v32 = vadd.f32 %v10009_v3, %v1306_v36  ;;  %v1763_v40 = vrot.slane %v1705_v26, 2  ;;  %v1764_v51 = vrot.slane %v1706_v28, 2  ;;  %v10016_v26 = vld [vmem:[#allocation293_spill] sm:$0xff]  ;;  %v10017_v63 = vld [vmem:[#allocation294_spill] sm:$0xff] }
 0x269   : > { %v1432_v43 = vadd.f32 %v10010_v58, %v1307_v56  ;;  %v1433_v34 = vadd.f32 %v10011_v60, %v1308_v39  ;;  %v1836_v20 = vmul.f32 %v10012_v29, %v9756_v5  ;;  %v1837_v2 = vmul.f32 %v10013_v1, %v9756_v5  ;;  %v10018_v39 = vld [vmem:[#allocation100_spill] sm:$0xff]  ;;  %v10020_v3 = vld [vmem:[#allocation221_spill] sm:$0xff] }
 0x26a   : > { %v1554_v14 = vadd.f32 %v10014_v49, %v1430_v0  ;;  %v1555_v16 = vadd.f32 %v10015_v6, %v1431_v32  ;;  %v1765_v48 = vsel %vm1365_vm0, %v1763_v40, %v1764_v51  ;;  %v1767_v4 = vsel %vm1365_vm0, %v1764_v51, %v1766_v46  ;;  %v10021_v5 = vld [vmem:[#allocation129_spill] sm:$0xff]  ;;  %v10022_v49 = vld [vmem:[#allocation24_spill] sm:$0xff]  ;;  %v10023_v32 = vld [vmem:[#allocation154_spill] sm:$0xff] }
 0x26b   : > { %v1556_v28 = vadd.f32 %v10016_v26, %v1432_v43  ;;  %v1557_v58 = vadd.f32 %v10017_v63, %v1433_v34  ;;  %v1878_v36 = vmul.f32 %v10018_v39, %v9760_v42  ;;  %v1879_v56 = vmul.f32 %v10019_v47, %v9760_v42  ;;  %v10024_v40 = vld [vmem:[#allocation179_spill] sm:$0xff]  ;;  %v10025_v51 = vld [vmem:[#allocation112_spill] sm:$0xff]  ;;  %v10026_v26 = vld [vmem:[#allocation161_spill] sm:$0xff] }
 0x26c   : > { %v1678_v60 = vadd.f32 %v10020_v3, %v1554_v14  ;;  %v1679_v0 = vadd.f32 %v10021_v5, %v1555_v16  ;;  %v1923_v6 = vmul.f32 %v10023_v32, %v10022_v49  ;;  %v1925_v46 = vmul.f32 %v10024_v40, %v10022_v49  ;;  %v10027_v5 = vld [vmem:[#allocation55_spill] sm:$0xff] }
 0x26d   : > { %v1680_v43 = vadd.f32 %v10025_v51, %v1556_v28  ;;  %v1681_v34 = vadd.f32 %v10026_v26, %v1557_v58  ;;  %v1965_v63 = vmul.f32 %v10001_v8, %v9871_v25  ;;  %v1967_v42 = vmul.f32 %v10003_v33, %v9871_v25  ;;  %v10028_v3 = vld [vmem:[#allocation31_spill] sm:$0xff] }
 0x26e   : > { %v1802_v9 = vadd.f32 %v1760_v62, %v1678_v60  ;;  %v1803_v14 = vadd.f32 %v1762_v13, %v1679_v0  ;;  %v1969_v16 = vmul.f32 %v10027_v5, %v9871_v25  ;;  %v1980_v61 = vadd.f32 %v10028_v3, %v7931_v55  ;;  %v10030_v25 = vld [vmem:[#allocation232_spill] sm:$0xff] }
 0x26f   : > { %v1804_v12 = vadd.f32 %v1765_v48, %v1680_v43  ;;  %v1805_v49 = vadd.f32 %v1767_v4, %v1681_v34  ;;  %v1981_v28 = vadd.f32 %v1965_v63, %v7933_v35  ;;  %v2393_v58 = vmul.f32 %v10000_v7, %v9909_v19  ;;  %v10031_v43 = vld [vmem:[#allocation288_spill] sm:$0xff]  ;;  %v10035_v63 = vld [vmem:[#allocation182_spill] sm:$0xff] }
 0x270   : > { %v1850_v51 = vadd.f32 %v8064_v21, %v1802_v9  ;;  %v1851_v26 = vadd.f32 %v8077_v52, %v1803_v14  ;;  %v2110_v62 = vadd.f32 %v10029_v15, %v1980_v61  ;;  %v2394_v13 = vmul.f32 %v10001_v8, %v9909_v19  ;;  %v10032_v9 = vld [vmem:[#allocation295_spill] sm:$0xff] }
 0x271   : > { %v1852_v60 = vadd.f32 %v1836_v20, %v1804_v12  ;;  %v1853_v0 = vadd.f32 %v1837_v2, %v1805_v49  ;;  %v2111_v55 = vadd.f32 %v10030_v25, %v1981_v28  ;;  %v2395_v48 = vmul.f32 %v8113_v22, %v9909_v19  ;;  %v10033_v25 = vld [vmem:[#allocation169_spill] sm:$0xff]  ;;  %v10034_v49 = vld [vmem:[#allocation35_spill] sm:$0xff]  ;;  %v10036_v28 = vld [vmem:[#allocation50_spill] sm:$0xff] }
 0x272   : > { %v1894_v35 = vadd.f32 %v1878_v36, %v1850_v51  ;;  %v1895_v4 = vadd.f32 %v1879_v56, %v1851_v26  ;;  %v2238_v34 = vadd.f32 %v10031_v43, %v2110_v62  ;;  %v2396_v21 = vmul.f32 %v10002_v57, %v9909_v19 }
 0x273   : > { %v1896_v52 = vadd.f32 %v8087_v45, %v1852_v60  ;;  %v1897_v15 = vadd.f32 %v8091_v54, %v1853_v0  ;;  %v2239_v61 = vadd.f32 %v10032_v9, %v2111_v55  ;;  %v2397_v12 = vmul.f32 %v10003_v33, %v9909_v19  ;;  %v10037_v45 = vld [vmem:[#allocation219_spill] sm:$0xff] }
 0x274   : > { %v1938_v20 = vadd.f32 %v10033_v25, %v1894_v35  ;;  %v1939_v2 = vadd.f32 %v1923_v6, %v1895_v4  ;;  %v2366_v36 = vadd.f32 %v10034_v49, %v2238_v34  ;;  %v2447_v56 = vrot.slane %v2393_v58, 1  ;;  %v10038_v55 = vld [vmem:[#allocation215_spill] sm:$0xff]  ;;  %v10039_v4 = vld [vmem:[#allocation60_spill] sm:$0xff]  ;;  %v10040_v58 = vld [vmem:[#allocation225_spill] sm:$0xff] }
 0x275   : > { %v1940_v14 = vadd.f32 %v10035_v63, %v1896_v52  ;;  %v1941_v3 = vadd.f32 %v1925_v46, %v1897_v15  ;;  %v2367_v51 = vadd.f32 %v10036_v28, %v2239_v61  ;;  %v2448_v26 = vrot.slane %v2394_v13, 1  ;;  %v10041_v15 = vld [vmem:[#allocation251_spill] sm:$0xff]  ;;  %v10042_v61 = vld [vmem:[#allocation252_spill] sm:$0xff]  ;;  %v10046_v63 = vld [vmem:[#allocation233_spill] sm:$0xff] }
 0x276   : > { %v1982_v62 = vadd.f32 %v10037_v45, %v1938_v20  ;;  %v1983_v54 = vadd.f32 %v1967_v42, %v1939_v2  ;;  %v2450_v60 = vrot.slane %v2395_v48, 1  ;;  %v2452_v0 = vrot.slane %v2396_v21, 1  ;;  %v10044_v21 = vld [vmem:[#allocation296_spill] sm:$0xff] }
 0x277   : > { %v1984_v43 = vadd.f32 %v10038_v55, %v1940_v14  ;;  %v1985_v9 = vadd.f32 %v1969_v16, %v1941_v3  ;;  %v2449_v35 = vsel %vm772_vm1, %v2447_v56, %v2448_v26  ;;  %v2453_v6 = vrot.slane %v2397_v12, 1  ;;  %v10045_v12 = vld [vmem:[#allocation297_spill] sm:$0xff]  ;;  %v10047_v3 = vld [vmem:[#allocation134_spill] sm:$0xff] }
 0x278   : > { %v2112_v34 = vadd.f32 %v10039_v4, %v1982_v62  ;;  %v2113_v25 = vadd.f32 %v10040_v58, %v1983_v54  ;;  %v2451_v46 = vsel %vm772_vm1, %v2448_v26, %v2450_v60  ;;  %v2494_v52 = vadd.f32 %v2449_v35, %v2366_v36  ;;  %v10048_v36 = vld [vmem:[#allocation145_spill] sm:$0xff]  ;;  %v10051_v55 = vld [vmem:[#allocation234_spill] sm:$0xff] }
 0x279   : > { %v2114_v13 = vadd.f32 %v10041_v15, %v1984_v43  ;;  %v2115_v20 = vadd.f32 %v10042_v61, %v1985_v9  ;;  %v2454_v42 = vsel %vm772_vm1, %v2452_v0, %v2453_v6  ;;  %v10043_v48 = vrot.slane %v8124_v23, 1  ;;  %v10049_v23 = vld [vmem:[#allocation224_spill] sm:$0xff]  ;;  %v10050_v60 = vld [vmem:[#allocation165_spill] sm:$0xff]  ;;  %v10053_v35 = vld [vmem:[#allocation2_spill] sm:$0xff] }
 0x27a   : > { %v2240_v2 = vadd.f32 %v10044_v21, %v2112_v34  ;;  %v2241_v49 = vadd.f32 %v10045_v12, %v2113_v25  ;;  %v2495_v56 = vadd.f32 %v2451_v46, %v2367_v51  ;;  %v2618_v14 = vadd.f32 %v10046_v63, %v2494_v52  ;;  %v10052_v9 = vld [vmem:[#allocation289_spill] sm:$0xff]  ;;  %v10054_v4 = vld [vmem:[#allocation78_spill] sm:$0xff]  ;;  %v10056_v61 = vld [vmem:[#allocation120_spill] sm:$0xff] }
 0x27b   : > { %v2456_v16 = vsel %vm772_vm1, %v2453_v6, %v10043_v48  ;;  %v2242_v28 = vadd.f32 %v10047_v3, %v2114_v13  ;;  %v2243_v26 = vadd.f32 %v10048_v36, %v2115_v20  ;;  %v2889_v45 = vmul.f32 %v10000_v7, %v9910_v37  ;;  %v10055_v15 = vld [vmem:[#allocation298_spill] sm:$0xff]  ;;  %v10057_v48 = vld [vmem:[#allocation263_spill] sm:$0xff]  ;;  %v10061_v36 = vld [vmem:[#allocation124_spill] sm:$0xff] }
 0x27c   : > { %v2890_v62 = vmul.f32 %v10001_v8, %v9910_v37  ;;  %v2368_v54 = vadd.f32 %v10049_v23, %v2240_v2  ;;  %v2369_v0 = vadd.f32 %v10050_v60, %v2241_v49  ;;  %v2619_v43 = vadd.f32 %v10051_v55, %v2495_v56  ;;  %v10058_v2 = vld [vmem:[#allocation94_spill] sm:$0xff]  ;;  %v10059_v63 = vld [vmem:[#allocation103_spill] sm:$0xff] }
 0x27d   : > { %v2742_v51 = vadd.f32 %v10052_v9, %v2618_v14  ;;  %v2370_v6 = vadd.f32 %v10053_v35, %v2242_v28  ;;  %v2371_v34 = vadd.f32 %v10054_v4, %v2243_v26  ;;  %v2891_v58 = vmul.f32 %v8113_v22, %v9910_v37  ;;  %v10060_v3 = vld [vmem:[#allocation226_spill] sm:$0xff]  ;;  %v10066_v4 = vld [vmem:[#allocation135_spill] sm:$0xff] }
 0x27e   : > { %v2892_v25 = vmul.f32 %v10002_v57, %v9910_v37  ;;  %v2496_v46 = vadd.f32 %v2454_v42, %v2368_v54  ;;  %v2497_v52 = vadd.f32 %v2456_v16, %v2369_v0  ;;  %v2743_v13 = vadd.f32 %v10055_v15, %v2619_v43  ;;  %v10062_v16 = vld [vmem:[#allocation253_spill] sm:$0xff]  ;;  %v10063_v54 = vld [vmem:[#allocation254_spill] sm:$0xff]  ;;  %v10064_v43 = vld [vmem:[#allocation299_spill] sm:$0xff] }
 0x27f   : > { %v2866_v20 = vadd.f32 %v10056_v61, %v2742_v51  ;;  %v2498_v21 = vadd.f32 %v10057_v48, %v2370_v6  ;;  %v2499_v12 = vadd.f32 %v10058_v2, %v2371_v34  ;;  %v2893_v49 = vmul.f32 %v10003_v33, %v9910_v37  ;;  %v10065_v51 = vld [vmem:[#allocation300_spill] sm:$0xff]  ;;  %v10069_v48 = vld [vmem:[#allocation113_spill] sm:$0xff] }
 0x280   : > { %v2943_v56 = vrot.slane %v2889_v45, 2  ;;  %v2620_v14 = vadd.f32 %v10059_v63, %v2496_v46  ;;  %v2621_v28 = vadd.f32 %v10060_v3, %v2497_v52  ;;  %v2867_v26 = vadd.f32 %v10061_v36, %v2743_v13  ;;  %v10067_v46 = vld [vmem:[#allocation148_spill] sm:$0xff] }
 0x281   : > { %v2944_v42 = vrot.slane %v2890_v62, 2  ;;  %v2622_v23 = vadd.f32 %v10062_v16, %v2498_v21  ;;  %v2623_v60 = vadd.f32 %v10063_v54, %v2499_v12  ;;  %v2946_v0 = vrot.slane %v2891_v58, 2  ;;  %v10068_v13 = vld [vmem:[#allocation12_spill] sm:$0xff]  ;;  %v10071_v12 = vld [vmem:[#allocation125_spill] sm:$0xff] }
 0x282   : > { %v2948_v55 = vrot.slane %v2892_v25, 2  ;;  %v2744_v9 = vadd.f32 %v10064_v43, %v2620_v14  ;;  %v2745_v35 = vadd.f32 %v10065_v51, %v2621_v28  ;;  %v2949_v45 = vrot.slane %v2893_v49, 2  ;;  %v10072_v49 = vld [vmem:[#allocation240_spill] sm:$0xff] }
 0x283   : > { %v2945_v6 = vsel %vm1365_vm0, %v2943_v56, %v2944_v42  ;;  %v2746_v34 = vadd.f32 %v10066_v4, %v2622_v23  ;;  %v2747_v52 = vadd.f32 %v10067_v46, %v2623_v60  ;;  %v2947_v15 = vsel %vm1365_vm0, %v2944_v42, %v2946_v0  ;;  %v10073_v16 = vld [vmem:[#allocation264_spill] sm:$0xff]  ;;  %v10078_v46 = vld [vmem:[#allocation114_spill] sm:$0xff] }
 0x284   : > { %v2990_v62 = vadd.f32 %v2945_v6, %v2866_v20  ;;  %v2868_v61 = vadd.f32 %v10068_v13, %v2744_v9  ;;  %v2869_v21 = vadd.f32 %v10069_v48, %v2745_v35  ;;  %v2950_v58 = vsel %vm1365_vm0, %v2948_v55, %v2949_v45 }
 0x285   : > { %v10070_v25 = vrot.slane %v8130_v17, 2  ;;  %v2870_v56 = vadd.f32 %v10071_v12, %v2746_v34  ;;  %v2871_v63 = vadd.f32 %v10072_v49, %v2747_v52  ;;  %v2991_v14 = vadd.f32 %v2947_v15, %v2867_v26  ;;  %v10074_v17 = vld [vmem:[#allocation42_spill] sm:$0xff]  ;;  %v10084_v49 = vld [vmem:[#allocation220_spill] sm:$0xff] }
 0x286   : > { %v3024_v3 = vmul.f32 %v10012_v29, %v9895_v27  ;;  %v2992_v28 = vadd.f32 %v2950_v58, %v2868_v61  ;;  %v3025_v36 = vmul.f32 %v10013_v1, %v9895_v27  ;;  %v3038_v42 = vadd.f32 %v8095_v10, %v2990_v62  ;;  %v10075_v1 = vld [vmem:[#allocation82_spill] sm:$0xff]  ;;  %v10076_v10 = vld [vmem:[#allocation67_spill] sm:$0xff] }
 0x287   : > { %v2952_v2 = vsel %vm1365_vm0, %v2949_v45, %v10070_v25  ;;  %v2994_v23 = vadd.f32 %v10073_v16, %v2870_v56  ;;  %v2995_v54 = vadd.f32 %v10074_v17, %v2871_v63  ;;  %v3039_v60 = vadd.f32 %v8103_v11, %v2991_v14  ;;  %v10079_v52 = vld [vmem:[#allocation170_spill] sm:$0xff]  ;;  %v10080_v61 = vld [vmem:[#allocation183_spill] sm:$0xff]  ;;  %v10087_v16 = vld [vmem:[#allocation185_spill] sm:$0xff] }
 0x288   : > { %v2993_v20 = vadd.f32 %v2952_v2, %v2869_v21  ;;  %v3066_v0 = vmul.f32 %v10018_v39, %v9897_v38  ;;  %v3040_v26 = vadd.f32 %v3024_v3, %v2992_v28  ;;  %v3067_v29 = vmul.f32 %v10019_v47, %v9897_v38  ;;  %v10077_v47 = vld [vmem:[#allocation117_spill] sm:$0xff]  ;;  %v10082_v58 = vld [vmem:[#allocation174_spill] sm:$0xff]  ;;  %v10083_v2 = vld [vmem:[#allocation39_spill] sm:$0xff] }
 0x289   : > { %v3111_v43 = vmul.f32 %v10023_v32, %v9796_v53  ;;  %v3042_v9 = vadd.f32 %v10075_v1, %v2994_v23  ;;  %v3043_v51 = vadd.f32 %v10076_v10, %v2995_v54  ;;  %v3113_v6 = vmul.f32 %v10024_v40, %v9796_v53  ;;  %v10085_v3 = vld [vmem:[#allocation216_spill] sm:$0xff] }
 0x28a   : > { %v3041_v55 = vadd.f32 %v3025_v36, %v2993_v20  ;;  %v3082_v35 = vadd.f32 %v3066_v0, %v3038_v42  ;;  %v3083_v11 = vadd.f32 %v3067_v29, %v3039_v60  ;;  %v3084_v45 = vadd.f32 %v8107_v24, %v3040_v26  ;;  %v10086_v36 = vld [vmem:[#allocation52_spill] sm:$0xff]  ;;  %v10090_v0 = vld [vmem:[#allocation59_spill] sm:$0xff] }
 0x28b   : > { %v3153_v4 = vmul.f32 %v10001_v8, %v9797_v31  ;;  %v3086_v34 = vadd.f32 %v10077_v47, %v3042_v9  ;;  %v3087_v32 = vadd.f32 %v10078_v46, %v3043_v51  ;;  %v3155_v62 = vmul.f32 %v10003_v33, %v9797_v31  ;;  %v10089_v54 = vld [vmem:[#allocation236_spill] sm:$0xff]  ;;  %v10092_v29 = vld [vmem:[#allocation255_spill] sm:$0xff]  ;;  %v10095_v51 = vld [vmem:[#allocation110_spill] sm:$0xff] }
 0x28c   : > { %v3085_v39 = vadd.f32 %v8111_v59, %v3041_v55  ;;  %v3126_v15 = vadd.f32 %v10079_v52, %v3082_v35  ;;  %v3127_v13 = vadd.f32 %v3111_v43, %v3083_v11  ;;  %v3128_v40 = vadd.f32 %v10080_v61, %v3084_v45  ;;  %v10081_v59 = vld [vmem:[#allocation176_spill] sm:$0xff]  ;;  %v10091_v55 = vld [vmem:[#allocation227_spill] sm:$0xff]  ;;  %v10097_v45 = vld [vmem:[#allocation302_spill] sm:$0xff] }
 0x28d   : > { %v3157_v24 = vmul.f32 %v10027_v5, %v9797_v31  ;;  %v3130_v21 = vadd.f32 %v10081_v59, %v3086_v34  ;;  %v3131_v25 = vadd.f32 %v10082_v58, %v3087_v32  ;;  %v3168_v12 = vadd.f32 %v10083_v2, %v8034_v18  ;;  %v10088_v5 = vld [vmem:[#allocation235_spill] sm:$0xff]  ;;  %v10093_v43 = vld [vmem:[#allocation256_spill] sm:$0xff] }
 0x28e   : > { %v3129_v48 = vadd.f32 %v3113_v6, %v3085_v39  ;;  %v3169_v56 = vadd.f32 %v3153_v4, %v8038_v30  ;;  %v3170_v63 = vadd.f32 %v10084_v49, %v3126_v15  ;;  %v3171_v14 = vadd.f32 %v3155_v62, %v3127_v13  ;;  %v10094_v9 = vld [vmem:[#allocation247_spill] sm:$0xff]  ;;  %v10096_v6 = vld [vmem:[#allocation290_spill] sm:$0xff]  ;;  %v10098_v4 = vld [vmem:[#allocation49_spill] sm:$0xff] }
 0x28f   : > { %v3172_v28 = vadd.f32 %v10085_v3, %v3128_v40  ;;  %v3174_v42 = vadd.f32 %v10086_v36, %v3130_v21  ;;  %v3175_v23 = vadd.f32 %v10087_v16, %v3131_v25  ;;  %v3298_v17 = vadd.f32 %v10088_v5, %v3168_v12  ;;  %v10099_v34 = vld [vmem:[#allocation119_spill] sm:$0xff]  ;;  %v10100_v32 = vld [vmem:[#allocation136_spill] sm:$0xff]  ;;  %v10101_v15 = vld [vmem:[#allocation150_spill] sm:$0xff] }
 0x290   : > { %v3173_v20 = vadd.f32 %v3157_v24, %v3129_v48  ;;  %v3299_v60 = vadd.f32 %v10089_v54, %v3169_v56  ;;  %v3300_v26 = vadd.f32 %v10090_v0, %v3170_v63  ;;  %v3301_v18 = vadd.f32 %v10091_v55, %v3171_v14  ;;  %v10102_v13 = vld [vmem:[#allocation151_spill] sm:$0xff]  ;;  %v10103_v40 = vld [vmem:[#allocation153_spill] sm:$0xff]  ;;  %v10105_v21 = vld [vmem:[#allocation128_spill] sm:$0xff] }
 0x291   : > { %v3302_v30 = vadd.f32 %v10092_v29, %v3172_v28  ;;  %v3304_v10 = vadd.f32 %v10094_v9, %v3174_v42  ;;  %v3305_v35 = vadd.f32 %v10095_v51, %v3175_v23  ;;  %v3426_v11 = vadd.f32 %v10096_v6, %v3298_v17  ;;  %v10104_v24 = vld [vmem:[#allocation47_spill] sm:$0xff]  ;;  %v10108_v49 = vld [vmem:[#allocation90_spill] sm:$0xff] }
 0x292   : > { %v3303_v1 = vadd.f32 %v10093_v43, %v3173_v20  ;;  %v3427_v39 = vadd.f32 %v10097_v45, %v3299_v60  ;;  %v3428_v47 = vadd.f32 %v10098_v4, %v3300_v26  ;;  %v3429_v46 = vadd.f32 %v10099_v34, %v3301_v18  ;;  %v10106_v25 = vld [vmem:[#allocation239_spill] sm:$0xff]  ;;  %v10112_v60 = vld [vmem:[#allocation265_spill] sm:$0xff]  ;;  %v10115_v51 = vld [vmem:[#allocation270_spill] sm:$0xff] }
 0x293   : > { %v3430_v52 = vadd.f32 %v10100_v32, %v3302_v30  ;;  %v3432_v61 = vadd.f32 %v10102_v13, %v3304_v10  ;;  %v3433_v48 = vadd.f32 %v10103_v40, %v3305_v35  ;;  %v3554_v59 = vadd.f32 %v10104_v24, %v3426_v11  ;;  %v10107_v12 = vld [vmem:[#allocation171_spill] sm:$0xff]  ;;  %v10113_v18 = vld [vmem:[#allocation101_spill] sm:$0xff]  ;;  %v10114_v30 = vld [vmem:[#allocation4_spill] sm:$0xff] }
 0x294   : > { %v3431_v62 = vadd.f32 %v10101_v15, %v3303_v1  ;;  %v3555_v58 = vadd.f32 %v10105_v21, %v3427_v39  ;;  %v3556_v2 = vadd.f32 %v10106_v25, %v3428_v47  ;;  %v3557_v56 = vadd.f32 %v10107_v12, %v3429_v46  ;;  %v10109_v14 = vld [vmem:[#allocation51_spill] sm:$0xff]  ;;  %v10116_v11 = vld [vmem:[#allocation258_spill] sm:$0xff]  ;;  %v10118_v47 = vld [vmem:[#allocation248_spill] sm:$0xff] }
 0x295   : > { %v3558_v63 = vadd.f32 %v10108_v49, %v3430_v52  ;;  %v10110_v28 = vld [vmem:[#allocation127_spill] sm:$0xff]  ;;  %v3580_v16 = vmul.f32 %v10000_v7, %v9913_v41  ;;  %v3581_v23 = vmul.f32 %v10001_v8, %v9913_v41  ;;  %v3582_v5 = vmul.f32 %v8113_v22, %v9913_v41  ;;  %v10121_v21 = vld [vmem:[#allocation237_spill] sm:$0xff] }
 0x296   : > { %v3559_v3 = vadd.f32 %v10109_v14, %v3431_v62  ;;  %v3560_v20 = vadd.f32 %v10110_v28, %v3432_v61  ;;  %v10111_v36 = vld [vmem:[#allocation243_spill] sm:$0xff]  ;;  %v3583_v17 = vmul.f32 %v10002_v57, %v9913_v41  ;;  %v3584_v54 = vmul.f32 %v10003_v33, %v9913_v41  ;;  %v10122_v12 = vld [vmem:[#allocation137_spill] sm:$0xff] }
 0x297   : > { %v3561_v42 = vadd.f32 %v10111_v36, %v3433_v48  ;;  %v3686_v0 = vadd.f32 %v10112_v60, %v3558_v63  ;;  %v3632_v26 = vrot.slane %v3580_v16, 1  ;;  %v3633_v55 = vrot.slane %v3581_v23, 1  ;;  %v10117_v39 = vld [vmem:[#allocation259_spill] sm:$0xff]  ;;  %v10120_v48 = vld [vmem:[#allocation68_spill] sm:$0xff]  ;;  %v10123_v63 = vld [vmem:[#allocation157_spill] sm:$0xff] }
 0x298   : > { %v3687_v29 = vadd.f32 %v10113_v18, %v3559_v3  ;;  %v3688_v43 = vadd.f32 %v10114_v30, %v3560_v20  ;;  %v3635_v1 = vrot.slane %v3582_v5, 1  ;;  %v3637_v9 = vrot.slane %v3583_v17, 1  ;;  %v10124_v3 = vld [vmem:[#allocation158_spill] sm:$0xff]  ;;  %v10127_v16 = vld [vmem:[#allocation228_spill] sm:$0xff] }
 0x299   : > { %v3638_v10 = vrot.slane %v3584_v54, 1  ;;  %v3689_v35 = vadd.f32 %v10115_v51, %v3561_v42  ;;  %v3634_v6 = vsel %vm772_vm1, %v3632_v26, %v3633_v55  ;;  %v3810_v45 = vadd.f32 %v10116_v11, %v3686_v0  ;;  %v10125_v20 = vld [vmem:[#allocation238_spill] sm:$0xff]  ;;  %v10126_v42 = vld [vmem:[#allocation111_spill] sm:$0xff]  ;;  %v10130_v5 = vld [vmem:[#allocation80_spill] sm:$0xff] }
 0x29a   : > { %v3811_v4 = vadd.f32 %v10117_v39, %v3687_v29  ;;  %v3812_v34 = vadd.f32 %v10118_v47, %v3688_v43  ;;  %v3636_v46 = vsel %vm772_vm1, %v3633_v55, %v3635_v1  ;;  %v10119_v52 = vrot.slane %v8133_v44, 1  ;;  %v10131_v54 = vld [vmem:[#allocation61_spill] sm:$0xff]  ;;  %v10132_v0 = vld [vmem:[#allocation140_spill] sm:$0xff]  ;;  %v10135_v43 = vld [vmem:[#allocation123_spill] sm:$0xff] }
 0x29b   : > { %v3639_v32 = vsel %vm772_vm1, %v3637_v9, %v3638_v10  ;;  %v3682_v62 = vadd.f32 %v3634_v6, %v3554_v59  ;;  %v3683_v13 = vadd.f32 %v3636_v46, %v3555_v58  ;;  %v3813_v24 = vadd.f32 %v10120_v48, %v3689_v35  ;;  %v10128_v59 = vld [vmem:[#allocation159_spill] sm:$0xff]  ;;  %v10133_v55 = vld [vmem:[#allocation213_spill] sm:$0xff]  ;;  %v10136_v9 = vld [vmem:[#allocation180_spill] sm:$0xff] }
 0x29c   : > { %v3641_v15 = vsel %vm772_vm1, %v3638_v10, %v10119_v52  ;;  %v3684_v61 = vadd.f32 %v3639_v32, %v3556_v2  ;;  %v3934_v49 = vadd.f32 %v10122_v12, %v3810_v45  ;;  %v3935_v14 = vadd.f32 %v10123_v63, %v3811_v4  ;;  %v10129_v2 = vld [vmem:[#allocation291_spill] sm:$0xff]  ;;  %v10134_v29 = vld [vmem:[#allocation301_spill] sm:$0xff]  ;;  %v10137_v51 = vld [vmem:[#allocation44_spill] sm:$0xff] }
 0x29d   : > { %v3685_v40 = vadd.f32 %v3641_v15, %v3557_v56  ;;  %v3806_v25 = vadd.f32 %v10121_v21, %v3682_v62  ;;  %v3936_v28 = vadd.f32 %v10124_v3, %v3812_v34  ;;  %v3807_v36 = vadd.f32 %v10125_v20, %v3683_v13  ;;  %v10138_v39 = vld [vmem:[#allocation167_spill] sm:$0xff]  ;;  %v10139_v47 = vld [vmem:[#allocation166_spill] sm:$0xff]  ;;  %v10140_v46 = vld [vmem:[#allocation173_spill] sm:$0xff] }
 0x29e   : > { %v3808_v44 = vadd.f32 %v10126_v42, %v3684_v61  ;;  %v3937_v58 = vadd.f32 %v10128_v59, %v3813_v24  ;;  %v4058_v17 = vadd.f32 %v10130_v5, %v3934_v49  ;;  %v4059_v60 = vadd.f32 %v10131_v54, %v3935_v14  ;;  %v10142_v48 = vld [vmem:[#allocation271_spill] sm:$0xff]  ;;  %v10143_v24 = vld [vmem:[#allocation272_spill] sm:$0xff]  ;;  %v10144_v63 = vld [vmem:[#allocation273_spill] sm:$0xff] }
 0x29f   : > { %v3809_v23 = vadd.f32 %v10127_v16, %v3685_v40  ;;  %v3930_v56 = vadd.f32 %v10129_v2, %v3806_v25  ;;  %v4060_v26 = vadd.f32 %v10132_v0, %v3936_v28  ;;  %v3931_v18 = vadd.f32 %v10133_v55, %v3807_v36  ;;  %v10146_v42 = vld [vmem:[#allocation142_spill] sm:$0xff] }
 0x2a0   : > { %v3932_v30 = vadd.f32 %v10134_v29, %v3808_v44  ;;  %v4061_v10 = vadd.f32 %v10136_v9, %v3937_v58  ;;  %v4076_v6 = vmul.f32 %v10000_v7, %v9977_v50  ;;  %v4077_v11 = vmul.f32 %v10001_v8, %v9977_v50  ;;  %v10141_v8 = vld [vmem:[#allocation266_spill] sm:$0xff] }
 0x2a1   : > { %v3933_v1 = vadd.f32 %v10135_v43, %v3809_v23  ;;  %v4054_v35 = vadd.f32 %v10137_v51, %v3930_v56  ;;  %v4078_v45 = vmul.f32 %v8113_v22, %v9977_v50  ;;  %v4055_v4 = vadd.f32 %v10138_v39, %v3931_v18  ;;  %v10152_v51 = vld [vmem:[#allocation32_spill] sm:$0xff] }
 0x2a2   : > { %v4056_v34 = vadd.f32 %v10139_v47, %v3932_v30  ;;  %v4079_v52 = vmul.f32 %v10002_v57, %v9977_v50  ;;  %v4080_v15 = vmul.f32 %v10003_v33, %v9977_v50  ;;  %v4128_v62 = vrot.slane %v4076_v6, 2  ;;  %v10145_v33 = vld [vmem:[#allocation45_spill] sm:$0xff]  ;;  %v10157_v47 = vld [vmem:[#allocation62_spill] sm:$0xff] }
 0x2a3   : > { %v4057_v32 = vadd.f32 %v10140_v46, %v3933_v1  ;;  %v4129_v7 = vrot.slane %v4077_v11, 2  ;;  %v4131_v13 = vrot.slane %v4078_v45, 2  ;;  %v4182_v40 = vadd.f32 %v10141_v8, %v4058_v17  ;;  %v10148_v30 = vld [vmem:[#allocation245_spill] sm:$0xff]  ;;  %v10154_v11 = vld [vmem:[#allocation20_spill] sm:$0xff]  ;;  %v10155_v45 = vld [vmem:[#allocation162_spill] sm:$0xff] }
 0x2a4   : > { %v4133_v61 = vrot.slane %v4079_v52, 2  ;;  %v4183_v22 = vadd.f32 %v10142_v48, %v4059_v60  ;;  %v4184_v21 = vadd.f32 %v10143_v24, %v4060_v26  ;;  %v4134_v49 = vrot.slane %v4080_v15, 2  ;;  %v10150_v1 = vld [vmem:[#allocation181_spill] sm:$0xff]  ;;  %v10158_v52 = vld [vmem:[#allocation115_spill] sm:$0xff]  ;;  %v10162_v8 = vld [vmem:[#allocation246_spill] sm:$0xff] }
 0x2a5   : > { %v4130_v25 = vsel %vm1365_vm0, %v4128_v62, %v4129_v7  ;;  %v4132_v12 = vsel %vm1365_vm0, %v4129_v7, %v4131_v13  ;;  %v4185_v57 = vadd.f32 %v10144_v63, %v4061_v10  ;;  %v4205_v28 = vadd.f32 %v10145_v33, %v4182_v40  ;;  %v10159_v15 = vld [vmem:[#allocation141_spill] sm:$0xff]  ;;  %v10160_v7 = vld [vmem:[#allocation30_spill] sm:$0xff]  ;;  %v10161_v13 = vld [vmem:[#allocation223_spill] sm:$0xff] }
 0x2a6   : > { %v4178_v14 = vadd.f32 %v4130_v25, %v4054_v35  ;;  %v4179_v3 = vadd.f32 %v4132_v12, %v4055_v4  ;;  %v4206_v20 = vadd.f32 %v10145_v33, %v4183_v22  ;;  %v4135_v36 = vsel %vm1365_vm0, %v4133_v61, %v4134_v49  ;;  %v10153_v35 = vld [vmem:[#allocation257_spill] sm:$0xff]  ;;  %v10156_v4 = vld [vmem:[#allocation6_spill] sm:$0xff]  ;;  %v10164_v48 = vld [vmem:[#allocation244_spill] sm:$0xff] }
 0x2a7   : > { %v10147_v44 = vrot.slane %v10146_v42, 2  ;;  %v4207_v23 = vadd.f32 %v10145_v33, %v4184_v21  ;;  %v4208_v59 = vadd.f32 %v10145_v33, %v4185_v57  ;;  %v4180_v58 = vadd.f32 %v4135_v36, %v4056_v34  ;;  %v10166_v21 = vld [vmem:[#allocation155_spill] sm:$0xff]  ;;  %v10167_v12 = vld [vmem:[#allocation28_spill] sm:$0xff]  ;;  %v10169_v57 = vld [vmem:[#allocation122_spill] sm:$0xff] }
 0x2a8   : > { %v4201_v56 = vadd.f32 %v10145_v33, %v4178_v14  ;;  %v4202_v5 = vadd.f32 %v10145_v33, %v4179_v3  ;;  %v4221_v17 = vmax.f32 %v4205_v28, 0.0  ;;  %v4222_v54 = vmax.f32 %v4206_v20, 0.0  ;;  %v10171_v3 = vld [vmem:[#allocation172_spill] sm:$0xff]  ;;  %v10173_v20 = vld [vmem:[#allocation86_spill] sm:$0xff] }
 0x2a9   : > { %v4137_v16 = vsel %vm1365_vm0, %v4134_v49, %v10147_v44  ;;  %v4223_v60 = vmax.f32 %v4207_v23, 0.0  ;;  %v4224_v0 = vmax.f32 %v4208_v59, 0.0  ;;  %v4203_v26 = vadd.f32 %v10145_v33, %v4180_v58  ;;  %v10168_v49 = vld [vmem:[#allocation130_spill] sm:$0xff]  ;;  %v10174_v36 = vld [vmem:[#allocation116_spill] sm:$0xff] }
 0x2aa   : > { %v4181_v2 = vadd.f32 %v4137_v16, %v4057_v32  ;;  %v4217_v18 = vmax.f32 %v4201_v56, 0.0  ;;  %v4218_v29 = vmax.f32 %v4202_v5, 0.0  ;;  %v10149_v43 = vrot.slane %v10148_v30, 2  ;;  %4237 = vst [vmem:[%s8118_s19 + $0x40] sm:$0xff] %v4221_v17  ;;  %4238 = vst [vmem:[%s8118_s19 + $0x48] sm:$0xff] %v4222_v54  ;;  %v10175_v23 = vld [vmem:[#allocation184_spill] sm:$0xff] }
 0x2ab   : > { %v10151_v9 = vrot.slane %v10150_v1, 2  ;;  %v1713_v6 = vmul.f32 %v10153_v35, %v10152_v51  ;;  %v8431_v39 = vmul.f32 %v10155_v45, %v10154_v11  ;;  %4239 = vst [vmem:[%s8118_s19 + $0x50] sm:$0xff] %v4223_v60  ;;  %4240 = vst [vmem:[%s8118_s19 + $0x58] sm:$0xff] %v4224_v0  ;;  %v1338_v34 = vmul.f32 %v10157_v47, %v10156_v4  ;;  %v10176_v5 = vld [vmem:[#allocation13_spill] sm:$0xff]  ;;  %v10177_v17 = vld [vmem:[#allocation108_spill] sm:$0xff] }
 0x2ac   : > { %v4204_v55 = vadd.f32 %v10145_v33, %v4181_v2  ;;  %v4219_v46 = vmax.f32 %v4203_v26, 0.0  ;;  %4233 = vst [vmem:[%s8118_s19 + $0x20] sm:$0xff] %v4217_v18  ;;  %4234 = vst [vmem:[%s8118_s19 + $0x28] sm:$0xff] %v4218_v29  ;;  %v999_v62 = vadd.f32 %v10159_v15, %v10158_v52  ;;  %v1214_v61 = vmul.f32 %v10161_v13, %v10160_v7  ;;  %v10178_v0 = vld [vmem:[#allocation262_spill] sm:$0xff]  ;;  %v10180_v18 = vld [vmem:[#allocation144_spill] sm:$0xff] }
 0x2ad   : > { %v1405_v10 = vsel %vm1365_vm0, %v10151_v9, %v10149_v43  ;;  %v10163_v40 = vrot.slane %v10162_v8, 2  ;;  %v10165_v22 = vrot.slane %v10164_v48, 2  ;;  %v1652_v25 = vrot.slane %v10166_v21, 2  ;;  %v10181_v30 = vld [vmem:[#allocation222_spill] sm:$0xff]  ;;  %v10182_v4 = vld [vmem:[#allocation21_spill] sm:$0xff]  ;;  %v10184_v52 = vld [vmem:[#allocation175_spill] sm:$0xff] }
 0x2ae   : > { %v4220_v32 = vmax.f32 %v4204_v55, 0.0  ;;  %v2776_v63 = vmul.f32 %v10168_v49, %v10167_v12  ;;  %v10170_v14 = vrot.slane %v10169_v57, 1  ;;  %v10172_v33 = vrot.slane %v10171_v3, 1  ;;  %4235 = vst [vmem:[%s8118_s19 + $0x30] sm:$0xff] %v4219_v46 }
 0x2af   : > { %v2590_v24 = vsel %vm1365_vm0, %v10165_v22, %v10163_v40  ;;  %v1898_v42 = vadd.f32 %v10174_v36, %v10173_v20  ;;  %v1276_v16 = vrot.slane %v1214_v61, 1  ;;  %v1437_v59 = vadd.f32 %v1405_v10, %v10175_v23  ;;  %v10186_v40 = vld [vmem:[#allocation33_spill] sm:$0xff] }
 0x2b0   : > { %v1122_v28 = vsel %vm772_vm1, %v10172_v33, %v10170_v14  ;;  %4236 = vst [vmem:[%s8118_s19 + $0x38] sm:$0xff] %v4220_v32  ;;  %v2900_v58 = vmul.f32 %v10153_v35, %v9910_v37  ;;  %v1650_v2 = vrot.slane %v8431_v39, 2  ;;  %v1401_v56 = vrot.slane %v1338_v34, 2  ;;  %v10183_v34 = vld [vmem:[#allocation163_spill] sm:$0xff]  ;;  %v10187_v22 = vld [vmem:[#allocation9_spill] sm:$0xff] }
 0x2b1   : > { %v1155_v44 = vadd.f32 %v1122_v28, %v999_v62  ;;  %v1463_v54 = vmul.f32 %v10177_v17, %v10176_v5  ;;  %v1776_v60 = vrot.slane %v1713_v6, 2  ;;  %v10179_v26 = vrot.slane %v10178_v0, 1  ;;  %v10190_v28 = vld [vmem:[#allocation241_spill] sm:$0xff] }
 0x2b2   : > { %v1561_v29 = vadd.f32 %v10180_v18, %v1437_v59  ;;  %v1712_v43 = vmul.f32 %v10181_v30, %v10152_v51  ;;  %v2837_v9 = vrot.slane %v2776_v63, 2  ;;  %v1653_v10 = vsel %vm1365_vm0, %v1650_v2, %v1652_v25  ;;  %v10195_v18 = vld [vmem:[#allocation149_spill] sm:$0xff] }
 0x2b3   : > { %v1278_v55 = vsel %vm772_vm1, %v1276_v16, %v10179_v26  ;;  %v8477_v35 = vmul.f32 %v10155_v45, %v10167_v12  ;;  %v2274_v6 = vmul.f32 %v10183_v34, %v10182_v4  ;;  %v1942_v15 = vadd.f32 %v10184_v52, %v1898_v42  ;;  %v10192_v16 = vld [vmem:[#allocation132_spill] sm:$0xff] }
 0x2b4   : > { %v1311_v39 = vadd.f32 %v1278_v55, %v1155_v44  ;;  %v1685_v46 = vadd.f32 %v1653_v10, %v1561_v29  ;;  %v1774_v32 = vrot.slane %v1712_v43, 2  ;;  %v10185_v62 = vrot.slane %v10150_v1, 2  ;;  %v4687_v44 = vpop.permute.xlu1 %4686 }
 0x2b5   : > { %v1525_v61 = vrot.slane %v1463_v54, 2  ;;  %v1587_v8 = vmul.f32 %v10183_v34, %v10154_v11  ;;  %v1970_v45 = vmul.f32 %v10161_v13, %v10186_v40  ;;  %v2526_v21 = vmul.f32 %v10157_v47, %v10187_v22  ;;  %v10188_v11 = vld [vmem:[#allocation242_spill] sm:$0xff] }
 0x2b6   : > { %v1403_v7 = vsel %vm1365_vm0, %v1401_v56, %v10185_v62  ;;  %v1777_v49 = vsel %vm1365_vm0, %v1774_v32, %v1776_v60  ;;  %v2402_v63 = vmul.f32 %v10161_v13, %v9909_v19  ;;  %v2835_v1 = vrot.slane %v8477_v35, 2  ;;  %v10193_v56 = vld [vmem:[#allocation138_spill] sm:$0xff] }
 0x2b7   : > { %v1436_v25 = vadd.f32 %v1403_v7, %v1311_v39  ;;  %v1711_v57 = vmul.f32 %v10161_v13, %v10152_v51  ;;  %v1809_v14 = vadd.f32 %v1777_v49, %v1685_v46  ;;  %v1986_v3 = vadd.f32 %v1970_v45, %v1942_v15  ;;  %v10197_v39 = vld [vmem:[#allocation29_spill] sm:$0xff]  ;;  %v10199_v46 = vld [vmem:[#allocation15_spill] sm:$0xff] }
 0x2b8   : > { %v10189_v33 = vrot.slane %v10188_v11, 1  ;;  %v10191_v20 = vrot.slane %v10190_v28, 1  ;;  %v2961_v47 = vrot.slane %v2900_v58, 2  ;;  %v2334_v42 = vrot.slane %v2274_v6, 1  ;;  %v10196_v58 = vld [vmem:[#allocation146_spill] sm:$0xff]  ;;  %v10201_v49 = vld [vmem:[#allocation261_spill] sm:$0xff] }
 0x2b9   : > { %v2625_v23 = vadd.f32 %v2590_v24, %v10192_v16  ;;  %v2838_v59 = vsel %vm1365_vm0, %v2835_v1, %v2837_v9  ;;  %v10194_v5 = vrot.slane %v10193_v56, 2  ;;  %v1649_v51 = vrot.slane %v1587_v8, 2  ;;  %v4693_v8 = vpop.permute.xlu0 %4692  ;;  %v4699_v56 = vpop.permute.xlu1 %4698 }
 0x2ba   : > { %v2080_v36 = vsel %vm772_vm1, %v10191_v20, %v10189_v33  ;;  %v2586_v0 = vrot.slane %v2526_v21, 2  ;;  %v2462_v55 = vrot.slane %v2402_v63, 1  ;;  %v4688_v43 = vunpack.i.l.bf16 %v4687_v44 }
 0x2bb   : > { %v1527_v54 = vsel %vm1365_vm0, %v1525_v61, %v10194_v5  ;;  %v2116_v60 = vadd.f32 %v2080_v36, %v1986_v3  ;;  %v2749_v29 = vadd.f32 %v10195_v18, %v2625_v23  ;;  %v1773_v10 = vrot.slane %v1711_v57, 2  ;;  %v10203_v3 = vld [vmem:[#allocation26_spill] sm:$0xff] }
 0x2bc   : > { %v1560_v26 = vadd.f32 %v1527_v54, %v1436_v25  ;;  %v2899_v24 = vmul.f32 %v10181_v30, %v9910_v37  ;;  %v10198_v9 = vrot.slane %v10197_v39, 1  ;;  %v2650_v52 = vmul.f32 %v10177_v17, %v10199_v46  ;;  %v10205_v54 = vld [vmem:[#allocation139_spill] sm:$0xff]  ;;  %v10209_v39 = vld [vmem:[#allocation8_spill] sm:$0xff] }
 0x2bd   : > { %v2244_v35 = vadd.f32 %v10196_v58, %v2116_v60  ;;  %v2873_v15 = vadd.f32 %v2838_v59, %v2749_v29  ;;  %v1651_v62 = vsel %vm1365_vm0, %v1649_v51, %v1650_v2  ;;  %v10200_v45 = vrot.slane %v10164_v48, 2  ;;  %v10204_v59 = vld [vmem:[#allocation7_spill] sm:$0xff] }
 0x2be   : > { %v2336_v6 = vsel %vm772_vm1, %v2334_v42, %v10198_v9  ;;  %v2959_v61 = vrot.slane %v2899_v24, 2  ;;  %v1684_v25 = vadd.f32 %v1651_v62, %v1560_v26  ;;  %v10202_v30 = vrot.slane %v10201_v49, 1  ;;  %v10210_v62 = vld [vmem:[#allocation24_spill] sm:$0xff] }
 0x2bf   : > { %v2372_v7 = vadd.f32 %v2336_v6, %v2244_v35  ;;  %v2588_v21 = vsel %vm1365_vm0, %v2586_v0, %v10200_v45  ;;  %v1775_v57 = vsel %vm1365_vm0, %v1773_v10, %v1774_v32  ;;  %v1840_v11 = vmul.f32 %v4688_v43, %v10203_v3  ;;  %v10208_v35 = vld [vmem:[#allocation11_spill] sm:$0xff] }
 0x2c0   : > { %v2464_v63 = vsel %vm772_vm1, %v2462_v55, %v10202_v30  ;;  %v2962_v33 = vsel %vm1365_vm0, %v2959_v61, %v2961_v47  ;;  %v2710_v2 = vrot.slane %v2650_v52, 2  ;;  %v2774_v28 = vmul.f32 %v10183_v34, %v10167_v12  ;;  %v10207_v34 = vld [vmem:[#allocation17_spill] sm:$0xff]  ;;  %v10211_v30 = vld [vmem:[#allocation14_spill] sm:$0xff] }
 0x2c1   : > { %v2500_v17 = vadd.f32 %v2464_v63, %v2372_v7  ;;  %v2997_v20 = vadd.f32 %v2962_v33, %v2873_v15  ;;  %v4694_v48 = vunpack.i.l.bf16 %v4693_v8  ;;  %v8528_v36 = vunpack.i.h.bf16 %v4687_v44 }
 0x2c2   : > { %v1808_v16 = vadd.f32 %v1775_v57, %v1684_v25  ;;  %v2898_v23 = vmul.f32 %v10161_v13, %v9910_v37  ;;  %v8533_v32 = vmul.f32 %v4688_v43, %v10204_v59  ;;  %v10206_v47 = vrot.slane %v10205_v54, 2  ;;  %v4711_v13 = vpop.permute.xlu0 %4710 }
 0x2c3   : > { %v2624_v42 = vadd.f32 %v2588_v21, %v2500_v17  ;;  %v2834_v60 = vrot.slane %v2774_v28, 2  ;;  %v1884_v0 = vmul.f32 %v4694_v48, %v10207_v34  ;;  %v1841_v44 = vmul.f32 %v8528_v36, %v10203_v3 }
 0x2c4   : > { %v1856_v5 = vadd.f32 %v1840_v11, %v1808_v16  ;;  %v2712_v51 = vsel %vm1365_vm0, %v2710_v2, %v10206_v47  ;;  %v8542_v26 = vmul.f32 %v4688_v43, %v10187_v22  ;;  %v3029_v18 = vmul.f32 %v8528_v36, %v9895_v27 }
 0x2c5   : > { %v2748_v55 = vadd.f32 %v2712_v51, %v2624_v42  ;;  %v2958_v29 = vrot.slane %v2898_v23, 2  ;;  %v8546_v10 = vunpack.i.l.bf16 %v4699_v56  ;;  %v2083_v58 = vrot.slane %v8533_v32, 1  ;;  %v10212_v32 = vld [vmem:[#allocation23_spill] sm:$0xff]  ;;  %v4705_v51 = vpop.permute.xlu1 %4704 }
 0x2c6   : > { %v8550_v24 = vmul.f32 %v4688_v43, %v10208_v35  ;;  %v8553_v9 = vmul.f32 %v4688_v43, %v10209_v39  ;;  %v8555_v6 = vunpack.i.h.bf16 %v4693_v8  ;;  %v2836_v52 = vsel %vm1365_vm0, %v2834_v60, %v2835_v1 }
 0x2c7   : > { %v1900_v15 = vadd.f32 %v1884_v0, %v1856_v5  ;;  %v1928_v7 = vmul.f32 %v8546_v10, %v10210_v62  ;;  %v8560_v45 = vunpack.i.l.bf16 %v4711_v13  ;;  %v1857_v21 = vadd.f32 %v1841_v44, %v1809_v14 }
 0x2c8   : > { %v2872_v49 = vadd.f32 %v2836_v52, %v2748_v55  ;;  %v8565_v63 = vmul.f32 %v8555_v6, %v10211_v30  ;;  %v2960_v57 = vsel %vm1365_vm0, %v2958_v29, %v2959_v61  ;;  %v3028_v8 = vmul.f32 %v4688_v43, %v9895_v27 }
 0x2c9   : > { %v2149_v1 = vmul.f32 %v4694_v48, %v10211_v30  ;;  %v8570_v3 = vunpack.i.h.bf16 %v4699_v56  ;;  %v1885_v14 = vmul.f32 %v8555_v6, %v10207_v34  ;;  %v8578_v33 = vmul.f32 %v8555_v6, %v10199_v46  ;;  %v10213_v34 = vld [vmem:[#allocation16_spill] sm:$0xff] }
 0x2ca   : > { %v8580_v2 = vadd.f32 %v3029_v18, %v2997_v20  ;;  %v8584_v43 = vmul.f32 %v8555_v6, %v9897_v38  ;;  %v1944_v61 = vadd.f32 %v1928_v7, %v1900_v15  ;;  %v1972_v28 = vmul.f32 %v8560_v45, %v10186_v40 }
 0x2cb   : > { %v2996_v42 = vadd.f32 %v2960_v57, %v2872_v49  ;;  %v9188_v16 = vrot.slane %v8565_v63, 1  ;;  %v8590_v23 = vmul.f32 %v4694_v48, %v10199_v46  ;;  %v8593_v56 = vmul.f32 %v4694_v48, %v10212_v32 }
 0x2cc   : > { %v2211_v5 = vrot.slane %v2149_v1, 1  ;;  %v3072_v20 = vmul.f32 %v4694_v48, %v9897_v38  ;;  %v8598_v54 = vmul.f32 %v8570_v3, %v10182_v4  ;;  %v8600_v47 = vunpack.i.h.bf16 %v4711_v13 }
 0x2cd   : > { %v3044_v60 = vadd.f32 %v3028_v8, %v2996_v42  ;;  %v8603_v0 = vmul.f32 %v4694_v48, %v10213_v34  ;;  %v2277_v44 = vmul.f32 %v8546_v10, %v10182_v4  ;;  %v2022_v55 = vmul.f32 %v8528_v36, %v10204_v59  ;;  %v10214_v8 = vld [vmem:[#allocation43_spill] sm:$0xff] }
 0x2ce   : > { %v1929_v18 = vmul.f32 %v8570_v3, %v10210_v62  ;;  %v8613_v29 = vmul.f32 %v8600_v47, %v9909_v19  ;;  %v1988_v13 = vadd.f32 %v1972_v28, %v1944_v61  ;;  %v2405_v52 = vmul.f32 %v8560_v45, %v9909_v19  ;;  %v10215_v61 = vld [vmem:[#allocation22_spill] sm:$0xff] }
 0x2cf   : > { %v8620_v15 = vmul.f32 %v8570_v3, %v9796_v53  ;;  %v8622_v7 = vunpack.i.l.bf16 %v4705_v51  ;;  %v2084_v49 = vrot.slane %v2022_v55, 1  ;;  %v3116_v62 = vmul.f32 %v8546_v10, %v9796_v53 }
 0x2d0   : > { %v8629_v1 = vmul.f32 %v8546_v10, %v10214_v8  ;;  %v8633_v28 = vmul.f32 %v8546_v10, %v10215_v61  ;;  %v3088_v42 = vadd.f32 %v3072_v20, %v3044_v60  ;;  %v2339_v48 = vrot.slane %v2277_v44, 1 }
 0x2d1   : > { %v2085_v17 = vsel %vm772_vm1, %v2083_v58, %v2084_v49  ;;  %v2213_v55 = vsel %vm772_vm1, %v2211_v5, %v9188_v16  ;;  %v2467_v25 = vrot.slane %v2405_v52, 1  ;;  %v4707_v57 = vunpack.i.h.bf16 %v4705_v51 }
 0x2d2   : > { %v2118_v53 = vadd.f32 %v2085_v17, %v1988_v13  ;;  %v8643_v46 = vmul.f32 %v8560_v45, %v9913_v41  ;;  %v8647_v20 = vmul.f32 %v8560_v45, %v9977_v50  ;;  %v2023_v58 = vmul.f32 %v8622_v7, %v10204_v59 }
 0x2d3   : > { %v1901_v60 = vadd.f32 %v1885_v14, %v1857_v21  ;;  %v2530_v17 = vmul.f32 %v8528_v36, %v10187_v22  ;;  %v3132_v51 = vadd.f32 %v3116_v62, %v3088_v42  ;;  %v3160_v52 = vmul.f32 %v8560_v45, %v9797_v31 }
 0x2d4   : > { %v2246_v44 = vadd.f32 %v2213_v55, %v2118_v53  ;;  %v10216_v34 = vrot.slane %v8598_v54, 1  ;;  %v8661_v11 = vmul.f32 %v4707_v57, %v9895_v27  ;;  %v8664_v59 = vmul.f32 %v4707_v57, %v10208_v35 }
 0x2d5   : > { %v10217_v21 = vrot.slane %v8613_v29, 1  ;;  %v8672_v55 = vmul.f32 %v4707_v57, %v10209_v39  ;;  %v2086_v13 = vrot.slane %v2023_v58, 1  ;;  %v2531_v5 = vmul.f32 %v8622_v7, %v10187_v22 }
 0x2d6   : > { %v2341_v16 = vsel %vm772_vm1, %v2339_v48, %v10216_v34  ;;  %v1945_v34 = vadd.f32 %v1929_v18, %v1901_v60  ;;  %v1973_v48 = vmul.f32 %v8600_v47, %v10186_v40  ;;  %v2715_v57 = vrot.slane %v8590_v23, 2 }
 0x2d7   : > { %v2374_v53 = vadd.f32 %v2341_v16, %v2246_v44  ;;  %v2469_v14 = vsel %vm772_vm1, %v2467_v25, %v10217_v21  ;;  %10218 = vst [vmem:[#allocation249_spill] sm:$0xff] %v8672_v55  ;;  %v2592_v16 = vrot.slane %v2530_v17, 2  ;;  %v3176_v44 = vadd.f32 %v3160_v52, %v3132_v51 }
 0x2d8   : > { %v2777_v25 = vmul.f32 %v8546_v10, %v10167_v12  ;;  %v8682_v21 = vmul.f32 %v8570_v3, %v10167_v12  ;;  %v9190_v18 = vrot.slane %v8578_v33, 2  ;;  %v2901_v40 = vmul.f32 %v8560_v45, %v9910_v37 }
 0x2d9   : > { %v2502_v27 = vadd.f32 %v2469_v14, %v2374_v53  ;;  %v3089_v22 = vadd.f32 %v8584_v43, %v8580_v2  ;;  %v2087_v10 = vsel %vm772_vm1, %v2084_v49, %v2086_v13  ;;  %v3209_v17 = vmul.f32 %v8528_v36, %v10208_v35  ;;  %v4717_v14 = vpop.permute.xlu1 %4716 }
 0x2da   : > { %v1989_v51 = vadd.f32 %v1973_v48, %v1945_v34  ;;  %v10219_v23 = vrot.slane %v8542_v26, 2  ;;  %v2594_v53 = vrot.slane %v2531_v5, 2  ;;  %v2902_v45 = vmul.f32 %v8600_v47, %v9910_v37 }
 0x2db   : > { %v2839_v43 = vrot.slane %v2777_v25, 2  ;;  %v9191_v58 = vrot.slane %v8682_v21, 2  ;;  %v3210_v49 = vmul.f32 %v8622_v7, %v10208_v35  ;;  %v2717_v26 = vsel %vm1365_vm0, %v2715_v57, %v9190_v18  ;;  %v2378_v25 = vpop.permute.xlu0 %2377 }
 0x2dc   : > { %v2593_v52 = vsel %vm1365_vm0, %v10219_v23, %v2592_v16  ;;  %v8703_v13 = vadd.f32 %v2087_v10, %v1989_v51  ;;  %v2963_v34 = vrot.slane %v2901_v40, 2  ;;  %v3133_v5 = vadd.f32 %v8620_v15, %v3089_v22 }
 0x2dd   : > { %v2626_v2 = vadd.f32 %v2593_v52, %v2502_v27  ;;  %v3161_v48 = vmul.f32 %v8600_v47, %v9797_v31  ;;  %v3269_v23 = vrot.slane %v3209_v17, 1  ;;  %v3717_v27 = vmul.f32 %v8528_v36, %v10209_v39  ;;  %v8738_v62 = vpop.permute.xlu1 %4722 }
 0x2de   : > { %v4718_v52 = vunpack.i.l.bf16 %v4717_v14  ;;  %v2964_v60 = vrot.slane %v2902_v45, 2  ;;  %v3718_v10 = vmul.f32 %v8622_v7, %v10209_v39  ;;  %v2407_v51 = vmul.f32 %v9909_v19, %v2378_v25 }
 0x2df   : > { %v2903_v57 = vmul.f32 %v9910_v37, %v2378_v25  ;;  %v8718_v40 = vsel %vm1365_vm0, %v2592_v16, %v2594_v53  ;;  %v2750_v15 = vadd.f32 %v2717_v26, %v2626_v2  ;;  %v2841_v22 = vsel %vm1365_vm0, %v2839_v43, %v9191_v58 }
 0x2e0   : > { %v3271_v17 = vrot.slane %v3210_v49, 1  ;;  %v2965_v36 = vsel %vm1365_vm0, %v2963_v34, %v2964_v60  ;;  %v3177_v18 = vadd.f32 %v3161_v48, %v3133_v5  ;;  %v3593_v45 = vmul.f32 %v8600_v47, %v9913_v41 }
 0x2e1   : > { %v3594_v7 = vmul.f32 %v9913_v41, %v2378_v25  ;;  %v10220_v19 = vrot.slane %v8550_v24, 1  ;;  %v3777_v16 = vrot.slane %v3717_v27, 2  ;;  %v2151_v53 = vmul.f32 %v4718_v52, %v10211_v30 }
 0x2e2   : > { %v3337_v2 = vmul.f32 %v8555_v6, %v10212_v32  ;;  %v3779_v43 = vrot.slane %v3718_v10, 2  ;;  %v2470_v49 = vrot.slane %v2407_v51, 1  ;;  %v2966_v26 = vrot.slane %v2903_v57, 2 }
 0x2e3   : > { %v3270_v37 = vsel %vm772_vm1, %v10220_v19, %v3269_v23  ;;  %v4089_v34 = vmul.f32 %v8600_v47, %v9977_v50  ;;  %v2874_v5 = vadd.f32 %v2841_v22, %v2750_v15  ;;  %v3272_v48 = vsel %vm772_vm1, %v3269_v23, %v3271_v17 }
 0x2e4   : > { %v4090_v58 = vmul.f32 %v9977_v50, %v2378_v25  ;;  %v3338_v24 = vmul.f32 %v4718_v52, %v10212_v32  ;;  %v3306_v19 = vadd.f32 %v3270_v37, %v3176_v44  ;;  %v3653_v27 = vrot.slane %v3593_v45, 1 }
 0x2e5   : > { %v3655_v42 = vrot.slane %v3594_v7, 1  ;;  %v4719_v30 = vunpack.i.h.bf16 %v4717_v14  ;;  %v3307_v55 = vadd.f32 %v3272_v48, %v3177_v18  ;;  %v10221_v10 = vrot.slane %v8553_v9, 2 }
 0x2e6   : > { %v2214_v47 = vrot.slane %v2151_v53, 1  ;;  %v3397_v57 = vrot.slane %v3337_v2, 1  ;;  %v3780_v23 = vsel %vm1365_vm0, %v3777_v16, %v3779_v43  ;;  %v10222_v25 = vrot.slane %v8613_v29, 1 }
 0x2e7   : > { %v8743_v51 = vsel %vm1365_vm0, %v10221_v10, %v3777_v16  ;;  %v8750_v44 = vsel %vm1365_vm0, %v2964_v60, %v2966_v26  ;;  %v4149_v14 = vrot.slane %v4089_v34, 2  ;;  %v2998_v22 = vadd.f32 %v2965_v36, %v2874_v5  ;;  %v10228_v34 = vld [vmem:[#allocation16_spill] sm:$0xff] }
 0x2e8   : > { %v2471_v15 = vsel %vm772_vm1, %v10222_v25, %v2470_v49  ;;  %v4151_v17 = vrot.slane %v4090_v58, 2  ;;  %v3399_v18 = vrot.slane %v3338_v24, 1  ;;  %v4724_v9 = vunpack.i.l.bf16 %v8738_v62  ;;  %v10227_v49 = vld [vmem:[#allocation15_spill] sm:$0xff] }
 0x2e9   : > { %v10223_v45 = vrot.slane %v8643_v46, 1  ;;  %v3656_v37 = vsel %vm772_vm1, %v3653_v27, %v3655_v42  ;;  %v3074_v16 = vmul.f32 %v4719_v30, %v9897_v38  ;;  %v8759_v29 = vmul.f32 %v4719_v30, %v10212_v32 }
 0x2ea   : > { %v10224_v60 = vrot.slane %v8565_v63, 1  ;;  %v10225_v58 = vrot.slane %v8593_v56, 1  ;;  %v2279_v2 = vmul.f32 %v4724_v9, %v10182_v4  ;;  %v3465_v46 = vmul.f32 %v8570_v3, %v10214_v8 }
 0x2eb   : > { %v3654_v7 = vsel %vm772_vm1, %v10223_v45, %v3653_v27  ;;  %v10226_v42 = vrot.slane %v8647_v20, 2  ;;  %v2655_v26 = vmul.f32 %v4718_v52, %v10227_v49  ;;  %v3841_v63 = vmul.f32 %v8555_v6, %v10228_v34  ;;  %v8784_v27 = vpop.permute.xlu1 %4728  ;;  %v4735_v45 = vpop.permute.xlu0 %4734 }
 0x2ec   : > { %v2215_v53 = vsel %vm772_vm1, %v10224_v60, %v2214_v47  ;;  %v3398_v36 = vsel %vm772_vm1, %v10225_v58, %v3397_v57  ;;  %v3466_v5 = vmul.f32 %v4724_v9, %v10214_v8  ;;  %v3046_v56 = vadd.f32 %v8661_v11, %v2998_v22 }
 0x2ed   : > { %v8773_v43 = vsel %vm1365_vm0, %v10226_v42, %v4149_v14  ;;  %v8781_v48 = vsel %vm1365_vm0, %v4149_v14, %v4151_v17  ;;  %v3400_v4 = vsel %vm772_vm1, %v3397_v57, %v3399_v18  ;;  %v2342_v24 = vrot.slane %v2279_v2, 1 }
 0x2ee   : > { %v2247_v20 = vadd.f32 %v2215_v53, %v8703_v13  ;;  %v3434_v10 = vadd.f32 %v3398_v36, %v3306_v19  ;;  %v3435_v47 = vadd.f32 %v3400_v4, %v3307_v55  ;;  %v3842_v25 = vmul.f32 %v4718_v52, %v10228_v34 }
 0x2ef   : > { %v10229_v6 = vrot.slane %v8598_v54, 1  ;;  %v2779_v11 = vmul.f32 %v4724_v9, %v10167_v12  ;;  %v3525_v14 = vrot.slane %v3465_v46, 1  ;;  %v3527_v22 = vrot.slane %v3466_v5, 1 }
 0x2f0   : > { %v2718_v17 = vrot.slane %v2655_v26, 2  ;;  %v3901_v57 = vrot.slane %v3841_v63, 2  ;;  %v4737_v18 = vunpack.i.h.bf16 %v4735_v45  ;;  %v10230_v2 = vrot.slane %v8629_v1, 1  ;;  %v8805_v26 = vpop.permute.xlu1 %4740 }
 0x2f1   : > { %v2343_v60 = vsel %vm772_vm1, %v10229_v6, %v2342_v24  ;;  %v3528_v55 = vsel %vm772_vm1, %v3525_v14, %v3527_v22  ;;  %v3965_v52 = vmul.f32 %v8570_v3, %v10215_v61  ;;  %v3966_v54 = vmul.f32 %v4724_v9, %v10215_v61 }
 0x2f2   : > { %v2375_v58 = vadd.f32 %v2343_v60, %v2247_v20  ;;  %v3526_v13 = vsel %vm772_vm1, %v10230_v2, %v3525_v14  ;;  %v3903_v19 = vrot.slane %v3842_v25, 2  ;;  %v3563_v36 = vadd.f32 %v3528_v55, %v3435_v47 }
 0x2f3   : > { %v3562_v12 = vadd.f32 %v3526_v13, %v3434_v10  ;;  %v3401_v46 = vrot.slane %v8759_v29, 1  ;;  %v8801_v42 = vmul.f32 %v4719_v30, %v10228_v34  ;;  %v8803_v49 = vadd.f32 %v3074_v16, %v3046_v56 }
 0x2f4   : > { %v2503_v53 = vadd.f32 %v2471_v15, %v2375_v58  ;;  %v2842_v1 = vrot.slane %v2779_v11, 2  ;;  %v10231_v63 = vrot.slane %v8578_v33, 2  ;;  %v3691_v9 = vadd.f32 %v3656_v37, %v3563_v36  ;;  %v10236_v36 = vld [vmem:[#allocation25_spill] sm:$0xff] }
 0x2f5   : > { %v3690_v5 = vadd.f32 %v3654_v7, %v3562_v12  ;;  %v10232_v4 = vrot.slane %v8603_v0, 2  ;;  %v8815_v30 = vmul.f32 %v4737_v18, %v10212_v32  ;;  %v4025_v16 = vrot.slane %v3965_v52, 2 }
 0x2f6   : > { %v2719_v3 = vsel %vm1365_vm0, %v10231_v63, %v2718_v17  ;;  %v2627_v15 = vadd.f32 %v8718_v40, %v2503_v53  ;;  %v4027_v56 = vrot.slane %v3966_v54, 2  ;;  %v3904_v20 = vsel %vm1365_vm0, %v3901_v57, %v3903_v19  ;;  %v10235_v17 = vld [vmem:[#allocation10_spill] sm:$0xff] }
 0x2f7   : > { %v3902_v24 = vsel %vm1365_vm0, %v10232_v4, %v3901_v57  ;;  %v3814_v10 = vadd.f32 %v8743_v51, %v3690_v5  ;;  %v3815_v33 = vadd.f32 %v3780_v23, %v3691_v9  ;;  %v4736_v25 = vunpack.i.l.bf16 %v4735_v45  ;;  %v4747_v57 = vpop.permute.xlu1 %4746  ;;  %v8850_v63 = vld [vmem:[%s8924_s2] ss:$0 sm:$0xff] }
 0x2f8   : > { %v2751_v47 = vadd.f32 %v2719_v3, %v2627_v15  ;;  %v4731_v7 = vunpack.i.h.bf16 %v8784_v27  ;;  %v4730_v40 = vunpack.i.l.bf16 %v8784_v27  ;;  %v10233_v0 = vrot.slane %v8682_v21, 2  ;;  %v3568_v3 = vpop.permute.xlu0 %3567 }
 0x2f9   : > { %v8825_v6 = vmul.f32 %v4737_v18, %v10228_v34  ;;  %v3938_v60 = vadd.f32 %v3902_v24, %v3814_v10  ;;  %v3939_v11 = vadd.f32 %v3904_v20, %v3815_v33  ;;  %v3075_v22 = vmul.f32 %v4736_v25, %v9897_v38 }
 0x2fa   : > { %v2843_v37 = vsel %vm1365_vm0, %v10233_v0, %v2842_v1  ;;  %v10234_v51 = vrot.slane %v8633_v28, 2  ;;  %v4028_v45 = vsel %vm1365_vm0, %v4025_v16, %v4027_v56  ;;  %v3031_v27 = vmul.f32 %v4730_v40, %v10235_v17 }
 0x2fb   : > { %v2875_v14 = vadd.f32 %v2843_v37, %v2751_v47  ;;  %v4063_v58 = vadd.f32 %v4028_v45, %v3939_v11  ;;  %v4749_v18 = vunpack.i.h.bf16 %v4747_v57  ;;  %v8835_v13 = vunpack.i.h.bf16 %v8738_v62 }
 0x2fc   : > { %v4026_v23 = vsel %vm1365_vm0, %v10234_v51, %v4025_v16  ;;  %v3213_v55 = vmul.f32 %v4731_v7, %v10208_v35  ;;  %v4743_v38 = vunpack.i.h.bf16 %v8805_v26  ;;  %v4742_v28 = vunpack.i.l.bf16 %v8805_v26 }
 0x2fd   : > { %v4062_v21 = vadd.f32 %v4026_v23, %v3938_v60  ;;  %v2999_v2 = vadd.f32 %v8750_v44, %v2875_v14  ;;  %v4187_v54 = vadd.f32 %v8781_v48, %v4063_v58  ;;  %v3212_v53 = vmul.f32 %v4730_v40, %v10208_v35 }
 0x2fe   : > { %v3404_v12 = vrot.slane %v8815_v30, 1  ;;  %v3908_v44 = vrot.slane %v8825_v6, 2  ;;  %v3340_v62 = vmul.f32 %v4736_v25, %v10212_v32  ;;  %v3119_v1 = vmul.f32 %v4742_v28, %v10236_v36 }
 0x2ff   : > { %v4186_v52 = vadd.f32 %v8773_v43, %v4062_v21  ;;  %v3047_v19 = vadd.f32 %v3031_v27, %v2999_v2  ;;  %v4210_v48 = vadd.f32 %v8850_v63, %v4187_v54  ;;  %v3163_v35 = vmul.f32 %v4749_v18, %v9797_v31 }
 0x300   : > { %v3118_v32 = vmul.f32 %v8835_v13, %v10236_v36  ;;  %v3467_v5 = vmul.f32 %v8835_v13, %v10214_v8  ;;  %v3276_v9 = vrot.slane %v3213_v55, 1  ;;  %v3469_v15 = vmul.f32 %v4743_v38, %v10214_v8 }
 0x301   : > { %v4209_v43 = vadd.f32 %v8850_v63, %v4186_v52  ;;  %v3091_v26 = vadd.f32 %v3075_v22, %v3047_v19  ;;  %v4226_v24 = vmax.f32 %v4210_v48, 0.0  ;;  %v3274_v30 = vrot.slane %v3212_v53, 1 }
 0x302   : > { %v3468_v56 = vmul.f32 %v4742_v28, %v10214_v8  ;;  %v3596_v20 = vmul.f32 %v4749_v18, %v9913_v41  ;;  %v4748_v10 = vunpack.i.l.bf16 %v4747_v57  ;;  %v3597_v33 = vmul.f32 %v9913_v41, %v3568_v3 }
 0x303   : > { %v4225_v4 = vmax.f32 %v4209_v43, 0.0  ;;  %v3135_v16 = vadd.f32 %v3119_v1, %v3091_v26  ;;  %v3402_v47 = vrot.slane %v3340_v62, 1  ;;  %v3134_v0 = vadd.f32 %v3118_v32, %v8803_v49  ;;  %4242 = vst [vmem:[%s8118_s19 + $0x68] sm:$0xff] %v4226_v24 }
 0x304   : > { %v3721_v37 = vmul.f32 %v4731_v7, %v10209_v39  ;;  %v3277_v11 = vsel %vm772_vm1, %v3274_v30, %v3276_v9  ;;  %v3532_v14 = vrot.slane %v3469_v15, 1  ;;  %v3162_v22 = vmul.f32 %v4748_v10, %v9797_v31 }
 0x305   : > { %4241 = vst [vmem:[%s8118_s19 + $0x60] sm:$0xff] %v4225_v4  ;;  %v3179_v60 = vadd.f32 %v3163_v35, %v3135_v16  ;;  %v3595_v8 = vmul.f32 %v4748_v10, %v9913_v41  ;;  %v3405_v51 = vsel %vm772_vm1, %v3402_v47, %v3404_v12  ;;  %v3844_v23 = vmul.f32 %v4736_v25, %v10228_v34  ;;  %v10238_v4 = vld [vmem:[#allocation249_spill] sm:$0xff] }
 0x306   : > { %v3720_v45 = vmul.f32 %v4730_v40, %v10209_v39  ;;  %v3530_v49 = vrot.slane %v3468_v56, 1  ;;  %v3658_v27 = vrot.slane %v3596_v20, 1  ;;  %v3178_v57 = vadd.f32 %v3162_v22, %v3134_v0 }
 0x307   : > { %v3309_v17 = vadd.f32 %v3277_v11, %v3179_v60  ;;  %v3660_v21 = vrot.slane %v3597_v33, 1  ;;  %v3529_v7 = vrot.slane %v3467_v5, 1  ;;  %v10237_v58 = vrot.slane %v8664_v59, 1 }
 0x308   : > { %v3657_v55 = vrot.slane %v3595_v8, 1  ;;  %v3784_v52 = vrot.slane %v3721_v37, 2  ;;  %v3969_v41 = vmul.f32 %v4743_v38, %v10215_v61  ;;  %v3533_v54 = vsel %vm772_vm1, %v3530_v49, %v3532_v14 }
 0x309   : > { %v3275_v2 = vsel %vm772_vm1, %v10237_v58, %v3274_v30  ;;  %v3437_v31 = vadd.f32 %v3405_v51, %v3309_v17  ;;  %v3403_v39 = vsel %vm772_vm1, %v3401_v46, %v3402_v47  ;;  %v3782_v25 = vrot.slane %v3720_v45, 2 }
 0x30a   : > { %v3308_v34 = vadd.f32 %v3275_v2, %v3178_v57  ;;  %v3968_v40 = vmul.f32 %v4742_v28, %v10215_v61  ;;  %v4092_v59 = vmul.f32 %v4749_v18, %v9977_v50  ;;  %v3661_v12 = vsel %vm772_vm1, %v3658_v27, %v3660_v21 }
 0x30b   : > { %v3565_v19 = vadd.f32 %v3533_v54, %v3437_v31  ;;  %v4093_v62 = vmul.f32 %v9977_v50, %v3568_v3  ;;  %v3906_v36 = vrot.slane %v3844_v23, 2  ;;  %v3531_v38 = vsel %vm772_vm1, %v3529_v7, %v3530_v49 }
 0x30c   : > { %v3436_v53 = vadd.f32 %v3403_v39, %v3308_v34  ;;  %v3659_v1 = vsel %vm772_vm1, %v3657_v55, %v3658_v27  ;;  %v3905_v29 = vrot.slane %v8801_v42, 2  ;;  %v3785_v46 = vsel %vm1365_vm0, %v3782_v25, %v3784_v52 }
 0x30d   : > { %v3693_v43 = vadd.f32 %v3661_v12, %v3565_v19  ;;  %v4032_v48 = vrot.slane %v3969_v41, 2  ;;  %v3909_v18 = vsel %vm1365_vm0, %v3906_v36, %v3908_v44  ;;  %v3967_v26 = vmul.f32 %v8835_v13, %v10215_v61 }
 0x30e   : > { %v3564_v28 = vadd.f32 %v3531_v38, %v3436_v53  ;;  %v4091_v35 = vmul.f32 %v4748_v10, %v9977_v50  ;;  %v4030_v32 = vrot.slane %v3968_v40, 2  ;;  %v4154_v5 = vrot.slane %v4092_v59, 2 }
 0x30f   : > { %v3817_v3 = vadd.f32 %v3785_v46, %v3693_v43  ;;  %v4156_v15 = vrot.slane %v4093_v62, 2  ;;  %v10239_v42 = vrot.slane %v10238_v4, 2  ;;  %v3907_v44 = vsel %vm1365_vm0, %v3905_v29, %v3906_v36 }
 0x310   : > { %v3692_v9 = vadd.f32 %v3659_v1, %v3564_v28  ;;  %v4033_v16 = vsel %vm1365_vm0, %v4030_v32, %v4032_v48  ;;  %v4029_v61 = vrot.slane %v3967_v26, 2  ;;  %v4153_v13 = vrot.slane %v4091_v35, 2 }
 0x311   : > { %v3783_v24 = vsel %vm1365_vm0, %v10239_v42, %v3782_v25  ;;  %v3941_v30 = vadd.f32 %v3909_v18, %v3817_v3  ;;  %v4157_v20 = vsel %vm1365_vm0, %v4154_v5, %v4156_v15 }
 0x312   : > { %v3816_v6 = vadd.f32 %v3783_v24, %v3692_v9  ;;  %v4031_v10 = vsel %vm1365_vm0, %v4029_v61, %v4030_v32  ;;  %v4155_v0 = vsel %vm1365_vm0, %v4153_v13, %v4154_v5 }
 0x313   : > { %v4065_v50 = vadd.f32 %v4033_v16, %v3941_v30 }
 0x314   : > { %v3940_v56 = vadd.f32 %v3907_v44, %v3816_v6 }
 0x315   : > { %v4189_v33 = vadd.f32 %v4157_v20, %v4065_v50 }
 0x316   : > { %v4064_v47 = vadd.f32 %v4031_v10, %v3940_v56 }
 0x317   : > { %v4212_v37 = vadd.f32 %v8850_v63, %v4189_v33 }
 0x318   : > { %v4188_v60 = vadd.f32 %v4155_v0, %v4064_v47 }
 0x319   : > { %v4228_v11 = vmax.f32 %v4212_v37, 0.0 }
 0x31a   : > { %v4211_v14 = vadd.f32 %v8850_v63, %v4188_v60 }
 0x31b   : > { %4244 = vst [vmem:[%s8118_s19 + $0x78] sm:$0xff] %v4228_v11 }
 0x31c   : > { %v4227_v22 = vmax.f32 %v4211_v14, 0.0 }
 0x31e   : > { %4243 = vst [vmem:[%s8118_s19 + $0x70] sm:$0xff] %v4227_v22 }
 0x31f PF: > { %s13_s16 = sadd.s32 1, %s4790_s16   ;;  %s10240_s12 = smov %s4782_s14 }
 0x320   : > { %p10_p7 = scmp.ge.s32.totalorder %s13_s16, 6   ;;  %s10241_s13 = smov %s4786_s15 }
 0x321   : > { %s10242_s14 = smov %s10245_s17  ;;  %s10243_s15 = smov %s10249_s18 }
 0x322   :  { %12 = sbr.rel (!%p10_p7) target bundleno = 3 (0x3), region = 63 }

</bundles_post_ra>
